<compile_context>
chip_gen: v5e
topology: v5e:2x2
jax: 0.10.0
libtpu: 0.0.40
codegen_flags: <defaults>
</compile_context>

<pallas_src>
import functools

import numpy as np

import jax
import jax.numpy as jnp
from jax.experimental import pallas as pl
from jax.experimental.pallas import tpu as pltpu


DOT_DTYPE = jnp.bfloat16          # MXU operand dtype; accumulation is f32.
SUB = 8                           # sublane alignment for channels / tap slots.

# Kernel-tap offsets in (dh, dw) order; must match the host-side weight
# flattening (tap-major, cin minor) and the halo-mask builder below.
_OFFSETS = tuple((dh, dw) for dh in (-1, 0, 1) for dw in (-1, 0, 1))


def _round_up(x, m):
    return (x + m - 1) // m * m


def _leaky(y):
    return jnp.where(y >= 0, y, 0.01 * y)


def _const_spec(shape):
    """Constant-index (weight/mask) input: same block every grid step -> single buffer."""
    index_map = lambda b: (0,) * len(shape)
    try:
        return pl.BlockSpec(shape, index_map, pipeline_mode=pl.Buffered(1))
    except Exception:  # older jax without pipeline_mode / Buffered
        return pl.BlockSpec(shape, index_map)


# ----------------------------------------------------------------------------
# Fused Pallas kernel (one grid step == one batch sample, fully VMEM resident)
# ----------------------------------------------------------------------------

def fused_blocklist_kernel(
        x_ref,        # (1, Cp, HW)   f32  channel-padded activations (1 sample)
        w_ref,        # (RW, LW)      bf16 packed matmul weights
        f_ref,        # (FR, HW)      f32  rows 0..8 halo masks, bias block below
        o_ref,        # (1, Cp, HW)   f32
        col_ref,      # (9*Pmax, HW)  bf16 im2col scratch
        *, num_block, H, W, Cp, SAHp, CAHp,
        blk_off, sa1_off, sa2_off, ca1_off, ca2_off,
        bias_row, col_cab1, col_cab2, col_wo, col_bo):
    HW = H * W
    BR = max(Cp, SAHp, CAHp)

    # Hoisted once per sample, reused by every block / conv.
    masks = [f_ref[i:i + 1, :] for i in range(9)]              # (1, HW) each
    bias_blk = f_ref[bias_row:bias_row + BR, :]                # (BR, HW)
    w_sa1 = w_ref[sa1_off:sa1_off + SAHp, 0:9 * Cp]            # (SAHp, 9*Cp)
    w_sa2 = w_ref[sa2_off:sa2_off + SAHp, 0:9 * SAHp]          # (SAHp, 9*SAHp)
    w_ca1 = w_ref[ca1_off:ca1_off + CAHp, 0:Cp]                # (CAHp, Cp)
    w_ca2 = w_ref[ca2_off:ca2_off + Cp, 0:CAHp]                # (Cp, CAHp)
    cab1 = bias_blk[0:CAHp, col_cab1:col_cab1 + 1]             # (CAHp, 1)
    cab2 = bias_blk[0:Cp, col_cab2:col_cab2 + 1]               # (Cp, 1)
    wo = bias_blk[0:SAHp, col_wo:col_wo + 1]                   # (SAHp, 1)
    bo = bias_blk[0:1, col_bo:col_bo + 1]                      # (1, 1)

    def conv3x3_in_lrelu(xf, w):
        """3x3 same-conv -> InstanceNorm(affine=False, eps=1e-5) -> LeakyReLU.

        xf: (P, HW) f32, P already 8-sublane padded.  Spatial shifts via
        pltpu.roll (XLU) on the lane axis + precomputed 0/1 halo masks; taps are
        cast to bf16 on store into an aligned im2col scratch, then ONE K=9*P
        matmul produces the lane-dense (Cout, HW) output.  The conv bias is an
        exact no-op under affine-free InstanceNorm and is elided.
        """
        P = xf.shape[0]
        for idx, (dh, dw) in enumerate(_OFFSETS):
            d = dh * W + dw
            if d == 0:
                col_ref[idx * P:(idx + 1) * P, :] = xf.astype(DOT_DTYPE)
            else:
                shifted = pltpu.roll(xf, (-d) % HW, axis=1)
                col_ref[idx * P:(idx + 1) * P, :] = (
                    shifted * masks[idx]).astype(DOT_DTYPE)
        y = jnp.dot(w, col_ref[0:9 * P, :], preferred_element_type=jnp.float32)
        # One-pass InstanceNorm stats: two back-to-back lane reductions.
        mean = jnp.mean(y, axis=1, keepdims=True)
        mean_sq = jnp.mean(y * y, axis=1, keepdims=True)
        var = jnp.maximum(mean_sq - mean * mean, 0.0)
        return _leaky((y - mean) * jax.lax.rsqrt(var + 1e-5))

    lane2 = jax.lax.broadcasted_iota(jnp.int32, (1, 2), 1)     # [[0, 1]]

    x = x_ref[0]                                               # (Cp, HW)
    out = None
    for n in range(num_block):
        # Block placeholder: 1x1 conv + LeakyReLU.
        # TODO(synk): real `Block` definition not provided in the spec.
        wb = w_ref[blk_off + n * Cp:blk_off + (n + 1) * Cp, 0:Cp]
        bb = bias_blk[0:Cp, n:n + 1]
        x = _leaky(jnp.dot(wb, x.astype(DOT_DTYPE),
                           preferred_element_type=jnp.float32) + bb)

        # SpatialAttention: (conv3x3+IN+LReLU) x2 -> 1x1 conv (VPU/XLU) -> sigmoid.
        h = conv3x3_in_lrelu(x, w_sa1)                         # (SAHp, HW)
        h = conv3x3_in_lrelu(h, w_sa2)                         # (SAHp, HW)
        sa = jax.nn.sigmoid(jnp.sum(h * wo, axis=0, keepdims=True) + bo)  # (1,HW)

        # ChannelAttention: avg & max branches batched through the shared MLP.
        avg = jnp.mean(x, axis=1, keepdims=True)               # (Cp, 1)
        mx = jnp.max(x, axis=1, keepdims=True)                 # (Cp, 1)
        v = jnp.where(lane2 == 0, avg, mx)                     # (Cp, 2): [avg|max]
        hm = _leaky(jnp.dot(w_ca1, v.astype(DOT_DTYPE),
                            preferred_element_type=jnp.float32) + cab1)
        om = _leaky(jnp.dot(w_ca2, hm.astype(DOT_DTYPE),
                            preferred_element_type=jnp.float32) + cab2)
        ca = jax.nn.sigmoid(om[:, 0:1] + om[:, 1:2])           # (Cp, 1)

        # AFA fusion, forward recurrence: A_k = (1-q_k)*A_{k-1} + x_k*q_k.
        q = ca * sa                                            # (Cp,1)*(1,HW)
        out = x * q if n == 0 else out * (1.0 - q) + x * q
    o_ref[0] = out                                             # patchify == id


# ----------------------------------------------------------------------------
# Host-side wrapper
# ----------------------------------------------------------------------------

def blocklist_forward(x_nchw, params):
    """BlockList.forward with AFA options (num_dim=2, spatial_size_in_channel=1).

    x_nchw: (B, C, H, W) float32 -> (B, C, H, W) float32.  The entire forward
    runs as a single VMEM-resident pallas_call, gridded over the batch.
    """
    B, C, H, W = x_nchw.shape
    HW = H * W
    nb = len(params["blocks"])
    SAH = params["sa"]["w1"].shape[3]
    CAH = params["ca"]["w1"].shape[1]
    Cp, SAHp, CAHp = (_round_up(d, SUB) for d in (C, SAH, CAH))
    BR = max(Cp, SAHp, CAHp)

    # Activations: lane-dense (C, H*W), channels zero-padded to 8 sublanes so
    # every im2col store / block matmul stays full-tile aligned.
    xf = jnp.zeros((B, Cp, HW), jnp.float32).at[:, :C, :].set(
        x_nchw.reshape(B, C, HW))

    # ---- f32 slab: 9 halo masks + bias/vector block (one column per vector).
    bias_row = _round_up(9, SUB)                 # keep the bias block 8-aligned
    f_rows = _round_up(bias_row + BR, SUB)
    f_np = np.zeros((f_rows, HW), np.float32)
    rr, cc = np.arange(HW) // W, np.arange(HW) % W
    for idx, (dh, dw) in enumerate(_OFFSETS):
        ok = (rr + dh >= 0) & (rr + dh < H) & (cc + dw >= 0) & (cc + dw < W)
        f_np[idx, :] = ok.astype(np.float32)
    f_slab = jnp.asarray(f_np)
    col_cab1, col_cab2, col_wo, col_bo = nb, nb + 1, nb + 2, nb + 3

    def put_vec(slab, col, vec):
        return slab.at[bias_row:bias_row + vec.shape[0], col].set(vec)

    for n, (_, b) in enumerate(params["blocks"]):
        f_slab = put_vec(f_slab, n, b)
    f_slab = put_vec(f_slab, col_cab1, params["ca"]["b1"])
    f_slab = put_vec(f_slab, col_cab2, params["ca"]["b2"])
    f_slab = put_vec(f_slab, col_wo, params["sa"]["wo"][:, 0])
    f_slab = put_vec(f_slab, col_bo, params["sa"]["bo"])
    # (SpatialAttention conv biases sab1/sab2 are exact no-ops under affine-free
    #  InstanceNorm and are dropped entirely.)

    # ---- bf16 weight slab (lane width >=128): 1x1 convs as (Cout, Cin) blocks;
    # 3x3 convs flattened to (Cout, 9*Cin_pad) matching the in-kernel im2col row
    # order (tap-major, cin minor, cin zero-padded to 8 sublanes).
    blk_off = 0
    sa1_off = blk_off + nb * Cp
    sa2_off = sa1_off + SAHp
    ca1_off = sa2_off + SAHp
    ca2_off = ca1_off + CAHp
    RW = _round_up(ca2_off + Cp, SUB)
    LW = _round_up(max(9 * Cp, 9 * SAHp, Cp, CAHp), 128)
    w_slab = jnp.zeros((RW, LW), jnp.float32)
    for n, (w, _) in enumerate(params["blocks"]):
        w_slab = w_slab.at[blk_off + n * Cp:blk_off + n * Cp + C, :C].set(w.T)

    def pack3x3(w, cin, cin_p):
        cout = w.shape[3]
        wp = jnp.zeros((3, 3, cin_p, cout), jnp.float32).at[:, :, :cin, :].set(w)
        return wp.reshape(9 * cin_p, cout).T                  # (cout, 9*cin_p)

    w_slab = w_slab.at[sa1_off:sa1_off + SAH, :9 * Cp].set(
        pack3x3(params["sa"]["w1"], C, Cp))
    w_slab = w_slab.at[sa2_off:sa2_off + SAH, :9 * SAHp].set(
        pack3x3(params["sa"]["w2"], SAH, SAHp))
    w_slab = w_slab.at[ca1_off:ca1_off + CAH, :C].set(params["ca"]["w1"].T)
    w_slab = w_slab.at[ca2_off:ca2_off + C, :CAH].set(params["ca"]["w2"].T)
    w_slab = w_slab.astype(DOT_DTYPE)

    kern = functools.partial(
        fused_blocklist_kernel, num_block=nb, H=H, W=W, Cp=Cp, SAHp=SAHp,
        CAHp=CAHp, blk_off=blk_off, sa1_off=sa1_off, sa2_off=sa2_off,
        ca1_off=ca1_off, ca2_off=ca2_off, bias_row=bias_row,
        col_cab1=col_cab1, col_cab2=col_cab2, col_wo=col_wo, col_bo=col_bo)

    out = pl.pallas_call(
        kern,
        out_shape=jax.ShapeDtypeStruct((B, Cp, HW), jnp.float32),
        grid=(B,),
        in_specs=[
            pl.BlockSpec((1, Cp, HW), lambda b: (b, 0, 0)),   # activations
            _const_spec((RW, LW)),                            # bf16 weight slab
            _const_spec((f_rows, HW)),                        # masks + biases
        ],
        out_specs=pl.BlockSpec((1, Cp, HW), lambda b: (b, 0, 0)),
        scratch_shapes=[
            pltpu.VMEM((9 * max(Cp, SAHp), HW), DOT_DTYPE),   # im2col scratch
        ],
        compiler_params=pltpu.CompilerParams(
            dimension_semantics=("parallel",),   # batch -> both TCs on v7x
            vmem_limit_bytes=32 * 1024 * 1024,
        ),
    )(xf, w_slab, f_slab)
    return out[:, :C, :].reshape(B, C, H, W)


# ----------------------------------------------------------------------------
# Deterministic parameter init
# ----------------------------------------------------------------------------

def init_params(key, *, num_block, channel, sa_hidden, ca_hidden):
    ks = iter(jax.random.split(key, 4 * num_block + 16))
    scale = 0.1

    blocks = []
    for _ in range(num_block):
        bw = scale * jax.random.normal(next(ks), (channel, channel), jnp.float32)
        bb = scale * jax.random.normal(next(ks), (channel,), jnp.float32)
        blocks.append((bw, bb))

    sa = {
        "w1": scale * jax.random.normal(next(ks), (3, 3, channel, sa_hidden), jnp.float32),
        "b1": scale * jax.random.normal(next(ks), (sa_hidden,), jnp.float32),
        "w2": scale * jax.random.normal(next(ks), (3, 3, sa_hidden, sa_hidden), jnp.float32),
        "b2": scale * jax.random.normal(next(ks), (sa_hidden,), jnp.float32),
        "wo": scale * jax.random.normal(next(ks), (sa_hidden, 1), jnp.float32),
        "bo": scale * jax.random.normal(next(ks), (1,), jnp.float32),
    }
    ca = {
        "w1": scale * jax.random.normal(next(ks), (channel, ca_hidden), jnp.float32),
        "b1": scale * jax.random.normal(next(ks), (ca_hidden,), jnp.float32),
        "w2": scale * jax.random.normal(next(ks), (ca_hidden, channel), jnp.float32),
        "b2": scale * jax.random.normal(next(ks), (channel,), jnp.float32),
    }
    return {"blocks": blocks, "sa": sa, "ca": ca}


# ----------------------------------------------------------------------------
# Main
# ----------------------------------------------------------------------------

if __name__ == "__main__":
    # BlockList.Options equivalent:
    #   block_option.num_channel = 4, num_block = 3
    #   afa_options: num_dim=2, spatial_size=16, spatial_size_in_channel=1,
    #                spatial_attn_hidden_dim=8, channel_attn_hidden_dim=8
    B, C, H, W = 2, 4, 16, 16
    num_block, sa_hidden, ca_hidden = 3, 8, 8

    key = jax.random.PRNGKey(0)
    k_x, k_p = jax.random.split(key)
    x = jax.random.normal(k_x, (B, C, H, W), jnp.float32)
    params = init_params(k_p, num_block=num_block, channel=C,
                         sa_hidden=sa_hidden, ca_hidden=ca_hidden)

    fwd = jax.jit(blocklist_forward)
    out = jax.block_until_ready(fwd(x, params))
    assert out.shape == (B, C, H, W), out.shape
    assert bool(jnp.all(jnp.isfinite(out)))
    print("KERNEL_OK")
</pallas_src>

<mosaic_0001>
module attributes {stable_mosaic.version = 11 : i64} {
  func.func @fused_blocklist_kernel(%arg0: i32, %arg1: memref<1x8x256xf32, #tpu.memory_space<vmem>>, %arg2: memref<56x128xbf16, #tpu.memory_space<vmem>>, %arg3: memref<24x256xf32, #tpu.memory_space<vmem>>, %arg4: memref<1x8x256xf32, #tpu.memory_space<vmem>>, %arg5: memref<72x256xbf16, #tpu.memory_space<vmem>>) attributes {dimension_semantics = [#tpu.dimension_semantics<parallel>], iteration_bounds = array<i64: 2>, scalar_prefetch = 0 : i64, scratch_operands = 1 : i64, tpu.core_type = #tpu.core_type<tc>, window_params = [{transform_indices = @transform_0, window_bounds = array<i64: 1, 8, 256>}, {pipeline_mode = #tpu.pipeline_mode<synchronous>, transform_indices = @transform_1, window_bounds = array<i64: 56, 128>}, {pipeline_mode = #tpu.pipeline_mode<synchronous>, transform_indices = @transform_2, window_bounds = array<i64: 24, 256>}, {transform_indices = @transform_3, window_bounds = array<i64: 1, 8, 256>}]} {
    %c0 = arith.constant 0 : index
    %c0_0 = arith.constant 0 : index
    %0 = vector.load %arg3[%c0, %c0_0] : memref<24x256xf32, #tpu.memory_space<vmem>>, vector<1x256xf32>
    %c1 = arith.constant 1 : index
    %c0_1 = arith.constant 0 : index
    %1 = vector.load %arg3[%c1, %c0_1] : memref<24x256xf32, #tpu.memory_space<vmem>>, vector<1x256xf32>
    %c2 = arith.constant 2 : index
    %c0_2 = arith.constant 0 : index
    %2 = vector.load %arg3[%c2, %c0_2] : memref<24x256xf32, #tpu.memory_space<vmem>>, vector<1x256xf32>
    %c3 = arith.constant 3 : index
    %c0_3 = arith.constant 0 : index
    %3 = vector.load %arg3[%c3, %c0_3] : memref<24x256xf32, #tpu.memory_space<vmem>>, vector<1x256xf32>
    %c5 = arith.constant 5 : index
    %c0_4 = arith.constant 0 : index
    %4 = vector.load %arg3[%c5, %c0_4] : memref<24x256xf32, #tpu.memory_space<vmem>>, vector<1x256xf32>
    %c6 = arith.constant 6 : index
    %c0_5 = arith.constant 0 : index
    %5 = vector.load %arg3[%c6, %c0_5] : memref<24x256xf32, #tpu.memory_space<vmem>>, vector<1x256xf32>
    %c7 = arith.constant 7 : index
    %c0_6 = arith.constant 0 : index
    %6 = vector.load %arg3[%c7, %c0_6] : memref<24x256xf32, #tpu.memory_space<vmem>>, vector<1x256xf32>
    %c8 = arith.constant 8 : index
    %c0_7 = arith.constant 0 : index
    %7 = vector.load %arg3[%c8, %c0_7] : memref<24x256xf32, #tpu.memory_space<vmem>>, vector<1x256xf32>
    %c16 = arith.constant 16 : index
    %c0_8 = arith.constant 0 : index
    %8 = vector.load %arg3[%c16, %c0_8] : memref<24x256xf32, #tpu.memory_space<vmem>>, vector<8x256xf32>
    %c24 = arith.constant 24 : index
    %c0_9 = arith.constant 0 : index
    %9 = vector.load %arg2[%c24, %c0_9] : memref<56x128xbf16, #tpu.memory_space<vmem>>, vector<8x72xbf16>
    %c32 = arith.constant 32 : index
    %c0_10 = arith.constant 0 : index
    %10 = vector.load %arg2[%c32, %c0_10] : memref<56x128xbf16, #tpu.memory_space<vmem>>, vector<8x72xbf16>
    %c40 = arith.constant 40 : index
    %c0_11 = arith.constant 0 : index
    %11 = vector.load %arg2[%c40, %c0_11] : memref<56x128xbf16, #tpu.memory_space<vmem>>, vector<8x8xbf16>
    %c48 = arith.constant 48 : index
    %c0_12 = arith.constant 0 : index
    %12 = vector.load %arg2[%c48, %c0_12] : memref<56x128xbf16, #tpu.memory_space<vmem>>, vector<8x8xbf16>
    %13 = vector.extract_strided_slice %8 {offsets = [0, 3], sizes = [8, 1], strides = [1, 1]} : vector<8x256xf32> to vector<8x1xf32>
    %14 = vector.extract_strided_slice %8 {offsets = [0, 4], sizes = [8, 1], strides = [1, 1]} : vector<8x256xf32> to vector<8x1xf32>
    %15 = vector.extract_strided_slice %8 {offsets = [0, 5], sizes = [8, 1], strides = [1, 1]} : vector<8x256xf32> to vector<8x1xf32>
    %16 = vector.extract_strided_slice %8 {offsets = [0, 6], sizes = [1, 1], strides = [1, 1]} : vector<8x256xf32> to vector<1x1xf32>
    %17 = tpu.iota {dimensions = array<i32: 1>} : vector<1x2xi32>
    %c0_13 = arith.constant 0 : index
    %c0_14 = arith.constant 0 : index
    %c0_15 = arith.constant 0 : index
    %18 = vector.load %arg1[%c0_13, %c0_14, %c0_15] : memref<1x8x256xf32, #tpu.memory_space<vmem>>, vector<1x8x256xf32>
    %19 = vector.shape_cast %18 : vector<1x8x256xf32> to vector<8x256xf32>
    %c0_16 = arith.constant 0 : index
    %c0_17 = arith.constant 0 : index
    %20 = vector.load %arg2[%c0_16, %c0_17] : memref<56x128xbf16, #tpu.memory_space<vmem>>, vector<8x8xbf16>
    %21 = vector.extract_strided_slice %8 {offsets = [0, 0], sizes = [8, 1], strides = [1, 1]} : vector<8x256xf32> to vector<8x1xf32>
    %22 = arith.truncf %19 : vector<8x256xf32> to vector<8x256xbf16>
    %cst = arith.constant dense<0.000000e+00> : vector<8x256xf32>
    %23 = tpu.matmul %20, %22, %cst {dimension_numbers = #tpu.dot_dimension_numbers<[1], [0], [0], [1], [0, 0, 1, 1], [], []>} : vector<8x8xbf16>, vector<8x256xbf16>, vector<8x256xf32> -> vector<8x256xf32>
    %24 = vector.broadcast %21 : vector<8x1xf32> to vector<8x256xf32>
    %25 = arith.addf %23, %24 : vector<8x256xf32>
    %cst_18 = arith.constant 0.000000e+00 : f32
    %26 = vector.broadcast %cst_18 : f32 to vector<8x256xf32>
    %27 = arith.cmpf oge, %25, %26 : vector<8x256xf32>
    %cst_19 = arith.constant 0.00999999977 : f32
    %28 = vector.broadcast %cst_19 : f32 to vector<8x256xf32>
    %29 = arith.mulf %28, %25 : vector<8x256xf32>
    %30 = arith.select %27, %25, %29 : vector<8x256xi1>, vector<8x256xf32>
    %c17_i32 = arith.constant 17 : i32
    %31 = tpu.dynamic_rotate %30 by %c17_i32 dim 1 : vector<8x256xf32>, i32 -> vector<8x256xf32>
    %32 = vector.broadcast %0 : vector<1x256xf32> to vector<8x256xf32>
    %33 = arith.mulf %31, %32 : vector<8x256xf32>
    %34 = arith.truncf %33 : vector<8x256xf32> to vector<8x256xbf16>
    %c0_20 = arith.constant 0 : index
    %c0_21 = arith.constant 0 : index
    %35 = vector.load %arg5[%c0_20, %c0_21] : memref<72x256xbf16, #tpu.memory_space<vmem>>, vector<8x256xbf16>
    tpu.vector_store %arg5[%c0_20, %c0_21], %34 {strides = array<i32>} : memref<72x256xbf16, #tpu.memory_space<vmem>>, vector<8x256xbf16>,
    %c16_i32 = arith.constant 16 : i32
    %36 = tpu.dynamic_rotate %30 by %c16_i32 dim 1 : vector<8x256xf32>, i32 -> vector<8x256xf32>
    %37 = vector.broadcast %1 : vector<1x256xf32> to vector<8x256xf32>
    %38 = arith.mulf %36, %37 : vector<8x256xf32>
    %39 = arith.truncf %38 : vector<8x256xf32> to vector<8x256xbf16>
    %c8_22 = arith.constant 8 : index
    %c0_23 = arith.constant 0 : index
    %40 = vector.load %arg5[%c8_22, %c0_23] : memref<72x256xbf16, #tpu.memory_space<vmem>>, vector<8x256xbf16>
    tpu.vector_store %arg5[%c8_22, %c0_23], %39 {strides = array<i32>} : memref<72x256xbf16, #tpu.memory_space<vmem>>, vector<8x256xbf16>,
    %c15_i32 = arith.constant 15 : i32
    %41 = tpu.dynamic_rotate %30 by %c15_i32 dim 1 : vector<8x256xf32>, i32 -> vector<8x256xf32>
    %42 = vector.broadcast %2 : vector<1x256xf32> to vector<8x256xf32>
    %43 = arith.mulf %41, %42 : vector<8x256xf32>
    %44 = arith.truncf %43 : vector<8x256xf32> to vector<8x256xbf16>
    %c16_24 = arith.constant 16 : index
    %c0_25 = arith.constant 0 : index
    %45 = vector.load %arg5[%c16_24, %c0_25] : memref<72x256xbf16, #tpu.memory_space<vmem>>, vector<8x256xbf16>
    tpu.vector_store %arg5[%c16_24, %c0_25], %44 {strides = array<i32>} : memref<72x256xbf16, #tpu.memory_space<vmem>>, vector<8x256xbf16>,
    %c1_i32 = arith.constant 1 : i32
    %46 = tpu.dynamic_rotate %30 by %c1_i32 dim 1 : vector<8x256xf32>, i32 -> vector<8x256xf32>
    %47 = vector.broadcast %3 : vector<1x256xf32> to vector<8x256xf32>
    %48 = arith.mulf %46, %47 : vector<8x256xf32>
    %49 = arith.truncf %48 : vector<8x256xf32> to vector<8x256xbf16>
    %c24_26 = arith.constant 24 : index
    %c0_27 = arith.constant 0 : index
    %50 = vector.load %arg5[%c24_26, %c0_27] : memref<72x256xbf16, #tpu.memory_space<vmem>>, vector<8x256xbf16>
    tpu.vector_store %arg5[%c24_26, %c0_27], %49 {strides = array<i32>} : memref<72x256xbf16, #tpu.memory_space<vmem>>, vector<8x256xbf16>,
    %51 = arith.truncf %30 : vector<8x256xf32> to vector<8x256xbf16>
    %c32_28 = arith.constant 32 : index
    %c0_29 = arith.constant 0 : index
    %52 = vector.load %arg5[%c32_28, %c0_29] : memref<72x256xbf16, #tpu.memory_space<vmem>>, vector<8x256xbf16>
    tpu.vector_store %arg5[%c32_28, %c0_29], %51 {strides = array<i32>} : memref<72x256xbf16, #tpu.memory_space<vmem>>, vector<8x256xbf16>,
    %c255_i32 = arith.constant 255 : i32
    %53 = tpu.dynamic_rotate %30 by %c255_i32 dim 1 : vector<8x256xf32>, i32 -> vector<8x256xf32>
    %54 = vector.broadcast %4 : vector<1x256xf32> to vector<8x256xf32>
    %55 = arith.mulf %53, %54 : vector<8x256xf32>
    %56 = arith.truncf %55 : vector<8x256xf32> to vector<8x256xbf16>
    %c40_30 = arith.constant 40 : index
    %c0_31 = arith.constant 0 : index
    %57 = vector.load %arg5[%c40_30, %c0_31] : memref<72x256xbf16, #tpu.memory_space<vmem>>, vector<8x256xbf16>
    tpu.vector_store %arg5[%c40_30, %c0_31], %56 {strides = array<i32>} : memref<72x256xbf16, #tpu.memory_space<vmem>>, vector<8x256xbf16>,
    %c241_i32 = arith.constant 241 : i32
    %58 = tpu.dynamic_rotate %30 by %c241_i32 dim 1 : vector<8x256xf32>, i32 -> vector<8x256xf32>
    %59 = vector.broadcast %5 : vector<1x256xf32> to vector<8x256xf32>
    %60 = arith.mulf %58, %59 : vector<8x256xf32>
    %61 = arith.truncf %60 : vector<8x256xf32> to vector<8x256xbf16>
    %c48_32 = arith.constant 48 : index
    %c0_33 = arith.constant 0 : index
    %62 = vector.load %arg5[%c48_32, %c0_33] : memref<72x256xbf16, #tpu.memory_space<vmem>>, vector<8x256xbf16>
    tpu.vector_store %arg5[%c48_32, %c0_33], %61 {strides = array<i32>} : memref<72x256xbf16, #tpu.memory_space<vmem>>, vector<8x256xbf16>,
    %c240_i32 = arith.constant 240 : i32
    %63 = tpu.dynamic_rotate %30 by %c240_i32 dim 1 : vector<8x256xf32>, i32 -> vector<8x256xf32>
    %64 = vector.broadcast %6 : vector<1x256xf32> to vector<8x256xf32>
    %65 = arith.mulf %63, %64 : vector<8x256xf32>
    %66 = arith.truncf %65 : vector<8x256xf32> to vector<8x256xbf16>
    %c56 = arith.constant 56 : index
    %c0_34 = arith.constant 0 : index
    %67 = vector.load %arg5[%c56, %c0_34] : memref<72x256xbf16, #tpu.memory_space<vmem>>, vector<8x256xbf16>
    tpu.vector_store %arg5[%c56, %c0_34], %66 {strides = array<i32>} : memref<72x256xbf16, #tpu.memory_space<vmem>>, vector<8x256xbf16>,
    %c239_i32 = arith.constant 239 : i32
    %68 = tpu.dynamic_rotate %30 by %c239_i32 dim 1 : vector<8x256xf32>, i32 -> vector<8x256xf32>
    %69 = vector.broadcast %7 : vector<1x256xf32> to vector<8x256xf32>
    %70 = arith.mulf %68, %69 : vector<8x256xf32>
    %71 = arith.truncf %70 : vector<8x256xf32> to vector<8x256xbf16>
    %c64 = arith.constant 64 : index
    %c0_35 = arith.constant 0 : index
    %72 = vector.load %arg5[%c64, %c0_35] : memref<72x256xbf16, #tpu.memory_space<vmem>>, vector<8x256xbf16>
    tpu.vector_store %arg5[%c64, %c0_35], %71 {strides = array<i32>} : memref<72x256xbf16, #tpu.memory_space<vmem>>, vector<8x256xbf16>,
    %c0_36 = arith.constant 0 : index
    %c0_37 = arith.constant 0 : index
    %73 = vector.load %arg5[%c0_36, %c0_37] : memref<72x256xbf16, #tpu.memory_space<vmem>>, vector<72x256xbf16>
    %cst_38 = arith.constant dense<0.000000e+00> : vector<8x256xf32>
    %74 = tpu.matmul %9, %73, %cst_38 {dimension_numbers = #tpu.dot_dimension_numbers<[1], [0], [0], [1], [0, 0, 1, 1], [], []>} : vector<8x72xbf16>, vector<72x256xbf16>, vector<8x256xf32> -> vector<8x256xf32>
    %cst_39 = arith.constant dense<0.000000e+00> : vector<8xf32>
    %75 = vector.multi_reduction <add>, %74, %cst_39 [1] : vector<8x256xf32> to vector<8xf32>
    %76 = vector.shape_cast %75 : vector<8xf32> to vector<8x1xf32>
    %cst_40 = arith.constant 2.560000e+02 : f32
    %77 = vector.broadcast %cst_40 : f32 to vector<8x1xf32>
    %78 = arith.divf %76, %77 : vector<8x1xf32>
    %79 = arith.mulf %74, %74 : vector<8x256xf32>
    %cst_41 = arith.constant dense<0.000000e+00> : vector<8xf32>
    %80 = vector.multi_reduction <add>, %79, %cst_41 [1] : vector<8x256xf32> to vector<8xf32>
    %81 = vector.shape_cast %80 : vector<8xf32> to vector<8x1xf32>
    %cst_42 = arith.constant 2.560000e+02 : f32
    %82 = vector.broadcast %cst_42 : f32 to vector<8x1xf32>
    %83 = arith.divf %81, %82 : vector<8x1xf32>
    %84 = arith.mulf %78, %78 : vector<8x1xf32>
    %85 = arith.subf %83, %84 : vector<8x1xf32>
    %cst_43 = arith.constant 0.000000e+00 : f32
    %86 = vector.broadcast %cst_43 : f32 to vector<8x1xf32>
    %87 = arith.maximumf %85, %86 : vector<8x1xf32>
    %88 = vector.broadcast %78 : vector<8x1xf32> to vector<8x256xf32>
    %89 = arith.subf %74, %88 : vector<8x256xf32>
    %cst_44 = arith.constant 9.99999974E-6 : f32
    %90 = vector.broadcast %cst_44 : f32 to vector<8x1xf32>
    %91 = arith.addf %87, %90 : vector<8x1xf32>
    %92 = math.rsqrt %91 : vector<8x1xf32>
    %93 = vector.broadcast %92 : vector<8x1xf32> to vector<8x256xf32>
    %94 = arith.mulf %89, %93 : vector<8x256xf32>
    %cst_45 = arith.constant 0.000000e+00 : f32
    %95 = vector.broadcast %cst_45 : f32 to vector<8x256xf32>
    %96 = arith.cmpf oge, %94, %95 : vector<8x256xf32>
    %cst_46 = arith.constant 0.00999999977 : f32
    %97 = vector.broadcast %cst_46 : f32 to vector<8x256xf32>
    %98 = arith.mulf %97, %94 : vector<8x256xf32>
    %99 = arith.select %96, %94, %98 : vector<8x256xi1>, vector<8x256xf32>
    %c17_i32_47 = arith.constant 17 : i32
    %100 = tpu.dynamic_rotate %99 by %c17_i32_47 dim 1 : vector<8x256xf32>, i32 -> vector<8x256xf32>
    %101 = vector.broadcast %0 : vector<1x256xf32> to vector<8x256xf32>
    %102 = arith.mulf %100, %101 : vector<8x256xf32>
    %103 = arith.truncf %102 : vector<8x256xf32> to vector<8x256xbf16>
    %c0_48 = arith.constant 0 : index
    %c0_49 = arith.constant 0 : index
    %104 = vector.load %arg5[%c0_48, %c0_49] : memref<72x256xbf16, #tpu.memory_space<vmem>>, vector<8x256xbf16>
    tpu.vector_store %arg5[%c0_48, %c0_49], %103 {strides = array<i32>} : memref<72x256xbf16, #tpu.memory_space<vmem>>, vector<8x256xbf16>,
    %c16_i32_50 = arith.constant 16 : i32
    %105 = tpu.dynamic_rotate %99 by %c16_i32_50 dim 1 : vector<8x256xf32>, i32 -> vector<8x256xf32>
    %106 = vector.broadcast %1 : vector<1x256xf32> to vector<8x256xf32>
    %107 = arith.mulf %105, %106 : vector<8x256xf32>
    %108 = arith.truncf %107 : vector<8x256xf32> to vector<8x256xbf16>
    %c8_51 = arith.constant 8 : index
    %c0_52 = arith.constant 0 : index
    %109 = vector.load %arg5[%c8_51, %c0_52] : memref<72x256xbf16, #tpu.memory_space<vmem>>, vector<8x256xbf16>
    tpu.vector_store %arg5[%c8_51, %c0_52], %108 {strides = array<i32>} : memref<72x256xbf16, #tpu.memory_space<vmem>>, vector<8x256xbf16>,
    %c15_i32_53 = arith.constant 15 : i32
    %110 = tpu.dynamic_rotate %99 by %c15_i32_53 dim 1 : vector<8x256xf32>, i32 -> vector<8x256xf32>
    %111 = vector.broadcast %2 : vector<1x256xf32> to vector<8x256xf32>
    %112 = arith.mulf %110, %111 : vector<8x256xf32>
    %113 = arith.truncf %112 : vector<8x256xf32> to vector<8x256xbf16>
    %c16_54 = arith.constant 16 : index
    %c0_55 = arith.constant 0 : index
    %114 = vector.load %arg5[%c16_54, %c0_55] : memref<72x256xbf16, #tpu.memory_space<vmem>>, vector<8x256xbf16>
    tpu.vector_store %arg5[%c16_54, %c0_55], %113 {strides = array<i32>} : memref<72x256xbf16, #tpu.memory_space<vmem>>, vector<8x256xbf16>,
    %c1_i32_56 = arith.constant 1 : i32
    %115 = tpu.dynamic_rotate %99 by %c1_i32_56 dim 1 : vector<8x256xf32>, i32 -> vector<8x256xf32>
    %116 = vector.broadcast %3 : vector<1x256xf32> to vector<8x256xf32>
    %117 = arith.mulf %115, %116 : vector<8x256xf32>
    %118 = arith.truncf %117 : vector<8x256xf32> to vector<8x256xbf16>
    %c24_57 = arith.constant 24 : index
    %c0_58 = arith.constant 0 : index
    %119 = vector.load %arg5[%c24_57, %c0_58] : memref<72x256xbf16, #tpu.memory_space<vmem>>, vector<8x256xbf16>
    tpu.vector_store %arg5[%c24_57, %c0_58], %118 {strides = array<i32>} : memref<72x256xbf16, #tpu.memory_space<vmem>>, vector<8x256xbf16>,
    %120 = arith.truncf %99 : vector<8x256xf32> to vector<8x256xbf16>
    %c32_59 = arith.constant 32 : index
    %c0_60 = arith.constant 0 : index
    %121 = vector.load %arg5[%c32_59, %c0_60] : memref<72x256xbf16, #tpu.memory_space<vmem>>, vector<8x256xbf16>
    tpu.vector_store %arg5[%c32_59, %c0_60], %120 {strides = array<i32>} : memref<72x256xbf16, #tpu.memory_space<vmem>>, vector<8x256xbf16>,
    %c255_i32_61 = arith.constant 255 : i32
    %122 = tpu.dynamic_rotate %99 by %c255_i32_61 dim 1 : vector<8x256xf32>, i32 -> vector<8x256xf32>
    %123 = vector.broadcast %4 : vector<1x256xf32> to vector<8x256xf32>
    %124 = arith.mulf %122, %123 : vector<8x256xf32>
    %125 = arith.truncf %124 : vector<8x256xf32> to vector<8x256xbf16>
    %c40_62 = arith.constant 40 : index
    %c0_63 = arith.constant 0 : index
    %126 = vector.load %arg5[%c40_62, %c0_63] : memref<72x256xbf16, #tpu.memory_space<vmem>>, vector<8x256xbf16>
    tpu.vector_store %arg5[%c40_62, %c0_63], %125 {strides = array<i32>} : memref<72x256xbf16, #tpu.memory_space<vmem>>, vector<8x256xbf16>,
    %c241_i32_64 = arith.constant 241 : i32
    %127 = tpu.dynamic_rotate %99 by %c241_i32_64 dim 1 : vector<8x256xf32>, i32 -> vector<8x256xf32>
    %128 = vector.broadcast %5 : vector<1x256xf32> to vector<8x256xf32>
    %129 = arith.mulf %127, %128 : vector<8x256xf32>
    %130 = arith.truncf %129 : vector<8x256xf32> to vector<8x256xbf16>
    %c48_65 = arith.constant 48 : index
    %c0_66 = arith.constant 0 : index
    %131 = vector.load %arg5[%c48_65, %c0_66] : memref<72x256xbf16, #tpu.memory_space<vmem>>, vector<8x256xbf16>
    tpu.vector_store %arg5[%c48_65, %c0_66], %130 {strides = array<i32>} : memref<72x256xbf16, #tpu.memory_space<vmem>>, vector<8x256xbf16>,
    %c240_i32_67 = arith.constant 240 : i32
    %132 = tpu.dynamic_rotate %99 by %c240_i32_67 dim 1 : vector<8x256xf32>, i32 -> vector<8x256xf32>
    %133 = vector.broadcast %6 : vector<1x256xf32> to vector<8x256xf32>
    %134 = arith.mulf %132, %133 : vector<8x256xf32>
    %135 = arith.truncf %134 : vector<8x256xf32> to vector<8x256xbf16>
    %c56_68 = arith.constant 56 : index
    %c0_69 = arith.constant 0 : index
    %136 = vector.load %arg5[%c56_68, %c0_69] : memref<72x256xbf16, #tpu.memory_space<vmem>>, vector<8x256xbf16>
    tpu.vector_store %arg5[%c56_68, %c0_69], %135 {strides = array<i32>} : memref<72x256xbf16, #tpu.memory_space<vmem>>, vector<8x256xbf16>,
    %c239_i32_70 = arith.constant 239 : i32
    %137 = tpu.dynamic_rotate %99 by %c239_i32_70 dim 1 : vector<8x256xf32>, i32 -> vector<8x256xf32>
    %138 = vector.broadcast %7 : vector<1x256xf32> to vector<8x256xf32>
    %139 = arith.mulf %137, %138 : vector<8x256xf32>
    %140 = arith.truncf %139 : vector<8x256xf32> to vector<8x256xbf16>
    %c64_71 = arith.constant 64 : index
    %c0_72 = arith.constant 0 : index
    %141 = vector.load %arg5[%c64_71, %c0_72] : memref<72x256xbf16, #tpu.memory_space<vmem>>, vector<8x256xbf16>
    tpu.vector_store %arg5[%c64_71, %c0_72], %140 {strides = array<i32>} : memref<72x256xbf16, #tpu.memory_space<vmem>>, vector<8x256xbf16>,
    %c0_73 = arith.constant 0 : index
    %c0_74 = arith.constant 0 : index
    %142 = vector.load %arg5[%c0_73, %c0_74] : memref<72x256xbf16, #tpu.memory_space<vmem>>, vector<72x256xbf16>
    %cst_75 = arith.constant dense<0.000000e+00> : vector<8x256xf32>
    %143 = tpu.matmul %10, %142, %cst_75 {dimension_numbers = #tpu.dot_dimension_numbers<[1], [0], [0], [1], [0, 0, 1, 1], [], []>} : vector<8x72xbf16>, vector<72x256xbf16>, vector<8x256xf32> -> vector<8x256xf32>
    %cst_76 = arith.constant dense<0.000000e+00> : vector<8xf32>
    %144 = vector.multi_reduction <add>, %143, %cst_76 [1] : vector<8x256xf32> to vector<8xf32>
    %145 = vector.shape_cast %144 : vector<8xf32> to vector<8x1xf32>
    %cst_77 = arith.constant 2.560000e+02 : f32
    %146 = vector.broadcast %cst_77 : f32 to vector<8x1xf32>
    %147 = arith.divf %145, %146 : vector<8x1xf32>
    %148 = arith.mulf %143, %143 : vector<8x256xf32>
    %cst_78 = arith.constant dense<0.000000e+00> : vector<8xf32>
    %149 = vector.multi_reduction <add>, %148, %cst_78 [1] : vector<8x256xf32> to vector<8xf32>
    %150 = vector.shape_cast %149 : vector<8xf32> to vector<8x1xf32>
    %cst_79 = arith.constant 2.560000e+02 : f32
    %151 = vector.broadcast %cst_79 : f32 to vector<8x1xf32>
    %152 = arith.divf %150, %151 : vector<8x1xf32>
    %153 = arith.mulf %147, %147 : vector<8x1xf32>
    %154 = arith.subf %152, %153 : vector<8x1xf32>
    %cst_80 = arith.constant 0.000000e+00 : f32
    %155 = vector.broadcast %cst_80 : f32 to vector<8x1xf32>
    %156 = arith.maximumf %154, %155 : vector<8x1xf32>
    %157 = vector.broadcast %147 : vector<8x1xf32> to vector<8x256xf32>
    %158 = arith.subf %143, %157 : vector<8x256xf32>
    %cst_81 = arith.constant 9.99999974E-6 : f32
    %159 = vector.broadcast %cst_81 : f32 to vector<8x1xf32>
    %160 = arith.addf %156, %159 : vector<8x1xf32>
    %161 = math.rsqrt %160 : vector<8x1xf32>
    %162 = vector.broadcast %161 : vector<8x1xf32> to vector<8x256xf32>
    %163 = arith.mulf %158, %162 : vector<8x256xf32>
    %cst_82 = arith.constant 0.000000e+00 : f32
    %164 = vector.broadcast %cst_82 : f32 to vector<8x256xf32>
    %165 = arith.cmpf oge, %163, %164 : vector<8x256xf32>
    %cst_83 = arith.constant 0.00999999977 : f32
    %166 = vector.broadcast %cst_83 : f32 to vector<8x256xf32>
    %167 = arith.mulf %166, %163 : vector<8x256xf32>
    %168 = arith.select %165, %163, %167 : vector<8x256xi1>, vector<8x256xf32>
    %169 = vector.broadcast %15 : vector<8x1xf32> to vector<8x256xf32>
    %170 = arith.mulf %168, %169 : vector<8x256xf32>
    %cst_84 = arith.constant dense<0.000000e+00> : vector<256xf32>
    %171 = vector.multi_reduction <add>, %170, %cst_84 [0] : vector<8x256xf32> to vector<256xf32>
    %172 = vector.shape_cast %171 : vector<256xf32> to vector<1x256xf32>
    %173 = vector.broadcast %16 : vector<1x1xf32> to vector<1x256xf32>
    %174 = arith.addf %172, %173 : vector<1x256xf32>
    %175 = arith.negf %174 : vector<1x256xf32>
    %176 = math.exp %175 : vector<1x256xf32>
    %cst_85 = arith.constant 1.000000e+00 : f32
    %177 = vector.broadcast %cst_85 : f32 to vector<1x256xf32>
    %178 = arith.addf %177, %176 : vector<1x256xf32>
    %179 = arith.divf %177, %178 : vector<1x256xf32>
    %cst_86 = arith.constant dense<0.000000e+00> : vector<8xf32>
    %180 = vector.multi_reduction <add>, %30, %cst_86 [1] : vector<8x256xf32> to vector<8xf32>
    %181 = vector.shape_cast %180 : vector<8xf32> to vector<8x1xf32>
    %cst_87 = arith.constant 2.560000e+02 : f32
    %182 = vector.broadcast %cst_87 : f32 to vector<8x1xf32>
    %183 = arith.divf %181, %182 : vector<8x1xf32>
    %cst_88 = arith.constant dense<0xFF800000> : vector<8xf32>
    %184 = vector.multi_reduction <maximumf>, %30, %cst_88 [1] : vector<8x256xf32> to vector<8xf32>
    %185 = vector.shape_cast %184 : vector<8xf32> to vector<8x1xf32>
    %c0_i32 = arith.constant 0 : i32
    %186 = vector.broadcast %c0_i32 : i32 to vector<1x2xi32>
    %187 = arith.cmpi eq, %17, %186 : vector<1x2xi32>
    %188 = vector.shape_cast %187 : vector<1x2xi1> to vector<1x2xi1>
    %189 = vector.broadcast %188 : vector<1x2xi1> to vector<8x2xi1>
    %190 = vector.shape_cast %183 : vector<8x1xf32> to vector<8x1xf32>
    %191 = vector.broadcast %190 : vector<8x1xf32> to vector<8x2xf32>
    %192 = vector.shape_cast %185 : vector<8x1xf32> to vector<8x1xf32>
    %193 = vector.broadcast %192 : vector<8x1xf32> to vector<8x2xf32>
    %194 = arith.select %189, %191, %193 : vector<8x2xi1>, vector<8x2xf32>
    %195 = arith.truncf %194 : vector<8x2xf32> to vector<8x2xbf16>
    %cst_89 = arith.constant dense<0.000000e+00> : vector<8x2xf32>
    %196 = tpu.matmul %11, %195, %cst_89 {dimension_numbers = #tpu.dot_dimension_numbers<[1], [0], [0], [1], [0, 0, 1, 1], [], []>} : vector<8x8xbf16>, vector<8x2xbf16>, vector<8x2xf32> -> vector<8x2xf32>
    %197 = vector.broadcast %13 : vector<8x1xf32> to vector<8x2xf32>
    %198 = arith.addf %196, %197 : vector<8x2xf32>
    %cst_90 = arith.constant 0.000000e+00 : f32
    %199 = vector.broadcast %cst_90 : f32 to vector<8x2xf32>
    %200 = arith.cmpf oge, %198, %199 : vector<8x2xf32>
    %cst_91 = arith.constant 0.00999999977 : f32
    %201 = vector.broadcast %cst_91 : f32 to vector<8x2xf32>
    %202 = arith.mulf %201, %198 : vector<8x2xf32>
    %203 = arith.select %200, %198, %202 : vector<8x2xi1>, vector<8x2xf32>
    %204 = arith.truncf %203 : vector<8x2xf32> to vector<8x2xbf16>
    %cst_92 = arith.constant dense<0.000000e+00> : vector<8x2xf32>
    %205 = tpu.matmul %12, %204, %cst_92 {dimension_numbers = #tpu.dot_dimension_numbers<[1], [0], [0], [1], [0, 0, 1, 1], [], []>} : vector<8x8xbf16>, vector<8x2xbf16>, vector<8x2xf32> -> vector<8x2xf32>
    %206 = vector.broadcast %14 : vector<8x1xf32> to vector<8x2xf32>
    %207 = arith.addf %205, %206 : vector<8x2xf32>
    %cst_93 = arith.constant 0.000000e+00 : f32
    %208 = vector.broadcast %cst_93 : f32 to vector<8x2xf32>
    %209 = arith.cmpf oge, %207, %208 : vector<8x2xf32>
    %cst_94 = arith.constant 0.00999999977 : f32
    %210 = vector.broadcast %cst_94 : f32 to vector<8x2xf32>
    %211 = arith.mulf %210, %207 : vector<8x2xf32>
    %212 = arith.select %209, %207, %211 : vector<8x2xi1>, vector<8x2xf32>
    %213 = vector.extract_strided_slice %212 {offsets = [0, 0], sizes = [8, 1], strides = [1, 1]} : vector<8x2xf32> to vector<8x1xf32>
    %214 = vector.extract_strided_slice %212 {offsets = [0, 1], sizes = [8, 1], strides = [1, 1]} : vector<8x2xf32> to vector<8x1xf32>
    %215 = arith.addf %213, %214 : vector<8x1xf32>
    %216 = arith.negf %215 : vector<8x1xf32>
    %217 = math.exp %216 : vector<8x1xf32>
    %cst_95 = arith.constant 1.000000e+00 : f32
    %218 = vector.broadcast %cst_95 : f32 to vector<8x1xf32>
    %219 = arith.addf %218, %217 : vector<8x1xf32>
    %220 = arith.divf %218, %219 : vector<8x1xf32>
    %221 = vector.broadcast %220 : vector<8x1xf32> to vector<8x256xf32>
    %222 = vector.broadcast %179 : vector<1x256xf32> to vector<8x256xf32>
    %223 = arith.mulf %221, %222 : vector<8x256xf32>
    %224 = arith.mulf %30, %223 : vector<8x256xf32>
    %c8_96 = arith.constant 8 : index
    %c0_97 = arith.constant 0 : index
    %225 = vector.load %arg2[%c8_96, %c0_97] : memref<56x128xbf16, #tpu.memory_space<vmem>>, vector<8x8xbf16>
    %226 = vector.extract_strided_slice %8 {offsets = [0, 1], sizes = [8, 1], strides = [1, 1]} : vector<8x256xf32> to vector<8x1xf32>
    %227 = arith.truncf %30 : vector<8x256xf32> to vector<8x256xbf16>
    %cst_98 = arith.constant dense<0.000000e+00> : vector<8x256xf32>
    %228 = tpu.matmul %225, %227, %cst_98 {dimension_numbers = #tpu.dot_dimension_numbers<[1], [0], [0], [1], [0, 0, 1, 1], [], []>} : vector<8x8xbf16>, vector<8x256xbf16>, vector<8x256xf32> -> vector<8x256xf32>
    %229 = vector.broadcast %226 : vector<8x1xf32> to vector<8x256xf32>
    %230 = arith.addf %228, %229 : vector<8x256xf32>
    %cst_99 = arith.constant 0.000000e+00 : f32
    %231 = vector.broadcast %cst_99 : f32 to vector<8x256xf32>
    %232 = arith.cmpf oge, %230, %231 : vector<8x256xf32>
    %cst_100 = arith.constant 0.00999999977 : f32
    %233 = vector.broadcast %cst_100 : f32 to vector<8x256xf32>
    %234 = arith.mulf %233, %230 : vector<8x256xf32>
    %235 = arith.select %232, %230, %234 : vector<8x256xi1>, vector<8x256xf32>
    %c17_i32_101 = arith.constant 17 : i32
    %236 = tpu.dynamic_rotate %235 by %c17_i32_101 dim 1 : vector<8x256xf32>, i32 -> vector<8x256xf32>
    %237 = vector.broadcast %0 : vector<1x256xf32> to vector<8x256xf32>
    %238 = arith.mulf %236, %237 : vector<8x256xf32>
    %239 = arith.truncf %238 : vector<8x256xf32> to vector<8x256xbf16>
    %c0_102 = arith.constant 0 : index
    %c0_103 = arith.constant 0 : index
    %240 = vector.load %arg5[%c0_102, %c0_103] : memref<72x256xbf16, #tpu.memory_space<vmem>>, vector<8x256xbf16>
    tpu.vector_store %arg5[%c0_102, %c0_103], %239 {strides = array<i32>} : memref<72x256xbf16, #tpu.memory_space<vmem>>, vector<8x256xbf16>,
    %c16_i32_104 = arith.constant 16 : i32
    %241 = tpu.dynamic_rotate %235 by %c16_i32_104 dim 1 : vector<8x256xf32>, i32 -> vector<8x256xf32>
    %242 = vector.broadcast %1 : vector<1x256xf32> to vector<8x256xf32>
    %243 = arith.mulf %241, %242 : vector<8x256xf32>
    %244 = arith.truncf %243 : vector<8x256xf32> to vector<8x256xbf16>
    %c8_105 = arith.constant 8 : index
    %c0_106 = arith.constant 0 : index
    %245 = vector.load %arg5[%c8_105, %c0_106] : memref<72x256xbf16, #tpu.memory_space<vmem>>, vector<8x256xbf16>
    tpu.vector_store %arg5[%c8_105, %c0_106], %244 {strides = array<i32>} : memref<72x256xbf16, #tpu.memory_space<vmem>>, vector<8x256xbf16>,
    %c15_i32_107 = arith.constant 15 : i32
    %246 = tpu.dynamic_rotate %235 by %c15_i32_107 dim 1 : vector<8x256xf32>, i32 -> vector<8x256xf32>
    %247 = vector.broadcast %2 : vector<1x256xf32> to vector<8x256xf32>
    %248 = arith.mulf %246, %247 : vector<8x256xf32>
    %249 = arith.truncf %248 : vector<8x256xf32> to vector<8x256xbf16>
    %c16_108 = arith.constant 16 : index
    %c0_109 = arith.constant 0 : index
    %250 = vector.load %arg5[%c16_108, %c0_109] : memref<72x256xbf16, #tpu.memory_space<vmem>>, vector<8x256xbf16>
    tpu.vector_store %arg5[%c16_108, %c0_109], %249 {strides = array<i32>} : memref<72x256xbf16, #tpu.memory_space<vmem>>, vector<8x256xbf16>,
    %c1_i32_110 = arith.constant 1 : i32
    %251 = tpu.dynamic_rotate %235 by %c1_i32_110 dim 1 : vector<8x256xf32>, i32 -> vector<8x256xf32>
    %252 = vector.broadcast %3 : vector<1x256xf32> to vector<8x256xf32>
    %253 = arith.mulf %251, %252 : vector<8x256xf32>
    %254 = arith.truncf %253 : vector<8x256xf32> to vector<8x256xbf16>
    %c24_111 = arith.constant 24 : index
    %c0_112 = arith.constant 0 : index
    %255 = vector.load %arg5[%c24_111, %c0_112] : memref<72x256xbf16, #tpu.memory_space<vmem>>, vector<8x256xbf16>
    tpu.vector_store %arg5[%c24_111, %c0_112], %254 {strides = array<i32>} : memref<72x256xbf16, #tpu.memory_space<vmem>>, vector<8x256xbf16>,
    %256 = arith.truncf %235 : vector<8x256xf32> to vector<8x256xbf16>
    %c32_113 = arith.constant 32 : index
    %c0_114 = arith.constant 0 : index
    %257 = vector.load %arg5[%c32_113, %c0_114] : memref<72x256xbf16, #tpu.memory_space<vmem>>, vector<8x256xbf16>
    tpu.vector_store %arg5[%c32_113, %c0_114], %256 {strides = array<i32>} : memref<72x256xbf16, #tpu.memory_space<vmem>>, vector<8x256xbf16>,
    %c255_i32_115 = arith.constant 255 : i32
    %258 = tpu.dynamic_rotate %235 by %c255_i32_115 dim 1 : vector<8x256xf32>, i32 -> vector<8x256xf32>
    %259 = vector.broadcast %4 : vector<1x256xf32> to vector<8x256xf32>
    %260 = arith.mulf %258, %259 : vector<8x256xf32>
    %261 = arith.truncf %260 : vector<8x256xf32> to vector<8x256xbf16>
    %c40_116 = arith.constant 40 : index
    %c0_117 = arith.constant 0 : index
    %262 = vector.load %arg5[%c40_116, %c0_117] : memref<72x256xbf16, #tpu.memory_space<vmem>>, vector<8x256xbf16>
    tpu.vector_store %arg5[%c40_116, %c0_117], %261 {strides = array<i32>} : memref<72x256xbf16, #tpu.memory_space<vmem>>, vector<8x256xbf16>,
    %c241_i32_118 = arith.constant 241 : i32
    %263 = tpu.dynamic_rotate %235 by %c241_i32_118 dim 1 : vector<8x256xf32>, i32 -> vector<8x256xf32>
    %264 = vector.broadcast %5 : vector<1x256xf32> to vector<8x256xf32>
    %265 = arith.mulf %263, %264 : vector<8x256xf32>
    %266 = arith.truncf %265 : vector<8x256xf32> to vector<8x256xbf16>
    %c48_119 = arith.constant 48 : index
    %c0_120 = arith.constant 0 : index
    %267 = vector.load %arg5[%c48_119, %c0_120] : memref<72x256xbf16, #tpu.memory_space<vmem>>, vector<8x256xbf16>
    tpu.vector_store %arg5[%c48_119, %c0_120], %266 {strides = array<i32>} : memref<72x256xbf16, #tpu.memory_space<vmem>>, vector<8x256xbf16>,
    %c240_i32_121 = arith.constant 240 : i32
    %268 = tpu.dynamic_rotate %235 by %c240_i32_121 dim 1 : vector<8x256xf32>, i32 -> vector<8x256xf32>
    %269 = vector.broadcast %6 : vector<1x256xf32> to vector<8x256xf32>
    %270 = arith.mulf %268, %269 : vector<8x256xf32>
    %271 = arith.truncf %270 : vector<8x256xf32> to vector<8x256xbf16>
    %c56_122 = arith.constant 56 : index
    %c0_123 = arith.constant 0 : index
    %272 = vector.load %arg5[%c56_122, %c0_123] : memref<72x256xbf16, #tpu.memory_space<vmem>>, vector<8x256xbf16>
    tpu.vector_store %arg5[%c56_122, %c0_123], %271 {strides = array<i32>} : memref<72x256xbf16, #tpu.memory_space<vmem>>, vector<8x256xbf16>,
    %c239_i32_124 = arith.constant 239 : i32
    %273 = tpu.dynamic_rotate %235 by %c239_i32_124 dim 1 : vector<8x256xf32>, i32 -> vector<8x256xf32>
    %274 = vector.broadcast %7 : vector<1x256xf32> to vector<8x256xf32>
    %275 = arith.mulf %273, %274 : vector<8x256xf32>
    %276 = arith.truncf %275 : vector<8x256xf32> to vector<8x256xbf16>
    %c64_125 = arith.constant 64 : index
    %c0_126 = arith.constant 0 : index
    %277 = vector.load %arg5[%c64_125, %c0_126] : memref<72x256xbf16, #tpu.memory_space<vmem>>, vector<8x256xbf16>
    tpu.vector_store %arg5[%c64_125, %c0_126], %276 {strides = array<i32>} : memref<72x256xbf16, #tpu.memory_space<vmem>>, vector<8x256xbf16>,
    %c0_127 = arith.constant 0 : index
    %c0_128 = arith.constant 0 : index
    %278 = vector.load %arg5[%c0_127, %c0_128] : memref<72x256xbf16, #tpu.memory_space<vmem>>, vector<72x256xbf16>
    %cst_129 = arith.constant dense<0.000000e+00> : vector<8x256xf32>
    %279 = tpu.matmul %9, %278, %cst_129 {dimension_numbers = #tpu.dot_dimension_numbers<[1], [0], [0], [1], [0, 0, 1, 1], [], []>} : vector<8x72xbf16>, vector<72x256xbf16>, vector<8x256xf32> -> vector<8x256xf32>
    %cst_130 = arith.constant dense<0.000000e+00> : vector<8xf32>
    %280 = vector.multi_reduction <add>, %279, %cst_130 [1] : vector<8x256xf32> to vector<8xf32>
    %281 = vector.shape_cast %280 : vector<8xf32> to vector<8x1xf32>
    %cst_131 = arith.constant 2.560000e+02 : f32
    %282 = vector.broadcast %cst_131 : f32 to vector<8x1xf32>
    %283 = arith.divf %281, %282 : vector<8x1xf32>
    %284 = arith.mulf %279, %279 : vector<8x256xf32>
    %cst_132 = arith.constant dense<0.000000e+00> : vector<8xf32>
    %285 = vector.multi_reduction <add>, %284, %cst_132 [1] : vector<8x256xf32> to vector<8xf32>
    %286 = vector.shape_cast %285 : vector<8xf32> to vector<8x1xf32>
    %cst_133 = arith.constant 2.560000e+02 : f32
    %287 = vector.broadcast %cst_133 : f32 to vector<8x1xf32>
    %288 = arith.divf %286, %287 : vector<8x1xf32>
    %289 = arith.mulf %283, %283 : vector<8x1xf32>
    %290 = arith.subf %288, %289 : vector<8x1xf32>
    %cst_134 = arith.constant 0.000000e+00 : f32
    %291 = vector.broadcast %cst_134 : f32 to vector<8x1xf32>
    %292 = arith.maximumf %290, %291 : vector<8x1xf32>
    %293 = vector.broadcast %283 : vector<8x1xf32> to vector<8x256xf32>
    %294 = arith.subf %279, %293 : vector<8x256xf32>
    %cst_135 = arith.constant 9.99999974E-6 : f32
    %295 = vector.broadcast %cst_135 : f32 to vector<8x1xf32>
    %296 = arith.addf %292, %295 : vector<8x1xf32>
    %297 = math.rsqrt %296 : vector<8x1xf32>
    %298 = vector.broadcast %297 : vector<8x1xf32> to vector<8x256xf32>
    %299 = arith.mulf %294, %298 : vector<8x256xf32>
    %cst_136 = arith.constant 0.000000e+00 : f32
    %300 = vector.broadcast %cst_136 : f32 to vector<8x256xf32>
    %301 = arith.cmpf oge, %299, %300 : vector<8x256xf32>
    %cst_137 = arith.constant 0.00999999977 : f32
    %302 = vector.broadcast %cst_137 : f32 to vector<8x256xf32>
    %303 = arith.mulf %302, %299 : vector<8x256xf32>
    %304 = arith.select %301, %299, %303 : vector<8x256xi1>, vector<8x256xf32>
    %c17_i32_138 = arith.constant 17 : i32
    %305 = tpu.dynamic_rotate %304 by %c17_i32_138 dim 1 : vector<8x256xf32>, i32 -> vector<8x256xf32>
    %306 = vector.broadcast %0 : vector<1x256xf32> to vector<8x256xf32>
    %307 = arith.mulf %305, %306 : vector<8x256xf32>
    %308 = arith.truncf %307 : vector<8x256xf32> to vector<8x256xbf16>
    %c0_139 = arith.constant 0 : index
    %c0_140 = arith.constant 0 : index
    %309 = vector.load %arg5[%c0_139, %c0_140] : memref<72x256xbf16, #tpu.memory_space<vmem>>, vector<8x256xbf16>
    tpu.vector_store %arg5[%c0_139, %c0_140], %308 {strides = array<i32>} : memref<72x256xbf16, #tpu.memory_space<vmem>>, vector<8x256xbf16>,
    %c16_i32_141 = arith.constant 16 : i32
    %310 = tpu.dynamic_rotate %304 by %c16_i32_141 dim 1 : vector<8x256xf32>, i32 -> vector<8x256xf32>
    %311 = vector.broadcast %1 : vector<1x256xf32> to vector<8x256xf32>
    %312 = arith.mulf %310, %311 : vector<8x256xf32>
    %313 = arith.truncf %312 : vector<8x256xf32> to vector<8x256xbf16>
    %c8_142 = arith.constant 8 : index
    %c0_143 = arith.constant 0 : index
    %314 = vector.load %arg5[%c8_142, %c0_143] : memref<72x256xbf16, #tpu.memory_space<vmem>>, vector<8x256xbf16>
    tpu.vector_store %arg5[%c8_142, %c0_143], %313 {strides = array<i32>} : memref<72x256xbf16, #tpu.memory_space<vmem>>, vector<8x256xbf16>,
    %c15_i32_144 = arith.constant 15 : i32
    %315 = tpu.dynamic_rotate %304 by %c15_i32_144 dim 1 : vector<8x256xf32>, i32 -> vector<8x256xf32>
    %316 = vector.broadcast %2 : vector<1x256xf32> to vector<8x256xf32>
    %317 = arith.mulf %315, %316 : vector<8x256xf32>
    %318 = arith.truncf %317 : vector<8x256xf32> to vector<8x256xbf16>
    %c16_145 = arith.constant 16 : index
    %c0_146 = arith.constant 0 : index
    %319 = vector.load %arg5[%c16_145, %c0_146] : memref<72x256xbf16, #tpu.memory_space<vmem>>, vector<8x256xbf16>
    tpu.vector_store %arg5[%c16_145, %c0_146], %318 {strides = array<i32>} : memref<72x256xbf16, #tpu.memory_space<vmem>>, vector<8x256xbf16>,
    %c1_i32_147 = arith.constant 1 : i32
    %320 = tpu.dynamic_rotate %304 by %c1_i32_147 dim 1 : vector<8x256xf32>, i32 -> vector<8x256xf32>
    %321 = vector.broadcast %3 : vector<1x256xf32> to vector<8x256xf32>
    %322 = arith.mulf %320, %321 : vector<8x256xf32>
    %323 = arith.truncf %322 : vector<8x256xf32> to vector<8x256xbf16>
    %c24_148 = arith.constant 24 : index
    %c0_149 = arith.constant 0 : index
    %324 = vector.load %arg5[%c24_148, %c0_149] : memref<72x256xbf16, #tpu.memory_space<vmem>>, vector<8x256xbf16>
    tpu.vector_store %arg5[%c24_148, %c0_149], %323 {strides = array<i32>} : memref<72x256xbf16, #tpu.memory_space<vmem>>, vector<8x256xbf16>,
    %325 = arith.truncf %304 : vector<8x256xf32> to vector<8x256xbf16>
    %c32_150 = arith.constant 32 : index
    %c0_151 = arith.constant 0 : index
    %326 = vector.load %arg5[%c32_150, %c0_151] : memref<72x256xbf16, #tpu.memory_space<vmem>>, vector<8x256xbf16>
    tpu.vector_store %arg5[%c32_150, %c0_151], %325 {strides = array<i32>} : memref<72x256xbf16, #tpu.memory_space<vmem>>, vector<8x256xbf16>,
    %c255_i32_152 = arith.constant 255 : i32
    %327 = tpu.dynamic_rotate %304 by %c255_i32_152 dim 1 : vector<8x256xf32>, i32 -> vector<8x256xf32>
    %328 = vector.broadcast %4 : vector<1x256xf32> to vector<8x256xf32>
    %329 = arith.mulf %327, %328 : vector<8x256xf32>
    %330 = arith.truncf %329 : vector<8x256xf32> to vector<8x256xbf16>
    %c40_153 = arith.constant 40 : index
    %c0_154 = arith.constant 0 : index
    %331 = vector.load %arg5[%c40_153, %c0_154] : memref<72x256xbf16, #tpu.memory_space<vmem>>, vector<8x256xbf16>
    tpu.vector_store %arg5[%c40_153, %c0_154], %330 {strides = array<i32>} : memref<72x256xbf16, #tpu.memory_space<vmem>>, vector<8x256xbf16>,
    %c241_i32_155 = arith.constant 241 : i32
    %332 = tpu.dynamic_rotate %304 by %c241_i32_155 dim 1 : vector<8x256xf32>, i32 -> vector<8x256xf32>
    %333 = vector.broadcast %5 : vector<1x256xf32> to vector<8x256xf32>
    %334 = arith.mulf %332, %333 : vector<8x256xf32>
    %335 = arith.truncf %334 : vector<8x256xf32> to vector<8x256xbf16>
    %c48_156 = arith.constant 48 : index
    %c0_157 = arith.constant 0 : index
    %336 = vector.load %arg5[%c48_156, %c0_157] : memref<72x256xbf16, #tpu.memory_space<vmem>>, vector<8x256xbf16>
    tpu.vector_store %arg5[%c48_156, %c0_157], %335 {strides = array<i32>} : memref<72x256xbf16, #tpu.memory_space<vmem>>, vector<8x256xbf16>,
    %c240_i32_158 = arith.constant 240 : i32
    %337 = tpu.dynamic_rotate %304 by %c240_i32_158 dim 1 : vector<8x256xf32>, i32 -> vector<8x256xf32>
    %338 = vector.broadcast %6 : vector<1x256xf32> to vector<8x256xf32>
    %339 = arith.mulf %337, %338 : vector<8x256xf32>
    %340 = arith.truncf %339 : vector<8x256xf32> to vector<8x256xbf16>
    %c56_159 = arith.constant 56 : index
    %c0_160 = arith.constant 0 : index
    %341 = vector.load %arg5[%c56_159, %c0_160] : memref<72x256xbf16, #tpu.memory_space<vmem>>, vector<8x256xbf16>
    tpu.vector_store %arg5[%c56_159, %c0_160], %340 {strides = array<i32>} : memref<72x256xbf16, #tpu.memory_space<vmem>>, vector<8x256xbf16>,
    %c239_i32_161 = arith.constant 239 : i32
    %342 = tpu.dynamic_rotate %304 by %c239_i32_161 dim 1 : vector<8x256xf32>, i32 -> vector<8x256xf32>
    %343 = vector.broadcast %7 : vector<1x256xf32> to vector<8x256xf32>
    %344 = arith.mulf %342, %343 : vector<8x256xf32>
    %345 = arith.truncf %344 : vector<8x256xf32> to vector<8x256xbf16>
    %c64_162 = arith.constant 64 : index
    %c0_163 = arith.constant 0 : index
    %346 = vector.load %arg5[%c64_162, %c0_163] : memref<72x256xbf16, #tpu.memory_space<vmem>>, vector<8x256xbf16>
    tpu.vector_store %arg5[%c64_162, %c0_163], %345 {strides = array<i32>} : memref<72x256xbf16, #tpu.memory_space<vmem>>, vector<8x256xbf16>,
    %c0_164 = arith.constant 0 : index
    %c0_165 = arith.constant 0 : index
    %347 = vector.load %arg5[%c0_164, %c0_165] : memref<72x256xbf16, #tpu.memory_space<vmem>>, vector<72x256xbf16>
    %cst_166 = arith.constant dense<0.000000e+00> : vector<8x256xf32>
    %348 = tpu.matmul %10, %347, %cst_166 {dimension_numbers = #tpu.dot_dimension_numbers<[1], [0], [0], [1], [0, 0, 1, 1], [], []>} : vector<8x72xbf16>, vector<72x256xbf16>, vector<8x256xf32> -> vector<8x256xf32>
    %cst_167 = arith.constant dense<0.000000e+00> : vector<8xf32>
    %349 = vector.multi_reduction <add>, %348, %cst_167 [1] : vector<8x256xf32> to vector<8xf32>
    %350 = vector.shape_cast %349 : vector<8xf32> to vector<8x1xf32>
    %cst_168 = arith.constant 2.560000e+02 : f32
    %351 = vector.broadcast %cst_168 : f32 to vector<8x1xf32>
    %352 = arith.divf %350, %351 : vector<8x1xf32>
    %353 = arith.mulf %348, %348 : vector<8x256xf32>
    %cst_169 = arith.constant dense<0.000000e+00> : vector<8xf32>
    %354 = vector.multi_reduction <add>, %353, %cst_169 [1] : vector<8x256xf32> to vector<8xf32>
    %355 = vector.shape_cast %354 : vector<8xf32> to vector<8x1xf32>
    %cst_170 = arith.constant 2.560000e+02 : f32
    %356 = vector.broadcast %cst_170 : f32 to vector<8x1xf32>
    %357 = arith.divf %355, %356 : vector<8x1xf32>
    %358 = arith.mulf %352, %352 : vector<8x1xf32>
    %359 = arith.subf %357, %358 : vector<8x1xf32>
    %cst_171 = arith.constant 0.000000e+00 : f32
    %360 = vector.broadcast %cst_171 : f32 to vector<8x1xf32>
    %361 = arith.maximumf %359, %360 : vector<8x1xf32>
    %362 = vector.broadcast %352 : vector<8x1xf32> to vector<8x256xf32>
    %363 = arith.subf %348, %362 : vector<8x256xf32>
    %cst_172 = arith.constant 9.99999974E-6 : f32
    %364 = vector.broadcast %cst_172 : f32 to vector<8x1xf32>
    %365 = arith.addf %361, %364 : vector<8x1xf32>
    %366 = math.rsqrt %365 : vector<8x1xf32>
    %367 = vector.broadcast %366 : vector<8x1xf32> to vector<8x256xf32>
    %368 = arith.mulf %363, %367 : vector<8x256xf32>
    %cst_173 = arith.constant 0.000000e+00 : f32
    %369 = vector.broadcast %cst_173 : f32 to vector<8x256xf32>
    %370 = arith.cmpf oge, %368, %369 : vector<8x256xf32>
    %cst_174 = arith.constant 0.00999999977 : f32
    %371 = vector.broadcast %cst_174 : f32 to vector<8x256xf32>
    %372 = arith.mulf %371, %368 : vector<8x256xf32>
    %373 = arith.select %370, %368, %372 : vector<8x256xi1>, vector<8x256xf32>
    %374 = vector.broadcast %15 : vector<8x1xf32> to vector<8x256xf32>
    %375 = arith.mulf %373, %374 : vector<8x256xf32>
    %cst_175 = arith.constant dense<0.000000e+00> : vector<256xf32>
    %376 = vector.multi_reduction <add>, %375, %cst_175 [0] : vector<8x256xf32> to vector<256xf32>
    %377 = vector.shape_cast %376 : vector<256xf32> to vector<1x256xf32>
    %378 = vector.broadcast %16 : vector<1x1xf32> to vector<1x256xf32>
    %379 = arith.addf %377, %378 : vector<1x256xf32>
    %380 = arith.negf %379 : vector<1x256xf32>
    %381 = math.exp %380 : vector<1x256xf32>
    %cst_176 = arith.constant 1.000000e+00 : f32
    %382 = vector.broadcast %cst_176 : f32 to vector<1x256xf32>
    %383 = arith.addf %382, %381 : vector<1x256xf32>
    %384 = arith.divf %382, %383 : vector<1x256xf32>
    %cst_177 = arith.constant dense<0.000000e+00> : vector<8xf32>
    %385 = vector.multi_reduction <add>, %235, %cst_177 [1] : vector<8x256xf32> to vector<8xf32>
    %386 = vector.shape_cast %385 : vector<8xf32> to vector<8x1xf32>
    %cst_178 = arith.constant 2.560000e+02 : f32
    %387 = vector.broadcast %cst_178 : f32 to vector<8x1xf32>
    %388 = arith.divf %386, %387 : vector<8x1xf32>
    %cst_179 = arith.constant dense<0xFF800000> : vector<8xf32>
    %389 = vector.multi_reduction <maximumf>, %235, %cst_179 [1] : vector<8x256xf32> to vector<8xf32>
    %390 = vector.shape_cast %389 : vector<8xf32> to vector<8x1xf32>
    %c0_i32_180 = arith.constant 0 : i32
    %391 = vector.broadcast %c0_i32_180 : i32 to vector<1x2xi32>
    %392 = arith.cmpi eq, %17, %391 : vector<1x2xi32>
    %393 = vector.shape_cast %392 : vector<1x2xi1> to vector<1x2xi1>
    %394 = vector.broadcast %393 : vector<1x2xi1> to vector<8x2xi1>
    %395 = vector.shape_cast %388 : vector<8x1xf32> to vector<8x1xf32>
    %396 = vector.broadcast %395 : vector<8x1xf32> to vector<8x2xf32>
    %397 = vector.shape_cast %390 : vector<8x1xf32> to vector<8x1xf32>
    %398 = vector.broadcast %397 : vector<8x1xf32> to vector<8x2xf32>
    %399 = arith.select %394, %396, %398 : vector<8x2xi1>, vector<8x2xf32>
    %400 = arith.truncf %399 : vector<8x2xf32> to vector<8x2xbf16>
    %cst_181 = arith.constant dense<0.000000e+00> : vector<8x2xf32>
    %401 = tpu.matmul %11, %400, %cst_181 {dimension_numbers = #tpu.dot_dimension_numbers<[1], [0], [0], [1], [0, 0, 1, 1], [], []>} : vector<8x8xbf16>, vector<8x2xbf16>, vector<8x2xf32> -> vector<8x2xf32>
    %402 = vector.broadcast %13 : vector<8x1xf32> to vector<8x2xf32>
    %403 = arith.addf %401, %402 : vector<8x2xf32>
    %cst_182 = arith.constant 0.000000e+00 : f32
    %404 = vector.broadcast %cst_182 : f32 to vector<8x2xf32>
    %405 = arith.cmpf oge, %403, %404 : vector<8x2xf32>
    %cst_183 = arith.constant 0.00999999977 : f32
    %406 = vector.broadcast %cst_183 : f32 to vector<8x2xf32>
    %407 = arith.mulf %406, %403 : vector<8x2xf32>
    %408 = arith.select %405, %403, %407 : vector<8x2xi1>, vector<8x2xf32>
    %409 = arith.truncf %408 : vector<8x2xf32> to vector<8x2xbf16>
    %cst_184 = arith.constant dense<0.000000e+00> : vector<8x2xf32>
    %410 = tpu.matmul %12, %409, %cst_184 {dimension_numbers = #tpu.dot_dimension_numbers<[1], [0], [0], [1], [0, 0, 1, 1], [], []>} : vector<8x8xbf16>, vector<8x2xbf16>, vector<8x2xf32> -> vector<8x2xf32>
    %411 = vector.broadcast %14 : vector<8x1xf32> to vector<8x2xf32>
    %412 = arith.addf %410, %411 : vector<8x2xf32>
    %cst_185 = arith.constant 0.000000e+00 : f32
    %413 = vector.broadcast %cst_185 : f32 to vector<8x2xf32>
    %414 = arith.cmpf oge, %412, %413 : vector<8x2xf32>
    %cst_186 = arith.constant 0.00999999977 : f32
    %415 = vector.broadcast %cst_186 : f32 to vector<8x2xf32>
    %416 = arith.mulf %415, %412 : vector<8x2xf32>
    %417 = arith.select %414, %412, %416 : vector<8x2xi1>, vector<8x2xf32>
    %418 = vector.extract_strided_slice %417 {offsets = [0, 0], sizes = [8, 1], strides = [1, 1]} : vector<8x2xf32> to vector<8x1xf32>
    %419 = vector.extract_strided_slice %417 {offsets = [0, 1], sizes = [8, 1], strides = [1, 1]} : vector<8x2xf32> to vector<8x1xf32>
    %420 = arith.addf %418, %419 : vector<8x1xf32>
    %421 = arith.negf %420 : vector<8x1xf32>
    %422 = math.exp %421 : vector<8x1xf32>
    %cst_187 = arith.constant 1.000000e+00 : f32
    %423 = vector.broadcast %cst_187 : f32 to vector<8x1xf32>
    %424 = arith.addf %423, %422 : vector<8x1xf32>
    %425 = arith.divf %423, %424 : vector<8x1xf32>
    %426 = vector.broadcast %425 : vector<8x1xf32> to vector<8x256xf32>
    %427 = vector.broadcast %384 : vector<1x256xf32> to vector<8x256xf32>
    %428 = arith.mulf %426, %427 : vector<8x256xf32>
    %cst_188 = arith.constant 1.000000e+00 : f32
    %429 = vector.broadcast %cst_188 : f32 to vector<8x256xf32>
    %430 = arith.subf %429, %428 : vector<8x256xf32>
    %431 = arith.mulf %224, %430 : vector<8x256xf32>
    %432 = arith.mulf %235, %428 : vector<8x256xf32>
    %433 = arith.addf %431, %432 : vector<8x256xf32>
    %c16_189 = arith.constant 16 : index
    %c0_190 = arith.constant 0 : index
    %434 = vector.load %arg2[%c16_189, %c0_190] : memref<56x128xbf16, #tpu.memory_space<vmem>>, vector<8x8xbf16>
    %435 = vector.extract_strided_slice %8 {offsets = [0, 2], sizes = [8, 1], strides = [1, 1]} : vector<8x256xf32> to vector<8x1xf32>
    %436 = arith.truncf %235 : vector<8x256xf32> to vector<8x256xbf16>
    %cst_191 = arith.constant dense<0.000000e+00> : vector<8x256xf32>
    %437 = tpu.matmul %434, %436, %cst_191 {dimension_numbers = #tpu.dot_dimension_numbers<[1], [0], [0], [1], [0, 0, 1, 1], [], []>} : vector<8x8xbf16>, vector<8x256xbf16>, vector<8x256xf32> -> vector<8x256xf32>
    %438 = vector.broadcast %435 : vector<8x1xf32> to vector<8x256xf32>
    %439 = arith.addf %437, %438 : vector<8x256xf32>
    %cst_192 = arith.constant 0.000000e+00 : f32
    %440 = vector.broadcast %cst_192 : f32 to vector<8x256xf32>
    %441 = arith.cmpf oge, %439, %440 : vector<8x256xf32>
    %cst_193 = arith.constant 0.00999999977 : f32
    %442 = vector.broadcast %cst_193 : f32 to vector<8x256xf32>
    %443 = arith.mulf %442, %439 : vector<8x256xf32>
    %444 = arith.select %441, %439, %443 : vector<8x256xi1>, vector<8x256xf32>
    %c17_i32_194 = arith.constant 17 : i32
    %445 = tpu.dynamic_rotate %444 by %c17_i32_194 dim 1 : vector<8x256xf32>, i32 -> vector<8x256xf32>
    %446 = vector.broadcast %0 : vector<1x256xf32> to vector<8x256xf32>
    %447 = arith.mulf %445, %446 : vector<8x256xf32>
    %448 = arith.truncf %447 : vector<8x256xf32> to vector<8x256xbf16>
    %c0_195 = arith.constant 0 : index
    %c0_196 = arith.constant 0 : index
    %449 = vector.load %arg5[%c0_195, %c0_196] : memref<72x256xbf16, #tpu.memory_space<vmem>>, vector<8x256xbf16>
    tpu.vector_store %arg5[%c0_195, %c0_196], %448 {strides = array<i32>} : memref<72x256xbf16, #tpu.memory_space<vmem>>, vector<8x256xbf16>,
    %c16_i32_197 = arith.constant 16 : i32
    %450 = tpu.dynamic_rotate %444 by %c16_i32_197 dim 1 : vector<8x256xf32>, i32 -> vector<8x256xf32>
    %451 = vector.broadcast %1 : vector<1x256xf32> to vector<8x256xf32>
    %452 = arith.mulf %450, %451 : vector<8x256xf32>
    %453 = arith.truncf %452 : vector<8x256xf32> to vector<8x256xbf16>
    %c8_198 = arith.constant 8 : index
    %c0_199 = arith.constant 0 : index
    %454 = vector.load %arg5[%c8_198, %c0_199] : memref<72x256xbf16, #tpu.memory_space<vmem>>, vector<8x256xbf16>
    tpu.vector_store %arg5[%c8_198, %c0_199], %453 {strides = array<i32>} : memref<72x256xbf16, #tpu.memory_space<vmem>>, vector<8x256xbf16>,
    %c15_i32_200 = arith.constant 15 : i32
    %455 = tpu.dynamic_rotate %444 by %c15_i32_200 dim 1 : vector<8x256xf32>, i32 -> vector<8x256xf32>
    %456 = vector.broadcast %2 : vector<1x256xf32> to vector<8x256xf32>
    %457 = arith.mulf %455, %456 : vector<8x256xf32>
    %458 = arith.truncf %457 : vector<8x256xf32> to vector<8x256xbf16>
    %c16_201 = arith.constant 16 : index
    %c0_202 = arith.constant 0 : index
    %459 = vector.load %arg5[%c16_201, %c0_202] : memref<72x256xbf16, #tpu.memory_space<vmem>>, vector<8x256xbf16>
    tpu.vector_store %arg5[%c16_201, %c0_202], %458 {strides = array<i32>} : memref<72x256xbf16, #tpu.memory_space<vmem>>, vector<8x256xbf16>,
    %c1_i32_203 = arith.constant 1 : i32
    %460 = tpu.dynamic_rotate %444 by %c1_i32_203 dim 1 : vector<8x256xf32>, i32 -> vector<8x256xf32>
    %461 = vector.broadcast %3 : vector<1x256xf32> to vector<8x256xf32>
    %462 = arith.mulf %460, %461 : vector<8x256xf32>
    %463 = arith.truncf %462 : vector<8x256xf32> to vector<8x256xbf16>
    %c24_204 = arith.constant 24 : index
    %c0_205 = arith.constant 0 : index
    %464 = vector.load %arg5[%c24_204, %c0_205] : memref<72x256xbf16, #tpu.memory_space<vmem>>, vector<8x256xbf16>
    tpu.vector_store %arg5[%c24_204, %c0_205], %463 {strides = array<i32>} : memref<72x256xbf16, #tpu.memory_space<vmem>>, vector<8x256xbf16>,
    %465 = arith.truncf %444 : vector<8x256xf32> to vector<8x256xbf16>
    %c32_206 = arith.constant 32 : index
    %c0_207 = arith.constant 0 : index
    %466 = vector.load %arg5[%c32_206, %c0_207] : memref<72x256xbf16, #tpu.memory_space<vmem>>, vector<8x256xbf16>
    tpu.vector_store %arg5[%c32_206, %c0_207], %465 {strides = array<i32>} : memref<72x256xbf16, #tpu.memory_space<vmem>>, vector<8x256xbf16>,
    %c255_i32_208 = arith.constant 255 : i32
    %467 = tpu.dynamic_rotate %444 by %c255_i32_208 dim 1 : vector<8x256xf32>, i32 -> vector<8x256xf32>
    %468 = vector.broadcast %4 : vector<1x256xf32> to vector<8x256xf32>
    %469 = arith.mulf %467, %468 : vector<8x256xf32>
    %470 = arith.truncf %469 : vector<8x256xf32> to vector<8x256xbf16>
    %c40_209 = arith.constant 40 : index
    %c0_210 = arith.constant 0 : index
    %471 = vector.load %arg5[%c40_209, %c0_210] : memref<72x256xbf16, #tpu.memory_space<vmem>>, vector<8x256xbf16>
    tpu.vector_store %arg5[%c40_209, %c0_210], %470 {strides = array<i32>} : memref<72x256xbf16, #tpu.memory_space<vmem>>, vector<8x256xbf16>,
    %c241_i32_211 = arith.constant 241 : i32
    %472 = tpu.dynamic_rotate %444 by %c241_i32_211 dim 1 : vector<8x256xf32>, i32 -> vector<8x256xf32>
    %473 = vector.broadcast %5 : vector<1x256xf32> to vector<8x256xf32>
    %474 = arith.mulf %472, %473 : vector<8x256xf32>
    %475 = arith.truncf %474 : vector<8x256xf32> to vector<8x256xbf16>
    %c48_212 = arith.constant 48 : index
    %c0_213 = arith.constant 0 : index
    %476 = vector.load %arg5[%c48_212, %c0_213] : memref<72x256xbf16, #tpu.memory_space<vmem>>, vector<8x256xbf16>
    tpu.vector_store %arg5[%c48_212, %c0_213], %475 {strides = array<i32>} : memref<72x256xbf16, #tpu.memory_space<vmem>>, vector<8x256xbf16>,
    %c240_i32_214 = arith.constant 240 : i32
    %477 = tpu.dynamic_rotate %444 by %c240_i32_214 dim 1 : vector<8x256xf32>, i32 -> vector<8x256xf32>
    %478 = vector.broadcast %6 : vector<1x256xf32> to vector<8x256xf32>
    %479 = arith.mulf %477, %478 : vector<8x256xf32>
    %480 = arith.truncf %479 : vector<8x256xf32> to vector<8x256xbf16>
    %c56_215 = arith.constant 56 : index
    %c0_216 = arith.constant 0 : index
    %481 = vector.load %arg5[%c56_215, %c0_216] : memref<72x256xbf16, #tpu.memory_space<vmem>>, vector<8x256xbf16>
    tpu.vector_store %arg5[%c56_215, %c0_216], %480 {strides = array<i32>} : memref<72x256xbf16, #tpu.memory_space<vmem>>, vector<8x256xbf16>,
    %c239_i32_217 = arith.constant 239 : i32
    %482 = tpu.dynamic_rotate %444 by %c239_i32_217 dim 1 : vector<8x256xf32>, i32 -> vector<8x256xf32>
    %483 = vector.broadcast %7 : vector<1x256xf32> to vector<8x256xf32>
    %484 = arith.mulf %482, %483 : vector<8x256xf32>
    %485 = arith.truncf %484 : vector<8x256xf32> to vector<8x256xbf16>
    %c64_218 = arith.constant 64 : index
    %c0_219 = arith.constant 0 : index
    %486 = vector.load %arg5[%c64_218, %c0_219] : memref<72x256xbf16, #tpu.memory_space<vmem>>, vector<8x256xbf16>
    tpu.vector_store %arg5[%c64_218, %c0_219], %485 {strides = array<i32>} : memref<72x256xbf16, #tpu.memory_space<vmem>>, vector<8x256xbf16>,
    %c0_220 = arith.constant 0 : index
    %c0_221 = arith.constant 0 : index
    %487 = vector.load %arg5[%c0_220, %c0_221] : memref<72x256xbf16, #tpu.memory_space<vmem>>, vector<72x256xbf16>
    %cst_222 = arith.constant dense<0.000000e+00> : vector<8x256xf32>
    %488 = tpu.matmul %9, %487, %cst_222 {dimension_numbers = #tpu.dot_dimension_numbers<[1], [0], [0], [1], [0, 0, 1, 1], [], []>} : vector<8x72xbf16>, vector<72x256xbf16>, vector<8x256xf32> -> vector<8x256xf32>
    %cst_223 = arith.constant dense<0.000000e+00> : vector<8xf32>
    %489 = vector.multi_reduction <add>, %488, %cst_223 [1] : vector<8x256xf32> to vector<8xf32>
    %490 = vector.shape_cast %489 : vector<8xf32> to vector<8x1xf32>
    %cst_224 = arith.constant 2.560000e+02 : f32
    %491 = vector.broadcast %cst_224 : f32 to vector<8x1xf32>
    %492 = arith.divf %490, %491 : vector<8x1xf32>
    %493 = arith.mulf %488, %488 : vector<8x256xf32>
    %cst_225 = arith.constant dense<0.000000e+00> : vector<8xf32>
    %494 = vector.multi_reduction <add>, %493, %cst_225 [1] : vector<8x256xf32> to vector<8xf32>
    %495 = vector.shape_cast %494 : vector<8xf32> to vector<8x1xf32>
    %cst_226 = arith.constant 2.560000e+02 : f32
    %496 = vector.broadcast %cst_226 : f32 to vector<8x1xf32>
    %497 = arith.divf %495, %496 : vector<8x1xf32>
    %498 = arith.mulf %492, %492 : vector<8x1xf32>
    %499 = arith.subf %497, %498 : vector<8x1xf32>
    %cst_227 = arith.constant 0.000000e+00 : f32
    %500 = vector.broadcast %cst_227 : f32 to vector<8x1xf32>
    %501 = arith.maximumf %499, %500 : vector<8x1xf32>
    %502 = vector.broadcast %492 : vector<8x1xf32> to vector<8x256xf32>
    %503 = arith.subf %488, %502 : vector<8x256xf32>
    %cst_228 = arith.constant 9.99999974E-6 : f32
    %504 = vector.broadcast %cst_228 : f32 to vector<8x1xf32>
    %505 = arith.addf %501, %504 : vector<8x1xf32>
    %506 = math.rsqrt %505 : vector<8x1xf32>
    %507 = vector.broadcast %506 : vector<8x1xf32> to vector<8x256xf32>
    %508 = arith.mulf %503, %507 : vector<8x256xf32>
    %cst_229 = arith.constant 0.000000e+00 : f32
    %509 = vector.broadcast %cst_229 : f32 to vector<8x256xf32>
    %510 = arith.cmpf oge, %508, %509 : vector<8x256xf32>
    %cst_230 = arith.constant 0.00999999977 : f32
    %511 = vector.broadcast %cst_230 : f32 to vector<8x256xf32>
    %512 = arith.mulf %511, %508 : vector<8x256xf32>
    %513 = arith.select %510, %508, %512 : vector<8x256xi1>, vector<8x256xf32>
    %c17_i32_231 = arith.constant 17 : i32
    %514 = tpu.dynamic_rotate %513 by %c17_i32_231 dim 1 : vector<8x256xf32>, i32 -> vector<8x256xf32>
    %515 = vector.broadcast %0 : vector<1x256xf32> to vector<8x256xf32>
    %516 = arith.mulf %514, %515 : vector<8x256xf32>
    %517 = arith.truncf %516 : vector<8x256xf32> to vector<8x256xbf16>
    %c0_232 = arith.constant 0 : index
    %c0_233 = arith.constant 0 : index
    %518 = vector.load %arg5[%c0_232, %c0_233] : memref<72x256xbf16, #tpu.memory_space<vmem>>, vector<8x256xbf16>
    tpu.vector_store %arg5[%c0_232, %c0_233], %517 {strides = array<i32>} : memref<72x256xbf16, #tpu.memory_space<vmem>>, vector<8x256xbf16>,
    %c16_i32_234 = arith.constant 16 : i32
    %519 = tpu.dynamic_rotate %513 by %c16_i32_234 dim 1 : vector<8x256xf32>, i32 -> vector<8x256xf32>
    %520 = vector.broadcast %1 : vector<1x256xf32> to vector<8x256xf32>
    %521 = arith.mulf %519, %520 : vector<8x256xf32>
    %522 = arith.truncf %521 : vector<8x256xf32> to vector<8x256xbf16>
    %c8_235 = arith.constant 8 : index
    %c0_236 = arith.constant 0 : index
    %523 = vector.load %arg5[%c8_235, %c0_236] : memref<72x256xbf16, #tpu.memory_space<vmem>>, vector<8x256xbf16>
    tpu.vector_store %arg5[%c8_235, %c0_236], %522 {strides = array<i32>} : memref<72x256xbf16, #tpu.memory_space<vmem>>, vector<8x256xbf16>,
    %c15_i32_237 = arith.constant 15 : i32
    %524 = tpu.dynamic_rotate %513 by %c15_i32_237 dim 1 : vector<8x256xf32>, i32 -> vector<8x256xf32>
    %525 = vector.broadcast %2 : vector<1x256xf32> to vector<8x256xf32>
    %526 = arith.mulf %524, %525 : vector<8x256xf32>
    %527 = arith.truncf %526 : vector<8x256xf32> to vector<8x256xbf16>
    %c16_238 = arith.constant 16 : index
    %c0_239 = arith.constant 0 : index
    %528 = vector.load %arg5[%c16_238, %c0_239] : memref<72x256xbf16, #tpu.memory_space<vmem>>, vector<8x256xbf16>
    tpu.vector_store %arg5[%c16_238, %c0_239], %527 {strides = array<i32>} : memref<72x256xbf16, #tpu.memory_space<vmem>>, vector<8x256xbf16>,
    %c1_i32_240 = arith.constant 1 : i32
    %529 = tpu.dynamic_rotate %513 by %c1_i32_240 dim 1 : vector<8x256xf32>, i32 -> vector<8x256xf32>
    %530 = vector.broadcast %3 : vector<1x256xf32> to vector<8x256xf32>
    %531 = arith.mulf %529, %530 : vector<8x256xf32>
    %532 = arith.truncf %531 : vector<8x256xf32> to vector<8x256xbf16>
    %c24_241 = arith.constant 24 : index
    %c0_242 = arith.constant 0 : index
    %533 = vector.load %arg5[%c24_241, %c0_242] : memref<72x256xbf16, #tpu.memory_space<vmem>>, vector<8x256xbf16>
    tpu.vector_store %arg5[%c24_241, %c0_242], %532 {strides = array<i32>} : memref<72x256xbf16, #tpu.memory_space<vmem>>, vector<8x256xbf16>,
    %534 = arith.truncf %513 : vector<8x256xf32> to vector<8x256xbf16>
    %c32_243 = arith.constant 32 : index
    %c0_244 = arith.constant 0 : index
    %535 = vector.load %arg5[%c32_243, %c0_244] : memref<72x256xbf16, #tpu.memory_space<vmem>>, vector<8x256xbf16>
    tpu.vector_store %arg5[%c32_243, %c0_244], %534 {strides = array<i32>} : memref<72x256xbf16, #tpu.memory_space<vmem>>, vector<8x256xbf16>,
    %c255_i32_245 = arith.constant 255 : i32
    %536 = tpu.dynamic_rotate %513 by %c255_i32_245 dim 1 : vector<8x256xf32>, i32 -> vector<8x256xf32>
    %537 = vector.broadcast %4 : vector<1x256xf32> to vector<8x256xf32>
    %538 = arith.mulf %536, %537 : vector<8x256xf32>
    %539 = arith.truncf %538 : vector<8x256xf32> to vector<8x256xbf16>
    %c40_246 = arith.constant 40 : index
    %c0_247 = arith.constant 0 : index
    %540 = vector.load %arg5[%c40_246, %c0_247] : memref<72x256xbf16, #tpu.memory_space<vmem>>, vector<8x256xbf16>
    tpu.vector_store %arg5[%c40_246, %c0_247], %539 {strides = array<i32>} : memref<72x256xbf16, #tpu.memory_space<vmem>>, vector<8x256xbf16>,
    %c241_i32_248 = arith.constant 241 : i32
    %541 = tpu.dynamic_rotate %513 by %c241_i32_248 dim 1 : vector<8x256xf32>, i32 -> vector<8x256xf32>
    %542 = vector.broadcast %5 : vector<1x256xf32> to vector<8x256xf32>
    %543 = arith.mulf %541, %542 : vector<8x256xf32>
    %544 = arith.truncf %543 : vector<8x256xf32> to vector<8x256xbf16>
    %c48_249 = arith.constant 48 : index
    %c0_250 = arith.constant 0 : index
    %545 = vector.load %arg5[%c48_249, %c0_250] : memref<72x256xbf16, #tpu.memory_space<vmem>>, vector<8x256xbf16>
    tpu.vector_store %arg5[%c48_249, %c0_250], %544 {strides = array<i32>} : memref<72x256xbf16, #tpu.memory_space<vmem>>, vector<8x256xbf16>,
    %c240_i32_251 = arith.constant 240 : i32
    %546 = tpu.dynamic_rotate %513 by %c240_i32_251 dim 1 : vector<8x256xf32>, i32 -> vector<8x256xf32>
    %547 = vector.broadcast %6 : vector<1x256xf32> to vector<8x256xf32>
    %548 = arith.mulf %546, %547 : vector<8x256xf32>
    %549 = arith.truncf %548 : vector<8x256xf32> to vector<8x256xbf16>
    %c56_252 = arith.constant 56 : index
    %c0_253 = arith.constant 0 : index
    %550 = vector.load %arg5[%c56_252, %c0_253] : memref<72x256xbf16, #tpu.memory_space<vmem>>, vector<8x256xbf16>
    tpu.vector_store %arg5[%c56_252, %c0_253], %549 {strides = array<i32>} : memref<72x256xbf16, #tpu.memory_space<vmem>>, vector<8x256xbf16>,
    %c239_i32_254 = arith.constant 239 : i32
    %551 = tpu.dynamic_rotate %513 by %c239_i32_254 dim 1 : vector<8x256xf32>, i32 -> vector<8x256xf32>
    %552 = vector.broadcast %7 : vector<1x256xf32> to vector<8x256xf32>
    %553 = arith.mulf %551, %552 : vector<8x256xf32>
    %554 = arith.truncf %553 : vector<8x256xf32> to vector<8x256xbf16>
    %c64_255 = arith.constant 64 : index
    %c0_256 = arith.constant 0 : index
    %555 = vector.load %arg5[%c64_255, %c0_256] : memref<72x256xbf16, #tpu.memory_space<vmem>>, vector<8x256xbf16>
    tpu.vector_store %arg5[%c64_255, %c0_256], %554 {strides = array<i32>} : memref<72x256xbf16, #tpu.memory_space<vmem>>, vector<8x256xbf16>,
    %c0_257 = arith.constant 0 : index
    %c0_258 = arith.constant 0 : index
    %556 = vector.load %arg5[%c0_257, %c0_258] : memref<72x256xbf16, #tpu.memory_space<vmem>>, vector<72x256xbf16>
    %cst_259 = arith.constant dense<0.000000e+00> : vector<8x256xf32>
    %557 = tpu.matmul %10, %556, %cst_259 {dimension_numbers = #tpu.dot_dimension_numbers<[1], [0], [0], [1], [0, 0, 1, 1], [], []>} : vector<8x72xbf16>, vector<72x256xbf16>, vector<8x256xf32> -> vector<8x256xf32>
    %cst_260 = arith.constant dense<0.000000e+00> : vector<8xf32>
    %558 = vector.multi_reduction <add>, %557, %cst_260 [1] : vector<8x256xf32> to vector<8xf32>
    %559 = vector.shape_cast %558 : vector<8xf32> to vector<8x1xf32>
    %cst_261 = arith.constant 2.560000e+02 : f32
    %560 = vector.broadcast %cst_261 : f32 to vector<8x1xf32>
    %561 = arith.divf %559, %560 : vector<8x1xf32>
    %562 = arith.mulf %557, %557 : vector<8x256xf32>
    %cst_262 = arith.constant dense<0.000000e+00> : vector<8xf32>
    %563 = vector.multi_reduction <add>, %562, %cst_262 [1] : vector<8x256xf32> to vector<8xf32>
    %564 = vector.shape_cast %563 : vector<8xf32> to vector<8x1xf32>
    %cst_263 = arith.constant 2.560000e+02 : f32
    %565 = vector.broadcast %cst_263 : f32 to vector<8x1xf32>
    %566 = arith.divf %564, %565 : vector<8x1xf32>
    %567 = arith.mulf %561, %561 : vector<8x1xf32>
    %568 = arith.subf %566, %567 : vector<8x1xf32>
    %cst_264 = arith.constant 0.000000e+00 : f32
    %569 = vector.broadcast %cst_264 : f32 to vector<8x1xf32>
    %570 = arith.maximumf %568, %569 : vector<8x1xf32>
    %571 = vector.broadcast %561 : vector<8x1xf32> to vector<8x256xf32>
    %572 = arith.subf %557, %571 : vector<8x256xf32>
    %cst_265 = arith.constant 9.99999974E-6 : f32
    %573 = vector.broadcast %cst_265 : f32 to vector<8x1xf32>
    %574 = arith.addf %570, %573 : vector<8x1xf32>
    %575 = math.rsqrt %574 : vector<8x1xf32>
    %576 = vector.broadcast %575 : vector<8x1xf32> to vector<8x256xf32>
    %577 = arith.mulf %572, %576 : vector<8x256xf32>
    %cst_266 = arith.constant 0.000000e+00 : f32
    %578 = vector.broadcast %cst_266 : f32 to vector<8x256xf32>
    %579 = arith.cmpf oge, %577, %578 : vector<8x256xf32>
    %cst_267 = arith.constant 0.00999999977 : f32
    %580 = vector.broadcast %cst_267 : f32 to vector<8x256xf32>
    %581 = arith.mulf %580, %577 : vector<8x256xf32>
    %582 = arith.select %579, %577, %581 : vector<8x256xi1>, vector<8x256xf32>
    %583 = vector.broadcast %15 : vector<8x1xf32> to vector<8x256xf32>
    %584 = arith.mulf %582, %583 : vector<8x256xf32>
    %cst_268 = arith.constant dense<0.000000e+00> : vector<256xf32>
    %585 = vector.multi_reduction <add>, %584, %cst_268 [0] : vector<8x256xf32> to vector<256xf32>
    %586 = vector.shape_cast %585 : vector<256xf32> to vector<1x256xf32>
    %587 = vector.broadcast %16 : vector<1x1xf32> to vector<1x256xf32>
    %588 = arith.addf %586, %587 : vector<1x256xf32>
    %589 = arith.negf %588 : vector<1x256xf32>
    %590 = math.exp %589 : vector<1x256xf32>
    %cst_269 = arith.constant 1.000000e+00 : f32
    %591 = vector.broadcast %cst_269 : f32 to vector<1x256xf32>
    %592 = arith.addf %591, %590 : vector<1x256xf32>
    %593 = arith.divf %591, %592 : vector<1x256xf32>
    %cst_270 = arith.constant dense<0.000000e+00> : vector<8xf32>
    %594 = vector.multi_reduction <add>, %444, %cst_270 [1] : vector<8x256xf32> to vector<8xf32>
    %595 = vector.shape_cast %594 : vector<8xf32> to vector<8x1xf32>
    %cst_271 = arith.constant 2.560000e+02 : f32
    %596 = vector.broadcast %cst_271 : f32 to vector<8x1xf32>
    %597 = arith.divf %595, %596 : vector<8x1xf32>
    %cst_272 = arith.constant dense<0xFF800000> : vector<8xf32>
    %598 = vector.multi_reduction <maximumf>, %444, %cst_272 [1] : vector<8x256xf32> to vector<8xf32>
    %599 = vector.shape_cast %598 : vector<8xf32> to vector<8x1xf32>
    %c0_i32_273 = arith.constant 0 : i32
    %600 = vector.broadcast %c0_i32_273 : i32 to vector<1x2xi32>
    %601 = arith.cmpi eq, %17, %600 : vector<1x2xi32>
    %602 = vector.shape_cast %601 : vector<1x2xi1> to vector<1x2xi1>
    %603 = vector.broadcast %602 : vector<1x2xi1> to vector<8x2xi1>
    %604 = vector.shape_cast %597 : vector<8x1xf32> to vector<8x1xf32>
    %605 = vector.broadcast %604 : vector<8x1xf32> to vector<8x2xf32>
    %606 = vector.shape_cast %599 : vector<8x1xf32> to vector<8x1xf32>
    %607 = vector.broadcast %606 : vector<8x1xf32> to vector<8x2xf32>
    %608 = arith.select %603, %605, %607 : vector<8x2xi1>, vector<8x2xf32>
    %609 = arith.truncf %608 : vector<8x2xf32> to vector<8x2xbf16>
    %cst_274 = arith.constant dense<0.000000e+00> : vector<8x2xf32>
    %610 = tpu.matmul %11, %609, %cst_274 {dimension_numbers = #tpu.dot_dimension_numbers<[1], [0], [0], [1], [0, 0, 1, 1], [], []>} : vector<8x8xbf16>, vector<8x2xbf16>, vector<8x2xf32> -> vector<8x2xf32>
    %611 = vector.broadcast %13 : vector<8x1xf32> to vector<8x2xf32>
    %612 = arith.addf %610, %611 : vector<8x2xf32>
    %cst_275 = arith.constant 0.000000e+00 : f32
    %613 = vector.broadcast %cst_275 : f32 to vector<8x2xf32>
    %614 = arith.cmpf oge, %612, %613 : vector<8x2xf32>
    %cst_276 = arith.constant 0.00999999977 : f32
    %615 = vector.broadcast %cst_276 : f32 to vector<8x2xf32>
    %616 = arith.mulf %615, %612 : vector<8x2xf32>
    %617 = arith.select %614, %612, %616 : vector<8x2xi1>, vector<8x2xf32>
    %618 = arith.truncf %617 : vector<8x2xf32> to vector<8x2xbf16>
    %cst_277 = arith.constant dense<0.000000e+00> : vector<8x2xf32>
    %619 = tpu.matmul %12, %618, %cst_277 {dimension_numbers = #tpu.dot_dimension_numbers<[1], [0], [0], [1], [0, 0, 1, 1], [], []>} : vector<8x8xbf16>, vector<8x2xbf16>, vector<8x2xf32> -> vector<8x2xf32>
    %620 = vector.broadcast %14 : vector<8x1xf32> to vector<8x2xf32>
    %621 = arith.addf %619, %620 : vector<8x2xf32>
    %cst_278 = arith.constant 0.000000e+00 : f32
    %622 = vector.broadcast %cst_278 : f32 to vector<8x2xf32>
    %623 = arith.cmpf oge, %621, %622 : vector<8x2xf32>
    %cst_279 = arith.constant 0.00999999977 : f32
    %624 = vector.broadcast %cst_279 : f32 to vector<8x2xf32>
    %625 = arith.mulf %624, %621 : vector<8x2xf32>
    %626 = arith.select %623, %621, %625 : vector<8x2xi1>, vector<8x2xf32>
    %627 = vector.extract_strided_slice %626 {offsets = [0, 0], sizes = [8, 1], strides = [1, 1]} : vector<8x2xf32> to vector<8x1xf32>
    %628 = vector.extract_strided_slice %626 {offsets = [0, 1], sizes = [8, 1], strides = [1, 1]} : vector<8x2xf32> to vector<8x1xf32>
    %629 = arith.addf %627, %628 : vector<8x1xf32>
    %630 = arith.negf %629 : vector<8x1xf32>
    %631 = math.exp %630 : vector<8x1xf32>
    %cst_280 = arith.constant 1.000000e+00 : f32
    %632 = vector.broadcast %cst_280 : f32 to vector<8x1xf32>
    %633 = arith.addf %632, %631 : vector<8x1xf32>
    %634 = arith.divf %632, %633 : vector<8x1xf32>
    %635 = vector.broadcast %634 : vector<8x1xf32> to vector<8x256xf32>
    %636 = vector.broadcast %593 : vector<1x256xf32> to vector<8x256xf32>
    %637 = arith.mulf %635, %636 : vector<8x256xf32>
    %cst_281 = arith.constant 1.000000e+00 : f32
    %638 = vector.broadcast %cst_281 : f32 to vector<8x256xf32>
    %639 = arith.subf %638, %637 : vector<8x256xf32>
    %640 = arith.mulf %433, %639 : vector<8x256xf32>
    %641 = arith.mulf %444, %637 : vector<8x256xf32>
    %642 = arith.addf %640, %641 : vector<8x256xf32>
    %c0_282 = arith.constant 0 : index
    %c0_283 = arith.constant 0 : index
    %c0_284 = arith.constant 0 : index
    %643 = vector.load %arg4[%c0_282, %c0_283, %c0_284] : memref<1x8x256xf32, #tpu.memory_space<vmem>>, vector<1x8x256xf32>
    %644 = vector.shape_cast %643 : vector<1x8x256xf32> to vector<8x256xf32>
    %645 = vector.shape_cast %642 : vector<8x256xf32> to vector<1x8x256xf32>
    tpu.vector_store %arg4[%c0_282, %c0_283, %c0_284], %645 {strides = array<i32>} : memref<1x8x256xf32, #tpu.memory_space<vmem>>, vector<1x8x256xf32>,
    return
  }
  func.func @transform_0(%arg0: i32) -> (i32, i32, i32) {
    %c0_i32 = arith.constant 0 : i32
    %c0_i32_0 = arith.constant 0 : i32
    %c0_i32_1 = arith.constant 0 : i32
    return %arg0, %c0_i32, %c0_i32_0 : i32, i32, i32
  }
  func.func @transform_1(%arg0: i32) -> (i32, i32) {
    %c0_i32 = arith.constant 0 : i32
    %c0_i32_0 = arith.constant 0 : i32
    %c0_i32_1 = arith.constant 0 : i32
    return %c0_i32, %c0_i32_0 : i32, i32
  }
  func.func @transform_2(%arg0: i32) -> (i32, i32) {
    %c0_i32 = arith.constant 0 : i32
    %c0_i32_0 = arith.constant 0 : i32
    %c0_i32_1 = arith.constant 0 : i32
    return %c0_i32, %c0_i32_0 : i32, i32
  }
  func.func @transform_3(%arg0: i32) -> (i32, i32, i32) {
    %c0_i32 = arith.constant 0 : i32
    %c0_i32_0 = arith.constant 0 : i32
    %c0_i32_1 = arith.constant 0 : i32
    return %arg0, %c0_i32, %c0_i32_0 : i32, i32, i32
  }
}

</mosaic_0001>

<bundles_post_ra>
// kernel: blocklist_forward.1
= control target key start
LH: loop header
LB: loop body
LE: loop exit
PB: predicated region body
PF: predicated region fallthrough
CT: control target
= control target key end

     0   :  { %s2553_s12 = smov 0   ;;  %s3411_s0 = inlined_call_operand.vmem [shape: f32[2,8,256], index: 0, kind: input, shape index: {}]   ;;  %s3412_s1 = inlined_call_operand.vmem [shape: bf16[56,128], index: 1, kind: input, shape index: {}]   ;;  %s3413_s2 = inlined_call_operand.vmem [shape: f32[24,256], index: 2, kind: input, shape index: {}]   ;;  %s3414_s3 = inlined_call_operand.vmem [shape: f32[2,8,256], index: 3, kind: output, shape index: {}]  }
   0x1 LB: > { %s2128_s13 = sadd.s32 4294967295, %s2515_s12   ;;  %p2132_p0 = scmp.ge.s32.totalorder %s2515_s12, 1  ;;  %s2515_s12 = sphi %s2553_s12, %s13_s12  }
   0x2   : > { %p137_p1 = scmp.lt.s32.totalorder %s2515_s12, 3 }
   0x4   : > { %p138_p2 = pnand %p2132_p0, %p137_p1 }
   0x5   : > { %p161_p3 = scmp.lt.s32.totalorder (!%p138_p2), %s2128_s13, 1  ;;  %s2518_s22 = smov (!%p138_p2), 113  }
   0x6   : > { %141 = sbr.rel (%p138_p2) target bundleno = 2824 (0xb08), region = 32  ;;  %s2519_s23 = smov (!%p138_p2), 111  }
   0x7   : > { %s2520_s24 = smov (!%p138_p2), 112   ;;  %s2521_s25 = smov (!%p138_p2), 127  }
   0x8   : > { %s2522_s26 = smov (!%p138_p2), 15   ;;  %s2523_s27 = smov (!%p138_p2), 1  }
   0x9   : > { %s2524_s28 = smov (!%p138_p2), 17   ;;  %s2525_s29 = smov (!%p138_p2), 16  }
   0xb   : > { %v2517_v0 = vmov 0   ;;  %v2565_v1 = vld [vmem:[%s3413_s2 + $0x20] sm:$0xff]  ;;  %s3426_s13 = smov (!%p161_p3, %s2128_s13), 1  ;;  %vm208_vm0 = vcmask 1043456   ;;  %vm204_vm1 = vcmask 64512   ;;  %v192_v21 = vlaneseq }
   0xc   : > { %2445 = vset.pattern.permute.xlu0 %v2517_v0  ;;  %s2371_s16 = sshll.u32 %s3426_s13, 4  ;;  %v196_v8 = vld [vmem:[%s3412_s1] sm:$0xf]  ;;  %v2143_v24 = vld [vmem:[%s3413_s2 + $0x10] ss:$8 sm:$0x3] }
   0xd   : > { %201 = vperm.xlu0 %2445, %v2565_v1   ;;  %s165_s19 = scalar_lea.vmem %s3411_s0, %s2371_s16  ;;  %v2624_v23 = vand.u32 127, %v192_v21  ;;  %v2630_v25 = vperm.slane %v2143_v24, 0  ;;  %v2632_v26 = vperm.slane %v2143_v24, 1  ;;  %v2141_v34 = vld [vmem:[%s3413_s2 + $0x6] ss:$8 sm:$0x3] }
   0xe   : > { %v194_v2 = vld [vmem:[%s165_s19] sm:$0xff]  ;;  %v195_v3 = vld [vmem:[%s165_s19 + $0x8] sm:$0xff]  ;;  %v2647_v37 = vperm.slane %v2141_v34, 0  ;;  %v2649_v38 = vperm.slane %v2141_v34, 1  ;;  %vm3415_vm12 = vcmask 588800  }
   0xf   : > { %v197_v4 = vpack.c.bf16 %v194_v2, %v194_v2  ;;  %v198_v5 = vpack.c.bf16 %v195_v3, %v195_v3  ;;  %vm365_vm4 = vcmp.lt.s32.totalorder %v2624_v23, 111  ;;  %v2142_v35 = vld [vmem:[%s3413_s2 + $0x7] ss:$8 sm:$0x3]  ;;  %vm333_vm5 = vcmp.lt.s32.totalorder %v2624_v23, 113 }
  0x10   : > { %vm349_vm6 = vcmp.lt.s32.totalorder %v2624_v23, 112  ;;  %v2652_v39 = vperm.slane %v2142_v35, 0  ;;  %v2654_v40 = vperm.slane %v2142_v35, 1  ;;  %v2140_v55 = vld [vmem:[%s3413_s2 + $0x5] ss:$8 sm:$0x3] }
  0x11   : > { %v210_v6 = vsel %vm208_vm0, %v197_v4, 0  ;;  %v213_v7 = vsel %vm208_vm0, %v198_v5, 0  ;;  %vm317_vm7 = vcmp.lt.s32.totalorder %v2624_v23, 127  ;;  %v2674_v61 = vperm.slane %v2140_v55, 0 }
  0x12   : > { %222 = vmatpush.bf16.msra.mxu0 %v210_v6  ;;  %235 = vmatpush.bf16.msra.mxu1 %v213_v7  ;;  %v2676_v62 = vperm.slane %v2140_v55, 1  ;;  %v2138_v7 = vld [vmem:[%s3413_s2 + $0x2] ss:$8 sm:$0x3]  ;;  %vm283_vm8 = vcmp.lt.s32.totalorder %v2624_v23, 15  ;;  %vm299_vm9 = vcmp.lt.s32.totalorder %v2624_v23, 1 }
  0x13   : > { %vm251_vm10 = vcmp.lt.s32.totalorder %v2624_v23, 17  ;;  %vm267_vm11 = vcmp.lt.s32.totalorder %v2624_v23, 16 }
  0x15   : > { %2144 = vmatmul.msk.bf16.vlgmr.msra.gmra.mxu0 %vm204_vm1, %v196_v8  ;;  %2145 = vmatmul.msk.bf16.vlgmr.msra.gmra.mxu1 %vm204_vm1, %v196_v8 }
  0x7f   : > { %v202_v9 = vpop.permute.xlu0 %201 }
  0x92   : > { %v224_v10 = vpop.f32.mrf.mxu0  ;;  %v237_v11 = vpop.f32.mrf.mxu1 }
  0x93   : > { %v225_v12 = vadd.f32 %v224_v10, %v202_v9  ;;  %v238_v13 = vadd.f32 %v237_v11, %v202_v9  ;;  %v2139_v9 = vld [vmem:[%s3413_s2 + $0x3] ss:$8 sm:$0x3]  ;;  %v2691_v10 = vperm.slane %v2138_v7, 0  ;;  %v2693_v11 = vperm.slane %v2138_v7, 1 }
  0x94   : > { %v2698_v24 = vperm.slane %v2139_v9, 1 }
  0x95   : > { %vm241_vm2 = vcmp.ge.f32.partialorder %v225_v12, 0.0  ;;  %v243_v14 = vmul.f32 0.01, %v225_v12  ;;  %vm242_vm3 = vcmp.ge.f32.partialorder %v238_v13, 0.0  ;;  %v244_v15 = vmul.f32 0.01, %v238_v13 }
  0x97   : > { %v2583_v16 = vsel %vm241_vm2, %v225_v12, %v243_v14  ;;  %v2585_v17 = vsel %vm242_vm3, %v238_v13, %v244_v15 }
  0x98   : > { %331 = vrot.lane.b32.xlu2 %v2585_v17, %s2518_s22  ;;  %363 = vrot.lane.b32.xlu1 %v2585_v17, %s2519_s23  ;;  %v2593_v18 = vpack.c.bf16 %v2585_v17, %v2583_v16 }
  0x99   : > { %361 = vrot.lane.b32.xlu0 %v2583_v16, %s2519_s23 }
  0x9a   : > { %v226_v19 = vpop.f32.mrf.mxu0  ;;  %v239_v20 = vpop.f32.mrf.mxu1  ;;  %312 = vst [vmem:[#allocation2 + $0x20] sm:$0xff] %v2593_v18 }
  0xa0   : > { %345 = vrot.lane.b32.xlu2 %v2583_v16, %s2520_s24  ;;  %329 = vrot.lane.b32.xlu1 %v2583_v16, %s2518_s22 }
  0xa1   : > { %347 = vrot.lane.b32.xlu0 %v2585_v17, %s2520_s24 }
  0xa8   : > { %315 = vrot.lane.b32.xlu2 %v2585_v17, %s2521_s25  ;;  %313 = vrot.lane.b32.xlu1 %v2583_v16, %s2521_s25 }
  0xa9   : > { %279 = vrot.lane.b32.xlu0 %v2583_v16, %s2522_s26 }
  0xb0   : > { %295 = vrot.lane.b32.xlu2 %v2583_v16, %s2523_s27  ;;  %281 = vrot.lane.b32.xlu1 %v2585_v17, %s2522_s26 }
  0xb1   : > { %297 = vrot.lane.b32.xlu0 %v2585_v17, %s2523_s27 }
  0xb8   : > { %249 = vrot.lane.b32.xlu2 %v2585_v17, %s2524_s28  ;;  %247 = vrot.lane.b32.xlu1 %v2583_v16, %s2524_s28 }
  0xb9   : > { %263 = vrot.lane.b32.xlu0 %v2583_v16, %s2525_s29 }
  0xc0   : > { %265 = vrot.lane.b32.xlu1 %v2585_v17, %s2525_s29 }
  0xf2   : > { %v332_v22 = vpop.permute.xlu2 %331 }
  0xfa   : > { %v346_v29 = vpop.permute.xlu2 %345 }
 0x102   : > { %v316_v58 = vpop.permute.xlu2 %315 }
 0x10a   : > { %v364_v27 = vpop.permute.xlu1 %363  ;;  %v296_v14 = vpop.permute.xlu2 %295 }
 0x10b   : > { %v362_v28 = vpop.permute.xlu0 %361 }
 0x10c   : > { %v366_v30 = vsel %vm365_vm4, %v362_v28, %v364_v27  ;;  %v367_v31 = vsel %vm365_vm4, %v364_v27, %v362_v28 }
 0x10d   : > { %v373_v32 = vmul.f32 %v2630_v25, %v366_v30  ;;  %v374_v33 = vmul.f32 %v2632_v26, %v367_v31 }
 0x10f   : > { %v375_v36 = vpack.c.bf16 %v374_v33, %v373_v32 }
 0x111   : > { %v411_v41 = vunpack.c.l.b16 %v375_v36  ;;  %v412_v42 = vunpack.c.h.b16 %v375_v36 }
 0x112   : > { %v330_v43 = vpop.permute.xlu1 %329 }
 0x113   : > { %v334_v44 = vsel %vm333_vm5, %v330_v43, %v332_v22  ;;  %v335_v45 = vsel %vm333_vm5, %v332_v22, %v330_v43  ;;  %v348_v46 = vpop.permute.xlu0 %347  ;;  %v421_v47 = vpack.c.b16 %v411_v41, %v411_v41  ;;  %v422_v48 = vpack.c.b16 %v412_v42, %v412_v42  ;;  %v172_v41 = vld [vmem:[%s3413_s2] ss:$8 sm:$0x3] }
 0x114   : > { %v341_v49 = vmul.f32 %v2647_v37, %v334_v44  ;;  %v342_v50 = vmul.f32 %v2649_v38, %v335_v45  ;;  %v350_v51 = vsel %vm349_vm6, %v346_v29, %v348_v46  ;;  %v351_v52 = vsel %vm349_vm6, %v348_v46, %v346_v29  ;;  %v2164_v43 = vld [vmem:[#allocation2 + $0x20] sm:$0xf]  ;;  %v2377_v44 = vld [vmem:[#allocation2 + $0x24] sm:$0xf] }
 0x115   : > { %v357_v53 = vmul.f32 %v2652_v39, %v350_v51  ;;  %v358_v54 = vmul.f32 %v2654_v40, %v351_v52  ;;  %v436_v56 = vsel %vm208_vm0, %v421_v47, 0  ;;  %v439_v57 = vsel %vm208_vm0, %v422_v48, 0  ;;  %v250_v52 = vpop.permute.xlu2 %249 }
 0x116   : > { %v343_v59 = vpack.c.bf16 %v342_v50, %v341_v49  ;;  %444 = vmatpush.bf16.msra.mxu2 %v436_v56  ;;  %457 = vmatpush.bf16.msra.mxu3 %v439_v57  ;;  %v2696_v22 = vperm.slane %v2139_v9, 0  ;;  %v2716_v48 = vperm.slane %v172_v41, 0  ;;  %v2718_v49 = vperm.slane %v172_v41, 1 }
 0x117   : > { %v359_v60 = vpack.c.bf16 %v358_v54, %v357_v53 }
 0x118   : > { %344 = vst [vmem:[#allocation2 + $0x30] sm:$0xff] %v343_v59 }
 0x119   : > { %360 = vst [vmem:[#allocation2 + $0x38] sm:$0xff] %v359_v60 }
 0x11a   : > { %v314_v63 = vpop.permute.xlu1 %313 }
 0x11b   : > { %v318_v2 = vsel %vm317_vm7, %v314_v63, %v316_v58  ;;  %v319_v3 = vsel %vm317_vm7, %v316_v58, %v314_v63  ;;  %v280_v4 = vpop.permute.xlu0 %279  ;;  %v2137_v58 = vld [vmem:[%s3413_s2 + $0x1] ss:$8 sm:$0x3] }
 0x11c   : > { %v325_v5 = vmul.f32 %v2674_v61, %v318_v2  ;;  %v326_v6 = vmul.f32 %v2676_v62, %v319_v3  ;;  %v2730_v60 = vperm.slane %v2137_v58, 0  ;;  %v2732_v3 = vperm.slane %v2137_v58, 1 }
 0x11e   : > { %v327_v8 = vpack.c.bf16 %v326_v6, %v325_v5 }
 0x11f   : > { %v2172_v12 = vld [vmem:[#allocation2 + $0x30] sm:$0xf]  ;;  %v2379_v13 = vld [vmem:[#allocation2 + $0x34] sm:$0xf] }
 0x120   : > { %328 = vst [vmem:[#allocation2 + $0x28] sm:$0xff] %v327_v8  ;;  %v2380_v15 = vld [vmem:[#allocation2 + $0x34] sm:$0xf0]  ;;  %v2174_v19 = vld [vmem:[#allocation2 + $0x38] sm:$0xf0] }
 0x121   : > { %v2173_v20 = vor.u32 %v2380_v15, %v2172_v12  ;;  %v2177_v21 = vor.u32 %v2379_v13, %v2174_v19 }
 0x122   : > { %v282_v27 = vpop.permute.xlu1 %281 }
 0x123   : > { %v284_v28 = vsel %vm283_vm8, %v280_v4, %v282_v27  ;;  %v285_v29 = vsel %vm283_vm8, %v282_v27, %v280_v4  ;;  %445 = vmatpush.bf16.msra.mxu2 %v2173_v20  ;;  %458 = vmatpush.bf16.msra.mxu3 %v2177_v21  ;;  %v298_v30 = vpop.permute.xlu0 %297 }
 0x124   : > { %v291_v31 = vmul.f32 %v2691_v10, %v285_v29  ;;  %v292_v32 = vmul.f32 %v2693_v11, %v284_v28  ;;  %v300_v33 = vsel %vm299_vm9, %v296_v14, %v298_v30  ;;  %v301_v34 = vsel %vm299_vm9, %v298_v30, %v296_v14 }
 0x125   : > { %v307_v35 = vmul.f32 %v2696_v22, %v301_v34  ;;  %v308_v36 = vmul.f32 %v2698_v24, %v300_v33 }
 0x126   : > { %v293_v42 = vpack.c.bf16 %v292_v32, %v291_v31  ;;  %v2743_v31 = vld [vmem:[%s3412_s1 + $0xc] sm:$0xf] }
 0x127   : > { %v309_v45 = vpack.c.bf16 %v308_v36, %v307_v35  ;;  %v2378_v46 = vld [vmem:[#allocation2 + $0x24] sm:$0xf0]  ;;  %v2166_v47 = vld [vmem:[#allocation2 + $0x28] sm:$0xf0] }
 0x128   : > { %294 = vst [vmem:[#allocation2 + $0x10] sm:$0xff] %v293_v42  ;;  %v2165_v50 = vor.u32 %v2378_v46, %v2164_v43  ;;  %v2169_v51 = vor.u32 %v2377_v44, %v2166_v47  ;;  %v2526_v44 = vmov 256.0  }
 0x129   : > { %310 = vst [vmem:[#allocation2 + $0x18] sm:$0xff] %v309_v45  ;;  %2455 = vrcp.f32 %v2526_v44 }
 0x12a   : > { %v248_v53 = vpop.permute.xlu1 %247  ;;  %446 = vmatpush.bf16.msra.mxu2 %v2165_v50  ;;  %459 = vmatpush.bf16.msra.mxu3 %v2169_v51 }
 0x12b   : > { %v252_v54 = vsel %vm251_vm10, %v248_v53, %v250_v52  ;;  %v253_v55 = vsel %vm251_vm10, %v250_v52, %v248_v53  ;;  %v264_v8 = vpop.permute.xlu0 %263 }
 0x12c   : > { %v259_v56 = vmul.f32 %v2716_v48, %v253_v55  ;;  %v260_v57 = vmul.f32 %v2718_v49, %v252_v54 }
 0x12e   : > { %v261_v59 = vpack.c.bf16 %v260_v57, %v259_v56 }
 0x12f   : > { %v2156_v63 = vld [vmem:[#allocation2 + $0x10] sm:$0xf]  ;;  %v2375_v2 = vld [vmem:[#allocation2 + $0x14] sm:$0xf]  ;;  %v2456_v45 = vpop.eup %2455 }
 0x130   : > { %262 = vst [vmem:[#allocation2] sm:$0xff] %v261_v59  ;;  %v2376_v4 = vld [vmem:[#allocation2 + $0x14] sm:$0xf0]  ;;  %v2158_v5 = vld [vmem:[#allocation2 + $0x18] sm:$0xf0]  ;;  %v471_v46 = vmul.f32 256.0, %v2456_v45  ;;  %vm475_vm13 = vweird.f32 %v2456_v45 }
 0x131   : > { %v2157_v6 = vor.u32 %v2376_v4, %v2156_v63  ;;  %v2161_v7 = vor.u32 %v2375_v2, %v2158_v5 }
 0x132   : > { %v266_v9 = vpop.permute.xlu1 %265  ;;  %v472_v47 = vsub.f32 1.0, %v471_v46 }
 0x133   : > { %v268_v12 = vsel %vm267_vm11, %v264_v8, %v266_v9  ;;  %v269_v13 = vsel %vm267_vm11, %v266_v9, %v264_v8  ;;  %447 = vmatpush.bf16.msra.mxu2 %v2157_v6  ;;  %460 = vmatpush.bf16.msra.mxu3 %v2161_v7 }
 0x134   : > { %v275_v14 = vmul.f32 %v2730_v60, %v269_v13  ;;  %v276_v15 = vmul.f32 %v2732_v3, %v268_v12  ;;  %v473_v50 = vmul.f32 %v2456_v45, %v472_v47 }
 0x136   : > { %v277_v19 = vpack.c.bf16 %v276_v15, %v275_v14  ;;  %v474_v51 = vadd.f32 %v2456_v45, %v473_v50 }
 0x137   : > { %v2148_v20 = vld [vmem:[#allocation2] sm:$0xf]  ;;  %v2373_v27 = vld [vmem:[#allocation2 + $0x4] sm:$0xf] }
 0x138   : > { %278 = vst [vmem:[#allocation2 + $0x8] sm:$0xff] %v277_v19  ;;  %v2749_v52 = vsel %vm475_vm13, %v2456_v45, %v474_v51 }
 0x13f   : > { %v2374_v21 = vld [vmem:[#allocation2 + $0x4] sm:$0xf0]  ;;  %v2150_v28 = vld [vmem:[#allocation2 + $0x8] sm:$0xf0] }
 0x140   : > { %v2149_v29 = vor.u32 %v2374_v21, %v2148_v20  ;;  %v2153_v30 = vor.u32 %v2373_v27, %v2150_v28 }
 0x142   : > { %448 = vmatpush.bf16.msra.mxu2 %v2149_v29  ;;  %461 = vmatpush.bf16.msra.mxu3 %v2153_v30  ;;  %v775_v29 = vadd.f32 %v2585_v17, %v2583_v16  ;;  %v779_v30 = vmax.f32 %v2583_v16, %v2585_v17 }
 0x145   : > { %2178 = vmatmul.msk.bf16.vlgmr.msra.gmra.mxu2 %vm3415_vm12, %v2743_v31  ;;  %2179 = vmatmul.msk.bf16.vlgmr.msra.gmra.mxu3 %vm3415_vm12, %v2743_v31 }
 0x1c8   : > { %v450_v32 = vpop.f32.mrf.mxu2  ;;  %v463_v33 = vpop.f32.mrf.mxu3 }
 0x1c9   : > { %v467_v34 = vadd.f32 %v463_v33, %v450_v32  ;;  %v478_v35 = vmul.f32 %v450_v32, %v450_v32  ;;  %v479_v36 = vmul.f32 %v463_v33, %v463_v33 }
 0x1cb   : > { %468 = vadd.xlane.f32.xlu2 %v467_v34  ;;  %v480_v41 = vadd.f32 %v479_v36, %v478_v35 }
 0x1cd   : > { %481 = vadd.xlane.f32.xlu0 %v480_v41 }
 0x1d0   : > { %v452_v42 = vpop.f32.mrf.mxu2  ;;  %v465_v43 = vpop.f32.mrf.mxu3 }
 0x23e   : > { %v469_v53 = vpop.xlane.xlu2 %468 }
 0x23f   : > { %v477_v54 = vmul.f32 %v2749_v52, %v469_v53 }
 0x240   : > { %v482_v55 = vpop.xlane.xlu0 %481 }
 0x241   : > { %v483_v56 = vmul.f32 %v482_v55, %v2749_v52  ;;  %v484_v57 = vmul.f32 %v477_v54, %v477_v54  ;;  %v487_v9 = vsub.f32 %v450_v32, %v477_v54  ;;  %v488_v12 = vsub.f32 %v463_v33, %v477_v54 }
 0x243   : > { %v485_v58 = vsub.f32 %v483_v56, %v484_v57 }
 0x245   : > { %v486_v59 = vmax.f32 %v485_v58, 0.0 }
 0x247   : > { %v489_v63 = vadd.f32 1e-05, %v486_v59 }
 0x249   : > { %2457 = vrsqrt.f32 %v489_v63  ;;  %vm496_vm15 = vweird.f32 %v489_v63 }
 0x24f   : > { %v2458_v2 = vpop.eup %2457 }
 0x250   : > { %v491_v4 = vmul.f32 %v2458_v2, %v489_v63  ;;  %vm497_vm14 = vweird.f32 %v2458_v2 }
 0x251   : > { %vm498_vm2 = vmor %vm496_vm15, %vm497_vm14  ;;  %vm782_vm14 = vcmp.eq.s32.totalorder %v2624_v23, 0  ;;  %v2508_v23 = vld [vmem:[%s3412_s1 + $0x10] sm:$0xf] }
 0x252   : > { %v492_v5 = vmul.f32 %v2458_v2, %v491_v4 }
 0x254   : > { %v493_v6 = vmul.f32 0.5, %v492_v5 }
 0x256   : > { %v494_v7 = vsub.f32 1.5, %v493_v6 }
 0x258   : > { %v495_v8 = vmul.f32 %v2458_v2, %v494_v7 }
 0x25a   : > { %v499_v13 = vsel %vm498_vm2, %v2458_v2, %v495_v8 }
 0x25b   : > { %v500_v14 = vmul.f32 %v499_v13, %v487_v9  ;;  %v501_v15 = vmul.f32 %v499_v13, %v488_v12 }
 0x25d   : > { %vm502_vm3 = vcmp.ge.f32.partialorder %v500_v14, 0.0  ;;  %vm503_vm13 = vcmp.ge.f32.partialorder %v501_v15, 0.0  ;;  %v504_v19 = vmul.f32 0.01, %v500_v14  ;;  %v505_v20 = vmul.f32 0.01, %v501_v15 }
 0x25f   : > { %v506_v21 = vsel %vm502_vm3, %v500_v14, %v504_v19  ;;  %v507_v27 = vsel %vm503_vm13, %v501_v15, %v505_v20 }
 0x260   : > { %v548_v28 = vpack.c.bf16 %v507_v27, %v506_v21  ;;  %552 = vrot.lane.b32.xlu0 %v507_v27, %s2521_s25  ;;  %572 = vrot.lane.b32.xlu2 %v507_v27, %s2520_s24 }
 0x261   : > { %580 = vrot.lane.b32.xlu1 %v506_v21, %s2519_s23 }
 0x262   : > { %549 = vst [vmem:[#allocation2 + $0x20] sm:$0xff] %v548_v28 }
 0x268   : > { %540 = vrot.lane.b32.xlu0 %v507_v27, %s2523_s27  ;;  %538 = vrot.lane.b32.xlu2 %v506_v21, %s2523_s27 }
 0x269   : > { %582 = vrot.lane.b32.xlu1 %v507_v27, %s2519_s23 }
 0x270   : > { %518 = vrot.lane.b32.xlu0 %v506_v21, %s2525_s29  ;;  %510 = vrot.lane.b32.xlu2 %v507_v27, %s2524_s28 }
 0x271   : > { %560 = vrot.lane.b32.xlu1 %v506_v21, %s2518_s22 }
 0x279   : > { %562 = vrot.lane.b32.xlu1 %v507_v27, %s2518_s22 }
 0x281   : > { %570 = vrot.lane.b32.xlu1 %v506_v21, %s2520_s24 }
 0x289   : > { %550 = vrot.lane.b32.xlu1 %v506_v21, %s2521_s25 }
 0x291   : > { %528 = vrot.lane.b32.xlu1 %v506_v21, %s2522_s26 }
 0x299   : > { %530 = vrot.lane.b32.xlu1 %v507_v27, %s2522_s26  ;;  %776 = vadd.xlane.f32.xlu2 %v775_v29 }
 0x29a   : > { %780 = vmax.xlane.f32.xlu0 %v779_v30 }
 0x2a1   : > { %508 = vrot.lane.b32.xlu1 %v506_v21, %s2524_s28 }
 0x2a9   : > { %520 = vrot.lane.b32.xlu1 %v507_v27, %s2525_s29 }
 0x2ba   : > { %v573_v32 = vpop.permute.xlu2 %572 }
 0x2c2   : > { %v539_v35 = vpop.permute.xlu2 %538 }
 0x2d2   : > { %v553_v33 = vpop.permute.xlu0 %552 }
 0x2d3   : > { %v581_v34 = vpop.permute.xlu1 %580 }
 0x2da   : > { %v541_v36 = vpop.permute.xlu0 %540 }
 0x2db   : > { %v542_v41 = vsel %vm299_vm9, %v539_v35, %v541_v36  ;;  %v543_v42 = vsel %vm299_vm9, %v541_v36, %v539_v35  ;;  %v583_v43 = vpop.permute.xlu1 %582 }
 0x2dc   : > { %v544_v44 = vmul.f32 %v543_v42, %v2696_v22  ;;  %v545_v45 = vmul.f32 %v542_v41, %v2698_v24  ;;  %v584_v46 = vsel %vm365_vm4, %v581_v34, %v583_v43  ;;  %v585_v47 = vsel %vm365_vm4, %v583_v43, %v581_v34 }
 0x2dd   : > { %v586_v50 = vmul.f32 %v584_v46, %v2630_v25  ;;  %v587_v51 = vmul.f32 %v585_v47, %v2632_v26  ;;  %v2198_v47 = vld [vmem:[#allocation2 + $0x20] sm:$0xf] }
 0x2de   : > { %v546_v53 = vpack.c.bf16 %v545_v45, %v544_v44  ;;  %v511_v45 = vpop.permute.xlu2 %510 }
 0x2df   : > { %v588_v54 = vpack.c.bf16 %v587_v51, %v586_v50 }
 0x2e0   : > { %547 = vst [vmem:[#allocation2 + $0x18] sm:$0xff] %v546_v53 }
 0x2e1   : > { %v624_v55 = vunpack.c.l.b16 %v588_v54  ;;  %v625_v56 = vunpack.c.h.b16 %v588_v54 }
 0x2e2   : > { %v519_v46 = vpop.permute.xlu0 %518 }
 0x2e3   : > { %v561_v57 = vpop.permute.xlu1 %560  ;;  %v634_v58 = vpack.c.b16 %v624_v55, %v624_v55  ;;  %v635_v59 = vpack.c.b16 %v625_v56, %v625_v56 }
 0x2e5   : > { %v648_v63 = vsel %vm208_vm0, %v634_v58, 0  ;;  %v651_v2 = vsel %vm208_vm0, %v635_v59, 0 }
 0x2e6   : > { %656 = vmatpush.bf16.msrb.mxu0 %v648_v63  ;;  %669 = vmatpush.bf16.msrb.mxu1 %v651_v2 }
 0x2eb   : > { %v563_v4 = vpop.permute.xlu1 %562 }
 0x2ec   : > { %v564_v5 = vsel %vm333_vm5, %v561_v57, %v563_v4  ;;  %v565_v6 = vsel %vm333_vm5, %v563_v4, %v561_v57 }
 0x2ed   : > { %v566_v7 = vmul.f32 %v564_v5, %v2647_v37  ;;  %v567_v8 = vmul.f32 %v565_v6, %v2649_v38 }
 0x2ef   : > { %v568_v9 = vpack.c.bf16 %v567_v8, %v566_v7 }
 0x2f1   : > { %569 = vst [vmem:[#allocation2 + $0x30] sm:$0xff] %v568_v9 }
 0x2f3   : > { %v571_v12 = vpop.permute.xlu1 %570 }
 0x2f4   : > { %v574_v13 = vsel %vm349_vm6, %v571_v12, %v573_v32  ;;  %v575_v14 = vsel %vm349_vm6, %v573_v32, %v571_v12 }
 0x2f5   : > { %v576_v15 = vmul.f32 %v574_v13, %v2652_v39  ;;  %v577_v19 = vmul.f32 %v575_v14, %v2654_v40 }
 0x2f7   : > { %v578_v20 = vpack.c.bf16 %v577_v19, %v576_v15 }
 0x2f8   : > { %v2206_v35 = vld [vmem:[#allocation2 + $0x30] sm:$0xf]  ;;  %v2387_v36 = vld [vmem:[#allocation2 + $0x34] sm:$0xf] }
 0x2f9   : > { %579 = vst [vmem:[#allocation2 + $0x38] sm:$0xff] %v578_v20  ;;  %v2384_v20 = vld [vmem:[#allocation2 + $0x14] sm:$0xf0] }
 0x2fb   : > { %v551_v21 = vpop.permute.xlu1 %550 }
 0x2fc   : > { %v554_v27 = vsel %vm317_vm7, %v551_v21, %v553_v33  ;;  %v555_v28 = vsel %vm317_vm7, %v553_v33, %v551_v21  ;;  %v2385_v33 = vld [vmem:[#allocation2 + $0x24] sm:$0xf] }
 0x2fd   : > { %v556_v29 = vmul.f32 %v554_v27, %v2674_v61  ;;  %v557_v30 = vmul.f32 %v555_v28, %v2676_v62  ;;  %v2192_v28 = vld [vmem:[#allocation2 + $0x18] sm:$0xf0] }
 0x2ff   : > { %v558_v34 = vpack.c.bf16 %v557_v30, %v556_v29 }
 0x300   : > { %v2388_v32 = vld [vmem:[#allocation2 + $0x34] sm:$0xf0]  ;;  %v2208_v41 = vld [vmem:[#allocation2 + $0x38] sm:$0xf0] }
 0x301   : > { %559 = vst [vmem:[#allocation2 + $0x28] sm:$0xff] %v558_v34  ;;  %v2207_v42 = vor.u32 %v2388_v32, %v2206_v35  ;;  %v2211_v43 = vor.u32 %v2387_v36, %v2208_v41 }
 0x303   : > { %657 = vmatpush.bf16.msrb.mxu0 %v2207_v42  ;;  %670 = vmatpush.bf16.msrb.mxu1 %v2211_v43  ;;  %v529_v44 = vpop.permute.xlu1 %528  ;;  %v2831_v42 = vld [vmem:[%s3412_s1 + $0x14] sm:$0xf] }
 0x308   : > { %v2386_v50 = vld [vmem:[#allocation2 + $0x24] sm:$0xf0]  ;;  %v2200_v51 = vld [vmem:[#allocation2 + $0x28] sm:$0xf0] }
 0x309   : > { %v2199_v53 = vor.u32 %v2386_v50, %v2198_v47  ;;  %v2203_v54 = vor.u32 %v2385_v33, %v2200_v51 }
 0x30b   : > { %v531_v55 = vpop.permute.xlu1 %530  ;;  %658 = vmatpush.bf16.msrb.mxu0 %v2199_v53  ;;  %671 = vmatpush.bf16.msrb.mxu1 %v2203_v54 }
 0x30c   : > { %v532_v56 = vsel %vm283_vm8, %v529_v44, %v531_v55  ;;  %v533_v57 = vsel %vm283_vm8, %v531_v55, %v529_v44  ;;  %v777_v58 = vpop.xlane.xlu2 %776  ;;  %v2527_v44 = vmov 1  }
 0x30d   : > { %v534_v59 = vmul.f32 %v533_v57, %v2691_v10  ;;  %v535_v63 = vmul.f32 %v532_v56, %v2693_v11  ;;  %v778_v2 = vmul.f32 %v777_v58, %v2749_v52  ;;  %v781_v4 = vpop.xlane.xlu0 %780  ;;  %2446 = vset.pattern.permute.xlu1 %v2527_v44 }
 0x30e   : > { %877 = vperm.xlu1 %2446, %v2565_v1  }
 0x30f   : > { %v536_v5 = vpack.c.bf16 %v535_v63, %v534_v59  ;;  %v785_v6 = vsel %vm782_vm14, %v778_v2, %v781_v4  ;;  %v2843_v59 = vld [vmem:[%s3412_s1 + $0x10] sm:$0xf]  ;;  %v2528_v63 = vmov 3  }
 0x310   : > { %v786_v7 = vpack.c.bf16 %v785_v6, %v785_v6 }
 0x311   : > { %537 = vst [vmem:[#allocation2 + $0x10] sm:$0xff] %v536_v5 }
 0x312   : > { %v795_v8 = vsel %vm208_vm0, %v786_v7, 0 }
 0x313   : > { %v509_v9 = vpop.permute.xlu1 %508  ;;  %804 = vmatpush.bf16.msrb.mxu2 %v795_v8 }
 0x314   : > { %v512_v12 = vsel %vm251_vm10, %v509_v9, %v511_v45  ;;  %v513_v13 = vsel %vm251_vm10, %v511_v45, %v509_v9  ;;  %v881_v45 = vunpack.c.l.b16 %v2593_v18 }
 0x315   : > { %v514_v14 = vmul.f32 %v513_v13, %v2716_v48  ;;  %v515_v15 = vmul.f32 %v512_v12, %v2718_v49 }
 0x316   : > { %2216 = vmatmul.msk.bf16.vlgmr.msrb.gmra.mxu2 %vm204_vm1, %v2831_v42  ;;  %v883_v50 = vpack.c.b16 %v881_v45, %v881_v45  ;;  %2447 = vset.pattern.permute.xlu1 %v2528_v63 }
 0x317   : > { %v516_v19 = vpack.c.bf16 %v515_v15, %v514_v14  ;;  %788 = vperm.xlu1 %2447, %v2565_v1  }
 0x318   : > { %v2190_v21 = vld [vmem:[#allocation2 + $0x10] sm:$0xf]  ;;  %v2383_v27 = vld [vmem:[#allocation2 + $0x14] sm:$0xf]  ;;  %v889_v57 = vsel %vm208_vm0, %v883_v50, 0 }
 0x319   : > { %517 = vst [vmem:[#allocation2] sm:$0xff] %v516_v19  ;;  %v2191_v29 = vor.u32 %v2384_v20, %v2190_v21  ;;  %v2195_v30 = vor.u32 %v2383_v27, %v2192_v28 }
 0x31b   : > { %v521_v34 = vpop.permute.xlu1 %520  ;;  %659 = vmatpush.bf16.msrb.mxu0 %v2191_v29  ;;  %672 = vmatpush.bf16.msrb.mxu1 %v2195_v30 }
 0x31c   : > { %v522_v35 = vsel %vm267_vm11, %v519_v46, %v521_v34  ;;  %v523_v32 = vsel %vm267_vm11, %v521_v34, %v519_v46  ;;  %v882_v46 = vunpack.c.h.b16 %v2593_v18  ;;  %v875_v18 = vld [vmem:[%s3412_s1 + $0x4] sm:$0xf] }
 0x31d   : > { %v524_v36 = vmul.f32 %v523_v32, %v2730_v60  ;;  %v525_v41 = vmul.f32 %v522_v35, %v2732_v3 }
 0x31e   : > { %v884_v33 = vpack.c.b16 %v882_v46, %v882_v46 }
 0x31f   : > { %v526_v43 = vpack.c.bf16 %v525_v41, %v524_v36 }
 0x320   : > { %v2182_v47 = vld [vmem:[#allocation2] sm:$0xf]  ;;  %v2381_v53 = vld [vmem:[#allocation2 + $0x4] sm:$0xf]  ;;  %v892_v58 = vsel %vm208_vm0, %v884_v33, 0 }
 0x321   : > { %527 = vst [vmem:[#allocation2 + $0x8] sm:$0xff] %v526_v43 }
 0x328   : > { %v2382_v51 = vld [vmem:[#allocation2 + $0x4] sm:$0xf0]  ;;  %v2184_v54 = vld [vmem:[#allocation2 + $0x8] sm:$0xf0] }
 0x329   : > { %v2183_v55 = vor.u32 %v2382_v51, %v2182_v47  ;;  %v2187_v56 = vor.u32 %v2381_v53, %v2184_v54 }
 0x32b   : > { %660 = vmatpush.bf16.msrb.mxu0 %v2183_v55  ;;  %673 = vmatpush.bf16.msrb.mxu1 %v2187_v56 }
 0x32e   : > { %2212 = vmatmul.msk.bf16.vlgmr.msrb.gmra.mxu0 %vm3415_vm12, %v2843_v59  ;;  %2213 = vmatmul.msk.bf16.vlgmr.msrb.gmra.mxu1 %vm3415_vm12, %v2843_v59 }
 0x32f   : > { %901 = vmatpush.bf16.msra.mxu0 %v889_v57  ;;  %914 = vmatpush.bf16.msra.mxu1 %v892_v58 }
 0x33e   : > { %2219 = vmatmul.msk.bf16.vlgmr.msra.gmra.mxu0 %vm204_vm1, %v875_v18  ;;  %2220 = vmatmul.msk.bf16.vlgmr.msra.gmra.mxu1 %vm204_vm1, %v875_v18 }
 0x380   : > { %v878_v7 = vpop.permute.xlu1 %877 }
 0x389   : > { %v2900_v29 = vpop.permute.xlu1 %788 }
 0x399   : > { %v806_v28 = vpop.f32.mrf.mxu2 }
 0x39a   : > { %v807_v30 = vadd.f32 %v806_v28, %v2900_v29 }
 0x39c   : > { %vm810_vm3 = vcmp.ge.f32.partialorder %v807_v30, 0.0  ;;  %v811_v34 = vmul.f32 0.01, %v807_v30 }
 0x39e   : > { %v812_v32 = vsel %vm810_vm3, %v807_v30, %v811_v34 }
 0x39f   : > { %v813_v36 = vpack.c.bf16 %v812_v32, %v812_v32 }
 0x3a1   : > { %v808_v35 = vpop.f32.mrf.mxu2  ;;  %v822_v41 = vsel %vm208_vm0, %v813_v36, 0 }
 0x3a2   : > { %831 = vmatpush.bf16.msrb.mxu3 %v822_v41  ;;  %v2927_v35 = vld [vmem:[%s3412_s1 + $0x18] sm:$0xf] }
 0x3a5   : > { %2217 = vmatmul.msk.bf16.vlgmr.msrb.gmra.mxu3 %vm204_vm1, %v2927_v35 }
 0x3ab   : > { %v2855_v2 = vpop.f32.mrf.mxu0  ;;  %v2857_v4 = vpop.f32.mrf.mxu1 }
 0x3b3   : > { %v664_v5 = vpop.f32.mrf.mxu0  ;;  %v677_v6 = vpop.f32.mrf.mxu1 }
 0x3bb   : > { %v903_v8 = vpop.f32.mrf.mxu0  ;;  %v916_v9 = vpop.f32.mrf.mxu1 }
 0x3bc   : > { %v904_v12 = vadd.f32 %v903_v8, %v878_v7  ;;  %v917_v13 = vadd.f32 %v916_v9, %v878_v7 }
 0x3be   : > { %vm920_vm15 = vcmp.ge.f32.partialorder %v904_v12, 0.0  ;;  %v922_v14 = vmul.f32 0.01, %v904_v12  ;;  %vm921_vm2 = vcmp.ge.f32.partialorder %v917_v13, 0.0  ;;  %v923_v15 = vmul.f32 0.01, %v917_v13 }
 0x3c0   : > { %v2859_v19 = vsel %vm920_vm15, %v904_v12, %v922_v14  ;;  %v2861_v20 = vsel %vm921_vm2, %v917_v13, %v923_v15 }
 0x3c1   : > { %v2865_v1 = vpack.c.bf16 %v2861_v20, %v2859_v19  ;;  %988 = vrot.lane.b32.xlu2 %v2859_v19, %s2520_s24  ;;  %998 = vrot.lane.b32.xlu1 %v2859_v19, %s2519_s23 }
 0x3c2   : > { %990 = vrot.lane.b32.xlu0 %v2861_v20, %s2520_s24 }
 0x3c3   : > { %967 = vst [vmem:[#allocation2 + $0x20] sm:$0xff] %v2865_v1  ;;  %v905_v21 = vpop.f32.mrf.mxu0  ;;  %v918_v27 = vpop.f32.mrf.mxu1 }
 0x3c9   : > { %946 = vrot.lane.b32.xlu2 %v2859_v19, %s2522_s26  ;;  %1000 = vrot.lane.b32.xlu1 %v2861_v20, %s2519_s23 }
 0x3ca   : > { %948 = vrot.lane.b32.xlu0 %v2861_v20, %s2522_s26 }
 0x3d1   : > { %958 = vrot.lane.b32.xlu2 %v2861_v20, %s2523_s27  ;;  %978 = vrot.lane.b32.xlu1 %v2859_v19, %s2518_s22 }
 0x3d2   : > { %926 = vrot.lane.b32.xlu0 %v2859_v19, %s2524_s28 }
 0x3d9   : > { %936 = vrot.lane.b32.xlu2 %v2859_v19, %s2525_s29  ;;  %980 = vrot.lane.b32.xlu1 %v2861_v20, %s2518_s22 }
 0x3da   : > { %938 = vrot.lane.b32.xlu0 %v2861_v20, %s2525_s29 }
 0x3e1   : > { %968 = vrot.lane.b32.xlu1 %v2859_v19, %s2521_s25 }
 0x3e9   : > { %970 = vrot.lane.b32.xlu1 %v2861_v20, %s2521_s25 }
 0x3f1   : > { %956 = vrot.lane.b32.xlu1 %v2859_v19, %s2523_s27 }
 0x3f9   : > { %928 = vrot.lane.b32.xlu1 %v2861_v20, %s2524_s28 }
 0x41b   : > { %v989_v43 = vpop.permute.xlu2 %988 }
 0x423   : > { %v947_v51 = vpop.permute.xlu2 %946 }
 0x42b   : > { %v959_v14 = vpop.permute.xlu2 %958 }
 0x433   : > { %v999_v44 = vpop.permute.xlu1 %998  ;;  %v937_v36 = vpop.permute.xlu2 %936 }
 0x434   : > { %v991_v45 = vpop.permute.xlu0 %990 }
 0x435   : > { %v992_v46 = vsel %vm349_vm6, %v989_v43, %v991_v45  ;;  %v993_v47 = vsel %vm349_vm6, %v991_v45, %v989_v43 }
 0x436   : > { %v994_v50 = vmul.f32 %v992_v46, %v2652_v39  ;;  %v995_v33 = vmul.f32 %v993_v47, %v2654_v40 }
 0x438   : > { %v996_v53 = vpack.c.bf16 %v995_v33, %v994_v50 }
 0x43a   : > { %997 = vst [vmem:[#allocation2 + $0x38] sm:$0xff] %v996_v53 }
 0x43b   : > { %v1001_v54 = vpop.permute.xlu1 %1000 }
 0x43c   : > { %v949_v55 = vpop.permute.xlu0 %948  ;;  %v1002_v56 = vsel %vm365_vm4, %v999_v44, %v1001_v54  ;;  %v1003_v57 = vsel %vm365_vm4, %v1001_v54, %v999_v44 }
 0x43d   : > { %v950_v58 = vsel %vm283_vm8, %v947_v51, %v949_v55  ;;  %v951_v18 = vsel %vm283_vm8, %v949_v55, %v947_v51  ;;  %v1004_v63 = vmul.f32 %v1002_v56, %v2630_v25  ;;  %v1005_v5 = vmul.f32 %v1003_v57, %v2632_v26 }
 0x43e   : > { %v952_v6 = vmul.f32 %v951_v18, %v2691_v10  ;;  %v953_v7 = vmul.f32 %v950_v58, %v2693_v11 }
 0x43f   : > { %v1006_v8 = vpack.c.bf16 %v1005_v5, %v1004_v63 }
 0x440   : > { %v954_v9 = vpack.c.bf16 %v953_v7, %v952_v6 }
 0x441   : > { %v1042_v12 = vunpack.c.l.b16 %v1006_v8  ;;  %v1043_v13 = vunpack.c.h.b16 %v1006_v8  ;;  %v2396_v56 = vld [vmem:[#allocation2 + $0x34] sm:$0xf0]  ;;  %v2249_v18 = vld [vmem:[#allocation2 + $0x38] sm:$0xf0] }
 0x442   : > { %955 = vst [vmem:[#allocation2 + $0x10] sm:$0xff] %v954_v9 }
 0x443   : > { %v979_v15 = vpop.permute.xlu1 %978  ;;  %v1052_v21 = vpack.c.b16 %v1042_v12, %v1042_v12  ;;  %v1053_v27 = vpack.c.b16 %v1043_v13, %v1043_v13 }
 0x444   : > { %v927_v28 = vpop.permute.xlu0 %926 }
 0x445   : > { %v1063_v30 = vsel %vm208_vm0, %v1052_v21, 0  ;;  %v1066_v34 = vsel %vm208_vm0, %v1053_v27, 0 }
 0x446   : > { %1071 = vmatpush.bf16.msra.mxu2 %v1063_v30  ;;  %1084 = vmatpush.bf16.msra.mxu3 %v1066_v34 }
 0x44b   : > { %v981_v32 = vpop.permute.xlu1 %980 }
 0x44c   : > { %v939_v41 = vpop.permute.xlu0 %938  ;;  %v982_v43 = vsel %vm333_vm5, %v979_v15, %v981_v32  ;;  %v983_v44 = vsel %vm333_vm5, %v981_v32, %v979_v15 }
 0x44d   : > { %v940_v45 = vsel %vm267_vm11, %v937_v36, %v939_v41  ;;  %v941_v46 = vsel %vm267_vm11, %v939_v41, %v937_v36  ;;  %v984_v47 = vmul.f32 %v982_v43, %v2647_v37  ;;  %v985_v50 = vmul.f32 %v983_v44, %v2649_v38  ;;  %v2239_v36 = vld [vmem:[#allocation2 + $0x20] sm:$0xf]  ;;  %v2393_v43 = vld [vmem:[#allocation2 + $0x24] sm:$0xf] }
 0x44e   : > { %v942_v33 = vmul.f32 %v941_v46, %v2730_v60  ;;  %v943_v51 = vmul.f32 %v940_v45, %v2732_v3 }
 0x44f   : > { %v986_v53 = vpack.c.bf16 %v985_v50, %v984_v47 }
 0x450   : > { %v944_v54 = vpack.c.bf16 %v943_v51, %v942_v33 }
 0x451   : > { %987 = vst [vmem:[#allocation2 + $0x30] sm:$0xff] %v986_v53 }
 0x452   : > { %945 = vst [vmem:[#allocation2 + $0x8] sm:$0xff] %v944_v54  ;;  %v2231_v54 = vld [vmem:[#allocation2 + $0x10] sm:$0xf] }
 0x453   : > { %v969_v55 = vpop.permute.xlu1 %968 }
 0x458   : > { %v2247_v57 = vld [vmem:[#allocation2 + $0x30] sm:$0xf]  ;;  %v2395_v58 = vld [vmem:[#allocation2 + $0x34] sm:$0xf] }
 0x459   : > { %v2248_v63 = vor.u32 %v2396_v56, %v2247_v57  ;;  %v2252_v5 = vor.u32 %v2395_v58, %v2249_v18  ;;  %v2391_v56 = vld [vmem:[#allocation2 + $0x14] sm:$0xf] }
 0x45b   : > { %1072 = vmatpush.bf16.msra.mxu2 %v2248_v63  ;;  %1085 = vmatpush.bf16.msra.mxu3 %v2252_v5  ;;  %v971_v6 = vpop.permute.xlu1 %970  ;;  %v2390_v63 = vld [vmem:[#allocation2 + $0x4] sm:$0xf0] }
 0x45c   : > { %v972_v7 = vsel %vm317_vm7, %v969_v55, %v971_v6  ;;  %v973_v8 = vsel %vm317_vm7, %v971_v6, %v969_v55 }
 0x45d   : > { %v974_v9 = vmul.f32 %v972_v7, %v2674_v61  ;;  %v975_v12 = vmul.f32 %v973_v8, %v2676_v62  ;;  %v2225_v7 = vld [vmem:[#allocation2 + $0x8] sm:$0xf0] }
 0x45f   : > { %v976_v13 = vpack.c.bf16 %v975_v12, %v974_v9  ;;  %v2965_v9 = vpop.f32.mrf.mxu3 }
 0x461   : > { %977 = vst [vmem:[#allocation2 + $0x28] sm:$0xff] %v976_v13 }
 0x463   : > { %v957_v15 = vpop.permute.xlu1 %956 }
 0x464   : > { %v960_v21 = vsel %vm299_vm9, %v957_v15, %v959_v14  ;;  %v961_v27 = vsel %vm299_vm9, %v959_v14, %v957_v15 }
 0x465   : > { %v962_v30 = vmul.f32 %v961_v27, %v2696_v22  ;;  %v963_v34 = vmul.f32 %v960_v21, %v2698_v24 }
 0x467   : > { %v964_v32 = vpack.c.bf16 %v963_v34, %v962_v30  ;;  %v835_v12 = vpop.f32.mrf.mxu3 }
 0x468   : > { %v2394_v41 = vld [vmem:[#allocation2 + $0x24] sm:$0xf0]  ;;  %v2241_v44 = vld [vmem:[#allocation2 + $0x28] sm:$0xf0]  ;;  %v1388_v12 = vmax.f32 %v2859_v19, %v2861_v20 }
 0x469   : > { %965 = vst [vmem:[#allocation2 + $0x18] sm:$0xff] %v964_v32  ;;  %v2240_v45 = vor.u32 %v2394_v41, %v2239_v36  ;;  %v2244_v46 = vor.u32 %v2393_v43, %v2241_v44 }
 0x46b   : > { %v929_v47 = vpop.permute.xlu1 %928  ;;  %1073 = vmatpush.bf16.msra.mxu2 %v2240_v45  ;;  %1086 = vmatpush.bf16.msra.mxu3 %v2244_v46 }
 0x46c   : > { %v930_v50 = vsel %vm251_vm10, %v927_v28, %v929_v47  ;;  %v931_v14 = vsel %vm251_vm10, %v929_v47, %v927_v28 }
 0x46d   : > { %v932_v33 = vmul.f32 %v931_v14, %v2716_v48  ;;  %v933_v51 = vmul.f32 %v930_v50, %v2718_v49 }
 0x46f   : > { %v934_v53 = vpack.c.bf16 %v933_v51, %v932_v33 }
 0x470   : > { %v2392_v55 = vld [vmem:[#allocation2 + $0x14] sm:$0xf0]  ;;  %v2233_v57 = vld [vmem:[#allocation2 + $0x18] sm:$0xf0] }
 0x471   : > { %935 = vst [vmem:[#allocation2] sm:$0xff] %v934_v53  ;;  %v2232_v58 = vor.u32 %v2392_v55, %v2231_v54  ;;  %v2236_v18 = vor.u32 %v2391_v56, %v2233_v57 }
 0x473   : > { %1074 = vmatpush.bf16.msra.mxu2 %v2232_v58  ;;  %1087 = vmatpush.bf16.msra.mxu3 %v2236_v18 }
 0x478   : > { %v2223_v5 = vld [vmem:[#allocation2] sm:$0xf]  ;;  %v2389_v6 = vld [vmem:[#allocation2 + $0x4] sm:$0xf] }
 0x479   : > { %v2224_v8 = vor.u32 %v2390_v63, %v2223_v5  ;;  %v2228_v28 = vor.u32 %v2389_v6, %v2225_v7 }
 0x47b   : > { %1075 = vmatpush.bf16.msra.mxu2 %v2224_v8  ;;  %1088 = vmatpush.bf16.msra.mxu3 %v2228_v28 }
 0x47e   : > { %2253 = vmatmul.msk.bf16.vlgmr.msra.gmra.mxu2 %vm3415_vm12, %v2743_v31  ;;  %2254 = vmatmul.msk.bf16.vlgmr.msra.gmra.mxu3 %vm3415_vm12, %v2743_v31 }
 0x501   : > { %v1077_v13 = vpop.f32.mrf.mxu2  ;;  %v1090_v15 = vpop.f32.mrf.mxu3 }
 0x502   : > { %v1094_v21 = vadd.f32 %v1090_v15, %v1077_v13  ;;  %v1098_v27 = vmul.f32 %v1077_v13, %v1077_v13  ;;  %v1099_v30 = vmul.f32 %v1090_v15, %v1090_v15 }
 0x504   : > { %1095 = vadd.xlane.f32.xlu1 %v1094_v21  ;;  %v1100_v34 = vadd.f32 %v1099_v30, %v1098_v27 }
 0x506   : > { %1101 = vadd.xlane.f32.xlu2 %v1100_v34 }
 0x509   : > { %v1079_v32 = vpop.f32.mrf.mxu2  ;;  %v1092_v36 = vpop.f32.mrf.mxu3 }
 0x577   : > { %v1096_v41 = vpop.xlane.xlu1 %1095 }
 0x578   : > { %v1097_v43 = vmul.f32 %v1096_v41, %v2749_v52 }
 0x579   : > { %v1102_v44 = vpop.xlane.xlu2 %1101 }
 0x57a   : > { %v1103_v45 = vmul.f32 %v1102_v44, %v2749_v52  ;;  %v1104_v31 = vmul.f32 %v1097_v43, %v1097_v43  ;;  %v1107_v56 = vsub.f32 %v1077_v13, %v1097_v43  ;;  %v1108_v57 = vsub.f32 %v1090_v15, %v1097_v43 }
 0x57b   : > { %v1384_v13 = vadd.f32 %v2861_v20, %v2859_v19 }
 0x57c   : > { %v1105_v46 = vsub.f32 %v1103_v45, %v1104_v31 }
 0x57e   : > { %v1106_v47 = vmax.f32 %v1105_v46, 0.0 }
 0x580   : > { %v1109_v50 = vadd.f32 1e-05, %v1106_v47 }
 0x582   : > { %2459 = vrsqrt.f32 %v1109_v50  ;;  %vm1116_vm15 = vweird.f32 %v1109_v50 }
 0x588   : > { %v2460_v14 = vpop.eup %2459 }
 0x589   : > { %v1111_v33 = vmul.f32 %v2460_v14, %v1109_v50  ;;  %vm1117_vm13 = vweird.f32 %v2460_v14 }
 0x58a   : > { %vm1118_vm2 = vmor %vm1116_vm15, %vm1117_vm13 }
 0x58b   : > { %v1112_v51 = vmul.f32 %v2460_v14, %v1111_v33 }
 0x58d   : > { %v1113_v53 = vmul.f32 0.5, %v1112_v51 }
 0x58f   : > { %v1114_v54 = vsub.f32 1.5, %v1113_v53 }
 0x591   : > { %v1115_v55 = vmul.f32 %v2460_v14, %v1114_v54 }
 0x593   : > { %v1119_v58 = vsel %vm1118_vm2, %v2460_v14, %v1115_v55 }
 0x594   : > { %v1120_v18 = vmul.f32 %v1119_v58, %v1107_v56  ;;  %v1121_v63 = vmul.f32 %v1119_v58, %v1108_v57 }
 0x596   : > { %vm1122_vm3 = vcmp.ge.f32.partialorder %v1120_v18, 0.0  ;;  %vm1123_vm12 = vcmp.ge.f32.partialorder %v1121_v63, 0.0  ;;  %v1124_v5 = vmul.f32 0.01, %v1120_v18  ;;  %v1125_v6 = vmul.f32 0.01, %v1121_v63 }
 0x598   : > { %v1126_v7 = vsel %vm1122_vm3, %v1120_v18, %v1124_v5  ;;  %v1127_v8 = vsel %vm1123_vm12, %v1121_v63, %v1125_v6  ;;  %vm3416_vm12 = vcmask 588800  }
 0x599   : > { %v1168_v28 = vpack.c.bf16 %v1127_v8, %v1126_v7  ;;  %1192 = vrot.lane.b32.xlu1 %v1127_v8, %s2520_s24  ;;  %1170 = vrot.lane.b32.xlu2 %v1126_v7, %s2521_s25  ;;  %vm3417_vm13 = vmmov %vm3416_vm12 }
 0x59a   : > { %1200 = vrot.lane.b32.xlu0 %v1126_v7, %s2519_s23 }
 0x59b   : > { %1169 = vst [vmem:[#allocation2 + $0x20] sm:$0xff] %v1168_v28 }
 0x5a1   : > { %1158 = vrot.lane.b32.xlu1 %v1126_v7, %s2523_s27  ;;  %1160 = vrot.lane.b32.xlu2 %v1127_v8, %s2523_s27 }
 0x5a2   : > { %1202 = vrot.lane.b32.xlu0 %v1127_v8, %s2519_s23 }
 0x5a9   : > { %1130 = vrot.lane.b32.xlu1 %v1127_v8, %s2524_s28  ;;  %1138 = vrot.lane.b32.xlu2 %v1126_v7, %s2525_s29 }
 0x5aa   : > { %1180 = vrot.lane.b32.xlu0 %v1126_v7, %s2518_s22 }
 0x5b2   : > { %1182 = vrot.lane.b32.xlu0 %v1127_v8, %s2518_s22 }
 0x5ba   : > { %1190 = vrot.lane.b32.xlu0 %v1126_v7, %s2520_s24 }
 0x5c2   : > { %1172 = vrot.lane.b32.xlu0 %v1127_v8, %s2521_s25 }
 0x5ca   : > { %1148 = vrot.lane.b32.xlu0 %v1126_v7, %s2522_s26 }
 0x5d2   : > { %1150 = vrot.lane.b32.xlu0 %v1127_v8, %s2522_s26  ;;  %1389 = vmax.xlane.f32.xlu2 %v1388_v12 }
 0x5d3   : > { %1385 = vadd.xlane.f32.xlu1 %v1384_v13 }
 0x5da   : > { %1128 = vrot.lane.b32.xlu0 %v1126_v7, %s2524_s28 }
 0x5e2   : > { %1140 = vrot.lane.b32.xlu0 %v1127_v8, %s2525_s29 }
 0x5f3   : > { %v1171_v15 = vpop.permute.xlu2 %1170 }
 0x5fb   : > { %v1161_v30 = vpop.permute.xlu2 %1160 }
 0x60b   : > { %v1193_v21 = vpop.permute.xlu1 %1192 }
 0x60c   : > { %v1201_v27 = vpop.permute.xlu0 %1200 }
 0x613   : > { %v1159_v34 = vpop.permute.xlu1 %1158 }
 0x614   : > { %v1162_v32 = vsel %vm299_vm9, %v1159_v34, %v1161_v30  ;;  %v1163_v36 = vsel %vm299_vm9, %v1161_v30, %v1159_v34  ;;  %v1203_v41 = vpop.permute.xlu0 %1202 }
 0x615   : > { %v1164_v43 = vmul.f32 %v1163_v36, %v2696_v22  ;;  %v1165_v44 = vmul.f32 %v1162_v32, %v2698_v24  ;;  %v1204_v45 = vsel %vm365_vm4, %v1201_v27, %v1203_v41  ;;  %v1205_v31 = vsel %vm365_vm4, %v1203_v41, %v1201_v27 }
 0x616   : > { %v1206_v46 = vmul.f32 %v1204_v45, %v2630_v25  ;;  %v1207_v47 = vmul.f32 %v1205_v31, %v2632_v26 }
 0x617   : > { %v1166_v50 = vpack.c.bf16 %v1165_v44, %v1164_v43 }
 0x618   : > { %v1208_v14 = vpack.c.bf16 %v1207_v47, %v1206_v46 }
 0x619   : > { %1167 = vst [vmem:[#allocation2 + $0x18] sm:$0xff] %v1166_v50 }
 0x61a   : > { %v1244_v33 = vunpack.c.l.b16 %v1208_v14  ;;  %v1245_v51 = vunpack.c.h.b16 %v1208_v14 }
 0x61c   : > { %v1181_v53 = vpop.permute.xlu0 %1180  ;;  %v1254_v54 = vpack.c.b16 %v1244_v33, %v1244_v33  ;;  %v1255_v55 = vpack.c.b16 %v1245_v51, %v1245_v51  ;;  %v1131_v33 = vpop.permute.xlu1 %1130 }
 0x61d   : > { %v1139_v51 = vpop.permute.xlu2 %1138 }
 0x61e   : > { %v1265_v56 = vsel %vm208_vm0, %v1254_v54, 0  ;;  %v1268_v57 = vsel %vm208_vm0, %v1255_v55, 0 }
 0x61f   : > { %1273 = vmatpush.bf16.msrb.mxu0 %v1265_v56  ;;  %1286 = vmatpush.bf16.msrb.mxu1 %v1268_v57 }
 0x624   : > { %v1183_v58 = vpop.permute.xlu0 %1182 }
 0x625   : > { %v1184_v18 = vsel %vm333_vm5, %v1181_v53, %v1183_v58  ;;  %v1185_v63 = vsel %vm333_vm5, %v1183_v58, %v1181_v53  ;;  %v2273_v53 = vld [vmem:[#allocation2 + $0x20] sm:$0xf] }
 0x626   : > { %v1186_v5 = vmul.f32 %v1184_v18, %v2647_v37  ;;  %v1187_v6 = vmul.f32 %v1185_v63, %v2649_v38 }
 0x628   : > { %v1188_v7 = vpack.c.bf16 %v1187_v6, %v1186_v5 }
 0x62a   : > { %1189 = vst [vmem:[#allocation2 + $0x30] sm:$0xff] %v1188_v7 }
 0x62c   : > { %v1191_v8 = vpop.permute.xlu0 %1190 }
 0x62d   : > { %v1194_v28 = vsel %vm349_vm6, %v1191_v8, %v1193_v21  ;;  %v1195_v12 = vsel %vm349_vm6, %v1193_v21, %v1191_v8 }
 0x62e   : > { %v1196_v13 = vmul.f32 %v1194_v28, %v2652_v39  ;;  %v1197_v27 = vmul.f32 %v1195_v12, %v2654_v40 }
 0x630   : > { %v1198_v30 = vpack.c.bf16 %v1197_v27, %v1196_v13 }
 0x631   : > { %v2281_v45 = vld [vmem:[#allocation2 + $0x30] sm:$0xf]  ;;  %v2403_v31 = vld [vmem:[#allocation2 + $0x34] sm:$0xf] }
 0x632   : > { %1199 = vst [vmem:[#allocation2 + $0x38] sm:$0xff] %v1198_v30 }
 0x634   : > { %v1173_v34 = vpop.permute.xlu0 %1172 }
 0x635   : > { %v1174_v32 = vsel %vm317_vm7, %v1171_v15, %v1173_v34  ;;  %v1175_v36 = vsel %vm317_vm7, %v1173_v34, %v1171_v15  ;;  %v2401_v15 = vld [vmem:[#allocation2 + $0x24] sm:$0xf] }
 0x636   : > { %v1176_v41 = vmul.f32 %v1174_v32, %v2674_v61  ;;  %v1177_v43 = vmul.f32 %v1175_v36, %v2676_v62 }
 0x638   : > { %v1178_v44 = vpack.c.bf16 %v1177_v43, %v1176_v41 }
 0x639   : > { %v2404_v21 = vld [vmem:[#allocation2 + $0x34] sm:$0xf0]  ;;  %v2283_v46 = vld [vmem:[#allocation2 + $0x38] sm:$0xf0] }
 0x63a   : > { %1179 = vst [vmem:[#allocation2 + $0x28] sm:$0xff] %v1178_v44  ;;  %v2282_v47 = vor.u32 %v2404_v21, %v2281_v45  ;;  %v2286_v50 = vor.u32 %v2403_v31, %v2283_v46  ;;  %v2400_v45 = vld [vmem:[#allocation2 + $0x14] sm:$0xf0]  ;;  %v2267_v46 = vld [vmem:[#allocation2 + $0x18] sm:$0xf0] }
 0x63c   : > { %1274 = vmatpush.bf16.msrb.mxu0 %v2282_v47  ;;  %1287 = vmatpush.bf16.msrb.mxu1 %v2286_v50  ;;  %v1149_v14 = vpop.permute.xlu0 %1148 }
 0x641   : > { %v2402_v54 = vld [vmem:[#allocation2 + $0x24] sm:$0xf0]  ;;  %v2275_v55 = vld [vmem:[#allocation2 + $0x28] sm:$0xf0] }
 0x642   : > { %v2274_v56 = vor.u32 %v2402_v54, %v2273_v53  ;;  %v2278_v57 = vor.u32 %v2401_v15, %v2275_v55  ;;  %v2529_v55 = vmov 2  }
 0x643   : > { %2448 = vset.pattern.permute.xlu0 %v2529_v55 }
 0x644   : > { %v1151_v58 = vpop.permute.xlu0 %1150  ;;  %1275 = vmatpush.bf16.msrb.mxu0 %v2274_v56  ;;  %1288 = vmatpush.bf16.msrb.mxu1 %v2278_v57  ;;  %v3048_v56 = vld [vmem:[%s3413_s2 + $0x20] sm:$0xff]  ;;  %v1479_v57 = vunpack.c.l.b16 %v2865_v1 }
 0x645   : > { %v1152_v18 = vsel %vm283_vm8, %v1149_v14, %v1151_v58  ;;  %v1153_v63 = vsel %vm283_vm8, %v1151_v58, %v1149_v14  ;;  %v1390_v12 = vpop.xlane.xlu2 %1389  ;;  %1475 = vperm.xlu0 %2448, %v3048_v56   ;;  %v1480_v58 = vunpack.c.h.b16 %v2865_v1  ;;  %v1473_v1 = vld [vmem:[%s3412_s1 + $0x8] sm:$0xf] }
 0x646   : > { %v1154_v5 = vmul.f32 %v1153_v63, %v2691_v10  ;;  %v1155_v6 = vmul.f32 %v1152_v18, %v2693_v11  ;;  %v1386_v7 = vpop.xlane.xlu1 %1385  ;;  %v1481_v18 = vpack.c.b16 %v1479_v57, %v1479_v57 }
 0x647   : > { %v1387_v8 = vmul.f32 %v1386_v7, %v2749_v52  ;;  %v1482_v63 = vpack.c.b16 %v1480_v58, %v1480_v58 }
 0x648   : > { %v1156_v28 = vpack.c.bf16 %v1155_v6, %v1154_v5 }
 0x649   : > { %v1391_v13 = vsel %vm782_vm14, %v1387_v8, %v1390_v12  ;;  %v1487_v12 = vsel %vm208_vm0, %v1481_v18, 0 }
 0x64a   : > { %1157 = vst [vmem:[#allocation2 + $0x10] sm:$0xff] %v1156_v28  ;;  %v1392_v27 = vpack.c.bf16 %v1391_v13, %v1391_v13  ;;  %v1490_v13 = vsel %vm208_vm0, %v1482_v63, 0 }
 0x64c   : > { %v1129_v30 = vpop.permute.xlu0 %1128  ;;  %v1394_v34 = vsel %vm208_vm0, %v1392_v27, 0 }
 0x64d   : > { %v1132_v32 = vsel %vm251_vm10, %v1129_v30, %v1131_v33  ;;  %v1133_v36 = vsel %vm251_vm10, %v1131_v33, %v1129_v30  ;;  %1403 = vmatpush.bf16.msrb.mxu2 %v1394_v34 }
 0x64e   : > { %v1134_v41 = vmul.f32 %v1133_v36, %v2716_v48  ;;  %v1135_v43 = vmul.f32 %v1132_v32, %v2718_v49 }
 0x650   : > { %v1136_v44 = vpack.c.bf16 %v1135_v43, %v1134_v41  ;;  %2291 = vmatmul.msk.bf16.vlgmr.msrb.gmra.mxu2 %vm204_vm1, %v2831_v42 }
 0x651   : > { %v2265_v21 = vld [vmem:[#allocation2 + $0x10] sm:$0xf]  ;;  %v2399_v31 = vld [vmem:[#allocation2 + $0x14] sm:$0xf] }
 0x652   : > { %1137 = vst [vmem:[#allocation2] sm:$0xff] %v1136_v44  ;;  %v2266_v47 = vor.u32 %v2400_v45, %v2265_v21  ;;  %v2270_v50 = vor.u32 %v2399_v31, %v2267_v46 }
 0x654   : > { %v1141_v14 = vpop.permute.xlu0 %1140  ;;  %1276 = vmatpush.bf16.msrb.mxu0 %v2266_v47  ;;  %1289 = vmatpush.bf16.msrb.mxu1 %v2270_v50 }
 0x655   : > { %v1142_v33 = vsel %vm267_vm11, %v1139_v51, %v1141_v14  ;;  %v1143_v53 = vsel %vm267_vm11, %v1141_v14, %v1139_v51 }
 0x656   : > { %v1144_v54 = vmul.f32 %v1143_v53, %v2730_v60  ;;  %v1145_v42 = vmul.f32 %v1142_v33, %v2732_v3 }
 0x658   : > { %v1146_v15 = vpack.c.bf16 %v1145_v42, %v1144_v54 }
 0x659   : > { %v2257_v51 = vld [vmem:[#allocation2] sm:$0xf]  ;;  %v2397_v6 = vld [vmem:[#allocation2 + $0x4] sm:$0xf] }
 0x65a   : > { %1147 = vst [vmem:[#allocation2 + $0x8] sm:$0xff] %v1146_v15 }
 0x661   : > { %v2398_v5 = vld [vmem:[#allocation2 + $0x4] sm:$0xf0]  ;;  %v2259_v7 = vld [vmem:[#allocation2 + $0x8] sm:$0xf0] }
 0x662   : > { %v2258_v8 = vor.u32 %v2398_v5, %v2257_v51  ;;  %v2262_v28 = vor.u32 %v2397_v6, %v2259_v7 }
 0x664   : > { %1277 = vmatpush.bf16.msrb.mxu0 %v2258_v8  ;;  %1290 = vmatpush.bf16.msrb.mxu1 %v2262_v28 }
 0x667   : > { %2287 = vmatmul.msk.bf16.vlgmr.msrb.gmra.mxu0 %vm3416_vm12, %v2843_v59  ;;  %2288 = vmatmul.msk.bf16.vlgmr.msrb.gmra.mxu1 %vm3417_vm13, %v2843_v59  ;;  %vm3418_vm13 = vmmov %vm3416_vm12 }
 0x668   : > { %1499 = vmatpush.bf16.msra.mxu0 %v1487_v12  ;;  %1512 = vmatpush.bf16.msra.mxu1 %v1490_v13 }
 0x677   : > { %2294 = vmatmul.msk.bf16.vlgmr.msra.gmra.mxu0 %vm204_vm1, %v1473_v1  ;;  %2295 = vmatmul.msk.bf16.vlgmr.msra.gmra.mxu1 %vm204_vm1, %v1473_v1 }
 0x6b7   : > { %v1476_v31 = vpop.permute.xlu0 %1475 }
 0x6d3   : > { %v1405_v27 = vpop.f32.mrf.mxu2 }
 0x6d4   : > { %v1406_v30 = vadd.f32 %v1405_v27, %v2900_v29 }
 0x6d6   : > { %vm1409_vm15 = vcmp.ge.f32.partialorder %v1406_v30, 0.0  ;;  %v1410_v34 = vmul.f32 0.01, %v1406_v30 }
 0x6d8   : > { %v1411_v32 = vsel %vm1409_vm15, %v1406_v30, %v1410_v34 }
 0x6d9   : > { %v1412_v36 = vpack.c.bf16 %v1411_v32, %v1411_v32 }
 0x6db   : > { %v1414_v41 = vsel %vm208_vm0, %v1412_v36, 0  ;;  %v1407_v43 = vpop.f32.mrf.mxu2 }
 0x6dc   : > { %1423 = vmatpush.bf16.msrb.mxu3 %v1414_v41 }
 0x6df   : > { %2292 = vmatmul.msk.bf16.vlgmr.msrb.gmra.mxu3 %vm204_vm1, %v2927_v35 }
 0x6e4   : > { %v3068_v59 = vpop.f32.mrf.mxu0  ;;  %v3070_v44 = vpop.f32.mrf.mxu1 }
 0x6ec   : > { %v1281_v45 = vpop.f32.mrf.mxu0  ;;  %v1294_v21 = vpop.f32.mrf.mxu1 }
 0x6f4   : > { %v1501_v46 = vpop.f32.mrf.mxu0  ;;  %v1514_v47 = vpop.f32.mrf.mxu1 }
 0x6f5   : > { %v1502_v50 = vadd.f32 %v1501_v46, %v1476_v31  ;;  %v1515_v14 = vadd.f32 %v1514_v47, %v1476_v31 }
 0x6f7   : > { %vm1518_vm2 = vcmp.ge.f32.partialorder %v1502_v50, 0.0  ;;  %v1520_v33 = vmul.f32 0.01, %v1502_v50  ;;  %vm1519_vm3 = vcmp.ge.f32.partialorder %v1515_v14, 0.0  ;;  %v1521_v53 = vmul.f32 0.01, %v1515_v14 }
 0x6f9   : > { %v3072_v54 = vsel %vm1518_vm2, %v1502_v50, %v1520_v33  ;;  %v3074_v42 = vsel %vm1519_vm3, %v1515_v14, %v1521_v53 }
 0x6fa   : > { %v1564_v15 = vpack.c.bf16 %v3074_v42, %v3072_v54  ;;  %1586 = vrot.lane.b32.xlu2 %v3072_v54, %s2520_s24  ;;  %1596 = vrot.lane.b32.xlu0 %v3072_v54, %s2519_s23  ;;  %v1982_v58 = vadd.f32 %v3074_v42, %v3072_v54  ;;  %v1986_v51 = vmax.f32 %v3072_v54, %v3074_v42 }
 0x6fb   : > { %1588 = vrot.lane.b32.xlu1 %v3074_v42, %s2520_s24 }
 0x6fc   : > { %1565 = vst [vmem:[#allocation2 + $0x20] sm:$0xff] %v1564_v15  ;;  %v1503_v55 = vpop.f32.mrf.mxu0  ;;  %v1516_v57 = vpop.f32.mrf.mxu1 }
 0x702   : > { %1546 = vrot.lane.b32.xlu2 %v3074_v42, %s2522_s26  ;;  %1598 = vrot.lane.b32.xlu0 %v3074_v42, %s2519_s23 }
 0x703   : > { %1554 = vrot.lane.b32.xlu1 %v3072_v54, %s2523_s27 }
 0x70a   : > { %1524 = vrot.lane.b32.xlu2 %v3072_v54, %s2524_s28  ;;  %1576 = vrot.lane.b32.xlu0 %v3072_v54, %s2518_s22 }
 0x70b   : > { %1526 = vrot.lane.b32.xlu1 %v3074_v42, %s2524_s28 }
 0x712   : > { %1536 = vrot.lane.b32.xlu2 %v3074_v42, %s2525_s29  ;;  %1578 = vrot.lane.b32.xlu0 %v3074_v42, %s2518_s22 }
 0x71a   : > { %1566 = vrot.lane.b32.xlu0 %v3072_v54, %s2521_s25 }
 0x722   : > { %1568 = vrot.lane.b32.xlu0 %v3074_v42, %s2521_s25 }
 0x72a   : > { %1544 = vrot.lane.b32.xlu0 %v3072_v54, %s2522_s26 }
 0x732   : > { %1556 = vrot.lane.b32.xlu0 %v3074_v42, %s2523_s27 }
 0x735   : > { %1983 = vadd.xlane.f32.xlu1 %v1982_v58 }
 0x73a   : > { %1534 = vrot.lane.b32.xlu0 %v3072_v54, %s2525_s29 }
 0x754   : > { %v1587_v18 = vpop.permute.xlu2 %1586 }
 0x75c   : > { %v1547_v13 = vpop.permute.xlu2 %1546 }
 0x764   : > { %1987 = vmax.xlane.f32.xlu0 %v1986_v51  ;;  %v1525_v47 = vpop.permute.xlu2 %1524 }
 0x76c   : > { %v1597_v63 = vpop.permute.xlu0 %1596 }
 0x76d   : > { %v1589_v5 = vpop.permute.xlu1 %1588 }
 0x76e   : > { %v1590_v6 = vsel %vm349_vm6, %v1587_v18, %v1589_v5  ;;  %v1591_v7 = vsel %vm349_vm6, %v1589_v5, %v1587_v18 }
 0x76f   : > { %v1592_v8 = vmul.f32 %v1590_v6, %v2652_v39  ;;  %v1593_v28 = vmul.f32 %v1591_v7, %v2654_v40 }
 0x771   : > { %v1594_v12 = vpack.c.bf16 %v1593_v28, %v1592_v8 }
 0x773   : > { %1595 = vst [vmem:[#allocation2 + $0x38] sm:$0xff] %v1594_v12 }
 0x774   : > { %v1599_v1 = vpop.permute.xlu0 %1598 }
 0x775   : > { %v3120_v27 = vpop.permute.xlu1 %1554  ;;  %v1600_v30 = vsel %vm365_vm4, %v1597_v63, %v1599_v1  ;;  %v1601_v34 = vsel %vm365_vm4, %v1599_v1, %v1597_v63 }
 0x776   : > { %v1602_v32 = vmul.f32 %v1600_v30, %v2630_v25  ;;  %v1603_v36 = vmul.f32 %v1601_v34, %v2632_v26 }
 0x778   : > { %v1604_v41 = vpack.c.bf16 %v1603_v36, %v1602_v32 }
 0x77a   : > { %v1640_v43 = vunpack.c.l.b16 %v1604_v41  ;;  %v1641_v45 = vunpack.c.h.b16 %v1604_v41  ;;  %v2412_v28 = vld [vmem:[#allocation2 + $0x34] sm:$0xf0]  ;;  %v2324_v30 = vld [vmem:[#allocation2 + $0x38] sm:$0xf0] }
 0x77c   : > { %v1577_v21 = vpop.permute.xlu0 %1576  ;;  %v1650_v31 = vpack.c.b16 %v1640_v43, %v1640_v43  ;;  %v1651_v46 = vpack.c.b16 %v1641_v45, %v1641_v45 }
 0x77d   : > { %v1527_v50 = vpop.permute.xlu1 %1526 }
 0x77e   : > { %v1528_v14 = vsel %vm251_vm10, %v1525_v47, %v1527_v50  ;;  %v1529_v33 = vsel %vm251_vm10, %v1527_v50, %v1525_v47  ;;  %v1661_v53 = vsel %vm208_vm0, %v1650_v31, 0  ;;  %v1664_v15 = vsel %vm208_vm0, %v1651_v46, 0 }
 0x77f   : > { %v1530_v55 = vmul.f32 %v1529_v33, %v2716_v48  ;;  %v1531_v57 = vmul.f32 %v1528_v14, %v2718_v49  ;;  %1669 = vmatpush.bf16.msra.mxu2 %v1661_v53  ;;  %1682 = vmatpush.bf16.msra.mxu3 %v1664_v15  ;;  %v2314_v15 = vld [vmem:[#allocation2 + $0x20] sm:$0xf] }
 0x781   : > { %v1532_v58 = vpack.c.bf16 %v1531_v57, %v1530_v55  ;;  %v2409_v57 = vld [vmem:[#allocation2 + $0x24] sm:$0xf] }
 0x783   : > { %1533 = vst [vmem:[#allocation2] sm:$0xff] %v1532_v58 }
 0x784   : > { %v1579_v51 = vpop.permute.xlu0 %1578 }
 0x785   : > { %v1580_v18 = vsel %vm333_vm5, %v1577_v21, %v1579_v51  ;;  %v1581_v63 = vsel %vm333_vm5, %v1579_v51, %v1577_v21 }
 0x786   : > { %v1582_v5 = vmul.f32 %v1580_v18, %v2647_v37  ;;  %v1583_v6 = vmul.f32 %v1581_v63, %v2649_v38 }
 0x788   : > { %v1584_v7 = vpack.c.bf16 %v1583_v6, %v1582_v5 }
 0x78a   : > { %1585 = vst [vmem:[#allocation2 + $0x30] sm:$0xff] %v1584_v7 }
 0x78c   : > { %v1567_v8 = vpop.permute.xlu0 %1566 }
 0x791   : > { %v2322_v12 = vld [vmem:[#allocation2 + $0x30] sm:$0xf]  ;;  %v2411_v1 = vld [vmem:[#allocation2 + $0x34] sm:$0xf] }
 0x792   : > { %v2323_v34 = vor.u32 %v2412_v28, %v2322_v12  ;;  %v2327_v32 = vor.u32 %v2411_v1, %v2324_v30  ;;  %v1537_v28 = vpop.permute.xlu2 %1536 }
 0x794   : > { %1670 = vmatpush.bf16.msra.mxu2 %v2323_v34  ;;  %1683 = vmatpush.bf16.msra.mxu3 %v2327_v32  ;;  %v1569_v36 = vpop.permute.xlu0 %1568 }
 0x795   : > { %v1570_v41 = vsel %vm317_vm7, %v1567_v8, %v1569_v36  ;;  %v1571_v43 = vsel %vm317_vm7, %v1569_v36, %v1567_v8 }
 0x796   : > { %v1572_v45 = vmul.f32 %v1570_v41, %v2674_v61  ;;  %v1573_v21 = vmul.f32 %v1571_v43, %v2676_v62 }
 0x798   : > { %v1574_v31 = vpack.c.bf16 %v1573_v21, %v1572_v45 }
 0x79a   : > { %1575 = vst [vmem:[#allocation2 + $0x28] sm:$0xff] %v1574_v31 }
 0x79c   : > { %v1545_v46 = vpop.permute.xlu0 %1544 }
 0x79d   : > { %v1548_v47 = vsel %vm283_vm8, %v1545_v46, %v1547_v13  ;;  %v1549_v50 = vsel %vm283_vm8, %v1547_v13, %v1545_v46  ;;  %v2298_v46 = vld [vmem:[#allocation2] sm:$0xf] }
 0x79e   : > { %v1550_v14 = vmul.f32 %v1549_v50, %v2691_v10  ;;  %v1551_v33 = vmul.f32 %v1548_v47, %v2693_v11  ;;  %v2405_v50 = vld [vmem:[#allocation2 + $0x4] sm:$0xf] }
 0x7a0   : > { %v1552_v53 = vpack.c.bf16 %v1551_v33, %v1550_v14 }
 0x7a1   : > { %v2410_v55 = vld [vmem:[#allocation2 + $0x24] sm:$0xf0]  ;;  %v2316_v58 = vld [vmem:[#allocation2 + $0x28] sm:$0xf0] }
 0x7a2   : > { %1553 = vst [vmem:[#allocation2 + $0x10] sm:$0xff] %v1552_v53  ;;  %v2315_v51 = vor.u32 %v2410_v55, %v2314_v15  ;;  %v2319_v18 = vor.u32 %v2409_v57, %v2316_v58  ;;  %v2506_v15 = vld [vmem:[%s3412_s1 + $0xc] sm:$0xf]  ;;  %v3173_v55 = vpop.f32.mrf.mxu3 }
 0x7a4   : > { %v1557_v63 = vpop.permute.xlu0 %1556  ;;  %1671 = vmatpush.bf16.msra.mxu2 %v2315_v51  ;;  %1684 = vmatpush.bf16.msra.mxu3 %v2319_v18 }
 0x7a5   : > { %v1558_v5 = vsel %vm299_vm9, %v3120_v27, %v1557_v63  ;;  %v1559_v13 = vsel %vm299_vm9, %v1557_v63, %v3120_v27 }
 0x7a6   : > { %v1560_v6 = vmul.f32 %v1559_v13, %v2696_v22  ;;  %v1561_v7 = vmul.f32 %v1558_v5, %v2698_v24 }
 0x7a8   : > { %v1562_v8 = vpack.c.bf16 %v1561_v7, %v1560_v6  ;;  %v1984_v58 = vpop.xlane.xlu1 %1983  ;;  %v2507_v6 = vld [vmem:[%s3412_s1 + $0x14] sm:$0xf] }
 0x7a9   : > { %v2306_v27 = vld [vmem:[#allocation2 + $0x10] sm:$0xf]  ;;  %v2407_v43 = vld [vmem:[#allocation2 + $0x14] sm:$0xf]  ;;  %v1985_v51 = vmul.f32 %v1984_v58, %v2749_v52 }
 0x7aa   : > { %1563 = vst [vmem:[#allocation2 + $0x18] sm:$0xff] %v1562_v8  ;;  %v1427_v57 = vpop.f32.mrf.mxu3 }
 0x7ac   : > { %v1535_v12 = vpop.permute.xlu0 %1534 }
 0x7ad   : > { %v1538_v1 = vsel %vm267_vm11, %v1535_v12, %v1537_v28  ;;  %v1539_v30 = vsel %vm267_vm11, %v1537_v28, %v1535_v12 }
 0x7ae   : > { %v1540_v34 = vmul.f32 %v1539_v30, %v2730_v60  ;;  %v1541_v32 = vmul.f32 %v1538_v1, %v2732_v3 }
 0x7b0   : > { %v1542_v36 = vpack.c.bf16 %v1541_v32, %v1540_v34 }
 0x7b1   : > { %v2408_v41 = vld [vmem:[#allocation2 + $0x14] sm:$0xf0]  ;;  %v2308_v45 = vld [vmem:[#allocation2 + $0x18] sm:$0xf0] }
 0x7b2   : > { %1543 = vst [vmem:[#allocation2 + $0x8] sm:$0xff] %v1542_v36  ;;  %v2307_v21 = vor.u32 %v2408_v41, %v2306_v27  ;;  %v2311_v31 = vor.u32 %v2407_v43, %v2308_v45 }
 0x7b4   : > { %1672 = vmatpush.bf16.msra.mxu2 %v2307_v21  ;;  %1685 = vmatpush.bf16.msra.mxu3 %v2311_v31 }
 0x7b9   : > { %v2406_v47 = vld [vmem:[#allocation2 + $0x4] sm:$0xf0]  ;;  %v2300_v14 = vld [vmem:[#allocation2 + $0x8] sm:$0xf0] }
 0x7ba   : > { %v2299_v33 = vor.u32 %v2406_v47, %v2298_v46  ;;  %v2303_v53 = vor.u32 %v2405_v50, %v2300_v14 }
 0x7bc   : > { %1673 = vmatpush.bf16.msra.mxu2 %v2299_v33  ;;  %1686 = vmatpush.bf16.msra.mxu3 %v2303_v53 }
 0x7bf   : > { %2328 = vmatmul.msk.bf16.vlgmr.msra.gmra.mxu2 %vm3416_vm12, %v2506_v15  ;;  %2329 = vmatmul.msk.bf16.vlgmr.msra.gmra.mxu3 %vm3418_vm13, %v2506_v15 }
 0x7d7   : > { %v1988_v18 = vpop.xlane.xlu0 %1987 }
 0x7d8   : > { %v1989_v63 = vsel %vm782_vm14, %v1985_v51, %v1988_v18 }
 0x7d9   : > { %v1990_v5 = vpack.c.bf16 %v1989_v63, %v1989_v63 }
 0x7db   : > { %v1992_v13 = vsel %vm208_vm0, %v1990_v5, 0 }
 0x7dc   : > { %2001 = vmatpush.bf16.msrb.mxu2 %v1992_v13 }
 0x7df   : > { %2366 = vmatmul.msk.bf16.vlgmr.msrb.gmra.mxu2 %vm204_vm1, %v2507_v6 }
 0x842   : > { %v1675_v7 = vpop.f32.mrf.mxu2  ;;  %v1688_v8 = vpop.f32.mrf.mxu3 }
 0x843   : > { %v1692_v28 = vadd.f32 %v1688_v8, %v1675_v7  ;;  %v1696_v12 = vmul.f32 %v1675_v7, %v1675_v7  ;;  %v1697_v1 = vmul.f32 %v1688_v8, %v1688_v8 }
 0x845   : > { %1693 = vadd.xlane.f32.xlu2 %v1692_v28  ;;  %v1698_v30 = vadd.f32 %v1697_v1, %v1696_v12 }
 0x847   : > { %1699 = vadd.xlane.f32.xlu1 %v1698_v30 }
 0x84a   : > { %v1677_v34 = vpop.f32.mrf.mxu2  ;;  %v1690_v32 = vpop.f32.mrf.mxu3 }
 0x862   : > { %v2003_v36 = vpop.f32.mrf.mxu2 }
 0x863   : > { %v2004_v27 = vadd.f32 %v2003_v36, %v2900_v29 }
 0x865   : > { %vm2007_vm14 = vcmp.ge.f32.partialorder %v2004_v27, 0.0  ;;  %v2008_v41 = vmul.f32 0.01, %v2004_v27 }
 0x867   : > { %v2009_v43 = vsel %vm2007_vm14, %v2004_v27, %v2008_v41  ;;  %v683_v27 = vmul.f32 %v2855_v2, %v2855_v2  ;;  %v684_v41 = vmul.f32 %v2857_v4, %v2857_v4 }
 0x868   : > { %v2010_v45 = vpack.c.bf16 %v2009_v43, %v2009_v43  ;;  %v1300_v43 = vmul.f32 %v3068_v59, %v3068_v59 }
 0x86a   : > { %v2012_v21 = vsel %vm208_vm0, %v2010_v45, 0  ;;  %v2005_v31 = vpop.f32.mrf.mxu2  ;;  %v1301_v45 = vmul.f32 %v3070_v44, %v3070_v44 }
 0x86b   : > { %2021 = vmatpush.bf16.msrb.mxu3 %v2012_v21  ;;  %v685_v21 = vadd.f32 %v684_v41, %v683_v27  ;;  %v1296_v31 = vadd.f32 %v3070_v44, %v3068_v59 }
 0x86e   : > { %2367 = vmatmul.msk.bf16.vlgmr.msrb.gmra.mxu3 %vm204_vm1, %v2927_v35 }
 0x8b8   : > { %v1694_v46 = vpop.xlane.xlu2 %1693 }
 0x8b9   : > { %v1695_v47 = vmul.f32 %v1694_v46, %v2749_v52  ;;  %v1302_v46 = vadd.f32 %v1301_v45, %v1300_v43 }
 0x8ba   : > { %v1700_v50 = vpop.xlane.xlu1 %1699 }
 0x8bb   : > { %v1701_v14 = vmul.f32 %v1700_v50, %v2749_v52  ;;  %v1702_v33 = vmul.f32 %v1695_v47, %v1695_v47  ;;  %v1705_v35 = vsub.f32 %v1675_v7, %v1695_v47  ;;  %v1706_v13 = vsub.f32 %v1688_v8, %v1695_v47 }
 0x8bc   : > { %v2530_v7 = vmov 4   ;;  %v679_v8 = vadd.f32 %v2857_v4, %v2855_v2 }
 0x8bd   : > { %v1703_v53 = vsub.f32 %v1701_v14, %v1702_v33  ;;  %2449 = vset.pattern.permute.xlu2 %v2530_v7 }
 0x8bf   : > { %v1704_v29 = vmax.f32 %v1703_v53, 0.0 }
 0x8c1   : > { %v1707_v15 = vadd.f32 1e-05, %v1704_v29 }
 0x8c3   : > { %2461 = vrsqrt.f32 %v1707_v15  ;;  %vm1714_vm2 = vweird.f32 %v1707_v15 }
 0x8c9   : > { %v2462_v57 = vpop.eup %2461 }
 0x8ca   : > { %v1709_v58 = vmul.f32 %v2462_v57, %v1707_v15  ;;  %vm1715_vm15 = vweird.f32 %v2462_v57 }
 0x8cb   : > { %vm1716_vm1 = vmor %vm1714_vm2, %vm1715_vm15 }
 0x8cc   : > { %v1710_v51 = vmul.f32 %v2462_v57, %v1709_v58 }
 0x8ce   : > { %v1711_v18 = vmul.f32 0.5, %v1710_v51 }
 0x8d0   : > { %v1712_v63 = vsub.f32 1.5, %v1711_v18 }
 0x8d2   : > { %v1713_v5 = vmul.f32 %v2462_v57, %v1712_v63 }
 0x8d4   : > { %v1717_v6 = vsel %vm1716_vm1, %v2462_v57, %v1713_v5 }
 0x8d5   : > { %v1718_v28 = vmul.f32 %v1717_v6, %v1705_v35  ;;  %v1719_v12 = vmul.f32 %v1717_v6, %v1706_v13 }
 0x8d7   : > { %vm1720_vm3 = vcmp.ge.f32.partialorder %v1718_v28, 0.0  ;;  %vm1721_vm12 = vcmp.ge.f32.partialorder %v1719_v12, 0.0  ;;  %v1722_v1 = vmul.f32 0.01, %v1718_v28  ;;  %v1723_v30 = vmul.f32 0.01, %v1719_v12 }
 0x8d9   : > { %v1724_v34 = vsel %vm1720_vm3, %v1718_v28, %v1722_v1  ;;  %v1725_v32 = vsel %vm1721_vm12, %v1719_v12, %v1723_v30 }
 0x8da   : > { %v1766_v36 = vpack.c.bf16 %v1725_v32, %v1724_v34  ;;  %1800 = vrot.lane.b32.xlu0 %v1725_v32, %s2519_s23  ;;  %1778 = vrot.lane.b32.xlu1 %v1724_v34, %s2518_s22 }
 0x8db   : > { %1798 = vrot.lane.b32.xlu2 %v1724_v34, %s2519_s23 }
 0x8dc   : > { %1767 = vst [vmem:[#allocation2 + $0x20] sm:$0xff] %v1766_v36 }
 0x8e2   : > { %1780 = vrot.lane.b32.xlu0 %v1725_v32, %s2518_s22  ;;  %1790 = vrot.lane.b32.xlu1 %v1725_v32, %s2520_s24 }
 0x8e3   : > { %1788 = vrot.lane.b32.xlu2 %v1724_v34, %s2520_s24 }
 0x8ea   : > { %1768 = vrot.lane.b32.xlu0 %v1724_v34, %s2521_s25  ;;  %1746 = vrot.lane.b32.xlu1 %v1724_v34, %s2522_s26 }
 0x8eb   : > { %1770 = vrot.lane.b32.xlu2 %v1725_v32, %s2521_s25 }
 0x8f2   : > { %1748 = vrot.lane.b32.xlu0 %v1725_v32, %s2522_s26  ;;  %1758 = vrot.lane.b32.xlu1 %v1725_v32, %s2523_s27  ;;  %s170_s26 = scalar_lea.vmem %s3414_s3, %s2371_s16 }
 0x8f3   : > { %1756 = vrot.lane.b32.xlu2 %v1724_v34, %s2523_s27 }
 0x8fa   : > { %1726 = vrot.lane.b32.xlu0 %v1724_v34, %s2524_s28  ;;  %1736 = vrot.lane.b32.xlu1 %v1724_v34, %s2525_s29 }
 0x8fb   : > { %1728 = vrot.lane.b32.xlu2 %v1725_v32, %s2524_s28 }
 0x902   : > { %1738 = vrot.lane.b32.xlu0 %v1725_v32, %s2525_s29 }
 0x903   : > { %815 = vperm.xlu2 %2449, %v3048_v56  }
 0x90b   : > { %2452 = vset.pattern.permute.xlu2 %v2517_v0 }
 0x924   : > { %680 = vadd.xlane.f32.xlu1 %v679_v8 }
 0x92c   : > { %686 = vadd.xlane.f32.xlu2 %v685_v21  ;;  %1297 = vadd.xlane.f32.xlu0 %v1296_v31 }
 0x92d   : > { %1303 = vadd.xlane.f32.xlu1 %v1302_v46 }
 0x935   : > { %v1799_v47 = vpop.permute.xlu2 %1798 }
 0x93d   : > { %v1789_v50 = vpop.permute.xlu2 %1788 }
 0x945   : > { %v1771_v14 = vpop.permute.xlu2 %1770 }
 0x94c   : > { %v1801_v33 = vpop.permute.xlu0 %1800  ;;  %v1779_v53 = vpop.permute.xlu1 %1778 }
 0x94d   : > { %v1802_v29 = vsel %vm365_vm4, %v1799_v47, %v1801_v33  ;;  %v1803_v15 = vsel %vm365_vm4, %v1801_v33, %v1799_v47  ;;  %v1757_v57 = vpop.permute.xlu2 %1756 }
 0x94e   : > { %v1804_v58 = vmul.f32 %v1802_v29, %v2630_v25  ;;  %v1805_v51 = vmul.f32 %v1803_v15, %v2632_v26 }
 0x950   : > { %v1806_v18 = vpack.c.bf16 %v1805_v51, %v1804_v58 }
 0x952   : > { %v1842_v63 = vunpack.c.l.b16 %v1806_v18  ;;  %v1843_v5 = vunpack.c.h.b16 %v1806_v18 }
 0x954   : > { %v1781_v35 = vpop.permute.xlu0 %1780  ;;  %v1791_v13 = vpop.permute.xlu1 %1790  ;;  %v1852_v6 = vpack.c.b16 %v1842_v63, %v1842_v63  ;;  %v1853_v28 = vpack.c.b16 %v1843_v5, %v1843_v5 }
 0x955   : > { %v1782_v12 = vsel %vm333_vm5, %v1779_v53, %v1781_v35  ;;  %v1783_v1 = vsel %vm333_vm5, %v1781_v35, %v1779_v53  ;;  %v1792_v30 = vsel %vm349_vm6, %v1789_v50, %v1791_v13  ;;  %v1793_v25 = vsel %vm349_vm6, %v1791_v13, %v1789_v50  ;;  %v3233_v26 = vpop.permute.xlu2 %1728  ;;  %vm3419_vm5 = vmmov %vm3418_vm13 }
 0x956   : > { %v1784_v34 = vmul.f32 %v1782_v12, %v2647_v37  ;;  %v1785_v32 = vmul.f32 %v1783_v1, %v2649_v38  ;;  %v1794_v36 = vmul.f32 %v1792_v30, %v2652_v39  ;;  %v1795_v7 = vmul.f32 %v1793_v25, %v2654_v40  ;;  %vm3420_vm6 = vmmov %vm3419_vm5 }
 0x957   : > { %v1863_v8 = vsel %vm208_vm0, %v1852_v6, 0  ;;  %v1866_v27 = vsel %vm208_vm0, %v1853_v28, 0 }
 0x958   : > { %v1786_v41 = vpack.c.bf16 %v1785_v32, %v1784_v34  ;;  %v1796_v43 = vpack.c.bf16 %v1795_v7, %v1794_v36  ;;  %1871 = vmatpush.bf16.msrb.mxu0 %v1863_v8  ;;  %1884 = vmatpush.bf16.msrb.mxu1 %v1866_v27  ;;  %v2348_v34 = vld [vmem:[#allocation2 + $0x20] sm:$0xf]  ;;  %v2417_v36 = vld [vmem:[#allocation2 + $0x24] sm:$0xf] }
 0x95a   : > { %1787 = vst [vmem:[#allocation2 + $0x30] sm:$0xff] %v1786_v41 }
 0x95b   : > { %1797 = vst [vmem:[#allocation2 + $0x38] sm:$0xff] %v1796_v43 }
 0x95c   : > { %v1769_v45 = vpop.permute.xlu0 %1768  ;;  %v1747_v21 = vpop.permute.xlu1 %1746 }
 0x95d   : > { %v1772_v37 = vsel %vm317_vm7, %v1769_v45, %v1771_v14  ;;  %v1773_v38 = vsel %vm317_vm7, %v1771_v14, %v1769_v45  ;;  %v3245_v39 = vpop.permute.xlu2 %815 }
 0x95e   : > { %v1774_v40 = vmul.f32 %v1772_v37, %v2674_v61  ;;  %v1775_v31 = vmul.f32 %v1773_v38, %v2676_v62  ;;  %v834_v46 = vadd.f32 %v2965_v9, %v3245_v39  ;;  %v1426_v47 = vadd.f32 %v3173_v55, %v3245_v39 }
 0x960   : > { %v1776_v50 = vpack.c.bf16 %v1775_v31, %v1774_v40  ;;  %vm1429_vm0 = vcmp.ge.f32.partialorder %v1426_v47, 0.0  ;;  %v1430_v33 = vmul.f32 0.01, %v1426_v47  ;;  %vm837_vm4 = vcmp.ge.f32.partialorder %v834_v46, 0.0 }
 0x961   : > { %v838_v53 = vmul.f32 0.01, %v834_v46  ;;  %v2356_v29 = vld [vmem:[#allocation2 + $0x30] sm:$0xf]  ;;  %v2419_v15 = vld [vmem:[#allocation2 + $0x34] sm:$0xf] }
 0x962   : > { %1777 = vst [vmem:[#allocation2 + $0x28] sm:$0xff] %v1776_v50  ;;  %v3253_v14 = vsel %vm1429_vm0, %v1426_v47, %v1430_v33  ;;  %v2420_v58 = vld [vmem:[#allocation2 + $0x34] sm:$0xf0]  ;;  %v2358_v61 = vld [vmem:[#allocation2 + $0x38] sm:$0xf0] }
 0x963   : > { %1433 = vrot.lane.b32.xlu0 %v3253_v14, %s2521_s25  ;;  %v3257_v62 = vsel %vm837_vm4, %v834_v46, %v838_v53  ;;  %v2357_v9 = vor.u32 %v2420_v58, %v2356_v29  ;;  %v2361_v51 = vor.u32 %v2419_v15, %v2358_v61 }
 0x964   : > { %841 = vrot.lane.b32.xlu1 %v3257_v62, %s2521_s25  ;;  %v1749_v55 = vpop.permute.xlu0 %1748  ;;  %v1759_v18 = vpop.permute.xlu1 %1758 }
 0x965   : > { %v1750_v63 = vsel %vm283_vm8, %v1747_v21, %v1749_v55  ;;  %v1751_v5 = vsel %vm283_vm8, %v1749_v55, %v1747_v21  ;;  %v1760_v35 = vsel %vm299_vm9, %v1757_v57, %v1759_v18  ;;  %v1761_v13 = vsel %vm299_vm9, %v1759_v18, %v1757_v57  ;;  %1872 = vmatpush.bf16.msrb.mxu0 %v2357_v9 }
 0x966   : > { %v1752_v6 = vmul.f32 %v1751_v5, %v2691_v10  ;;  %v1753_v28 = vmul.f32 %v1750_v63, %v2693_v11  ;;  %v1762_v12 = vmul.f32 %v1761_v13, %v2696_v22  ;;  %v1763_v1 = vmul.f32 %v1760_v35, %v2698_v24  ;;  %1885 = vmatpush.bf16.msrb.mxu1 %v2361_v51 }
 0x968   : > { %v1754_v30 = vpack.c.bf16 %v1753_v28, %v1752_v6  ;;  %v1764_v25 = vpack.c.bf16 %v1763_v1, %v1762_v12 }
 0x969   : > { %v2418_v32 = vld [vmem:[#allocation2 + $0x24] sm:$0xf0]  ;;  %v2350_v7 = vld [vmem:[#allocation2 + $0x28] sm:$0xf0] }
 0x96a   : > { %1755 = vst [vmem:[#allocation2 + $0x10] sm:$0xff] %v1754_v30  ;;  %v2349_v8 = vor.u32 %v2418_v32, %v2348_v34  ;;  %v2353_v27 = vor.u32 %v2417_v36, %v2350_v7 }
 0x96b   : > { %1765 = vst [vmem:[#allocation2 + $0x18] sm:$0xff] %v1764_v25 }
 0x96c   : > { %v1727_v57 = vpop.permute.xlu0 %1726  ;;  %1873 = vmatpush.bf16.msrb.mxu0 %v2349_v8  ;;  %1886 = vmatpush.bf16.msrb.mxu1 %v2353_v27  ;;  %v1737_v31 = vpop.permute.xlu1 %1736  ;;  %v2531_v27 = vmov 6  }
 0x96d   : > { %v1730_v10 = vsel %vm251_vm10, %v1727_v57, %v3233_v26  ;;  %v1731_v11 = vsel %vm251_vm10, %v3233_v26, %v1727_v57  ;;  %v2023_v8 = vpop.f32.mrf.mxu3  ;;  %2451 = vset.pattern.permute.xlu1 %v2531_v27 }
 0x96e   : > { %v1732_v22 = vmul.f32 %v1731_v11, %v2716_v48  ;;  %v1733_v24 = vmul.f32 %v1730_v10, %v2718_v49  ;;  %732 = vperm.xlu1 %2451, %v3048_v56  }
 0x970   : > { %v1734_v41 = vpack.c.bf16 %v1733_v24, %v1732_v22 }
 0x971   : > { %v2340_v43 = vld [vmem:[#allocation2 + $0x10] sm:$0xf]  ;;  %v2415_v45 = vld [vmem:[#allocation2 + $0x14] sm:$0xf] }
 0x972   : > { %1735 = vst [vmem:[#allocation2] sm:$0xff] %v1734_v41  ;;  %v2416_v21 = vld [vmem:[#allocation2 + $0x14] sm:$0xf0]  ;;  %v2342_v37 = vld [vmem:[#allocation2 + $0x18] sm:$0xf0] }
 0x973   : > { %v2341_v38 = vor.u32 %v2416_v21, %v2340_v43  ;;  %v2345_v40 = vor.u32 %v2415_v45, %v2342_v37  ;;  %v2532_v21 = vmov 5  }
 0x974   : > { %v1739_v46 = vpop.permute.xlu0 %1738  ;;  %2450 = vset.pattern.permute.xlu0 %v2532_v21 }
 0x975   : > { %v1740_v47 = vsel %vm267_vm11, %v1737_v31, %v1739_v46  ;;  %v1741_v26 = vsel %vm267_vm11, %v1739_v46, %v1737_v31  ;;  %1874 = vmatpush.bf16.msrb.mxu0 %v2341_v38  ;;  %1887 = vmatpush.bf16.msrb.mxu1 %v2345_v40  ;;  %v2025_v57 = vpop.f32.mrf.mxu3 }
 0x976   : > { %v1742_v48 = vmul.f32 %v1741_v26, %v2730_v60  ;;  %v1743_v49 = vmul.f32 %v1740_v47, %v2732_v3  ;;  %2453 = vset.pattern.permute.xlu1 %v2517_v0 }
 0x978   : > { %v1744_v50 = vpack.c.bf16 %v1743_v49, %v1742_v48 }
 0x979   : > { %v2332_v33 = vld [vmem:[#allocation2] sm:$0xf]  ;;  %v2413_v29 = vld [vmem:[#allocation2 + $0x4] sm:$0xf] }
 0x97a   : > { %1745 = vst [vmem:[#allocation2 + $0x8] sm:$0xff] %v1744_v50 }
 0x981   : > { %v2414_v53 = vld [vmem:[#allocation2 + $0x4] sm:$0xf0]  ;;  %v2334_v15 = vld [vmem:[#allocation2 + $0x8] sm:$0xf0] }
 0x982   : > { %v2333_v58 = vor.u32 %v2414_v53, %v2332_v33  ;;  %v2337_v61 = vor.u32 %v2413_v29, %v2334_v15 }
 0x984   : > { %1875 = vmatpush.bf16.msrb.mxu0 %v2333_v58  ;;  %1888 = vmatpush.bf16.msrb.mxu1 %v2337_v61 }
 0x987   : > { %2362 = vmatmul.msk.bf16.vlgmr.msrb.gmra.mxu0 %vm3419_vm5, %v2508_v23  ;;  %2363 = vmatmul.msk.bf16.vlgmr.msrb.gmra.mxu1 %vm3420_vm6, %v2508_v23 }
 0x997   : > { %v3292_v60 = vpop.xlane.xlu1 %680 }
 0x99f   : > { %v1298_v3 = vpop.xlane.xlu0 %1297 }
 0x9a0   : > { %v1299_v9 = vmul.f32 %v1298_v3, %v2749_v52  ;;  %v1304_v51 = vpop.xlane.xlu1 %1303 }
 0x9a1   : > { %v1305_v18 = vmul.f32 %v1304_v51, %v2749_v52  ;;  %v2024_v51 = vadd.f32 %v2023_v8, %v3245_v39 }
 0x9a2   : > { %v1306_v55 = vmul.f32 %v1299_v9, %v1299_v9  ;;  %v1309_v25 = vsub.f32 %v3068_v59, %v1299_v9  ;;  %v1310_v34 = vsub.f32 %v3070_v44, %v1299_v9 }
 0x9a3   : > { %vm2027_vm15 = vcmp.ge.f32.partialorder %v2024_v51, 0.0 }
 0x9a4   : > { %v1307_v63 = vsub.f32 %v1305_v18, %v1306_v55  ;;  %v2028_v18 = vmul.f32 0.01, %v2024_v51 }
 0x9a6   : > { %v1308_v5 = vmax.f32 %v1307_v63, 0.0 }
 0x9a8   : > { %v1311_v35 = vadd.f32 1e-05, %v1308_v5  ;;  %v2029_v5 = vsel %vm2027_vm15, %v2024_v51, %v2028_v18 }
 0x9aa   : > { %2463 = vrsqrt.f32 %v1311_v35  ;;  %vm1318_vm8 = vweird.f32 %v1311_v35 }
 0x9b0   : > { %v2464_v13 = vpop.eup %2463 }
 0x9b1   : > { %v1313_v6 = vmul.f32 %v2464_v13, %v1311_v35  ;;  %vm1319_vm7 = vweird.f32 %v2464_v13 }
 0x9b2   : > { %vm1320_vm9 = vmor %vm1318_vm8, %vm1319_vm7 }
 0x9b3   : > { %v1314_v28 = vmul.f32 %v2464_v13, %v1313_v6 }
 0x9b5   : > { %v1315_v12 = vmul.f32 0.5, %v1314_v28 }
 0x9b7   : > { %v1316_v1 = vsub.f32 1.5, %v1315_v12 }
 0x9b9   : > { %v1317_v30 = vmul.f32 %v2464_v13, %v1316_v1  ;;  %v682_v1 = vmul.f32 %v3292_v60, %v2749_v52 }
 0x9bb   : > { %v1321_v32 = vsel %vm1320_vm9, %v2464_v13, %v1317_v30 }
 0x9bc   : > { %v3298_v36 = vmul.f32 %v1321_v32, %v1309_v25  ;;  %v3300_v7 = vmul.f32 %v1321_v32, %v1310_v34  ;;  %v689_v25 = vmul.f32 %v682_v1, %v682_v1 }
 0x9be   : > { %vm1324_vm8 = vcmp.ge.f32.partialorder %v3298_v36, 0.0  ;;  %vm1325_vm9 = vcmp.ge.f32.partialorder %v3300_v7, 0.0 }
 0x9d5   : > { %v1434_v10 = vpop.permute.xlu0 %1433 }
 0x9d6   : > { %v1436_v11 = vadd.f32 %v1434_v10, %v3253_v14  ;;  %v842_v47 = vpop.permute.xlu1 %841 }
 0x9d7   : > { %v844_v26 = vadd.f32 %v842_v47, %v3257_v62 }
 0x9d8   : > { %v2293_v59 = vmul.f32 -1.442695, %v1436_v11 }
 0x9d9   : > { %v2218_v48 = vmul.f32 -1.442695, %v844_v26 }
 0x9da   : > { %2465 = vpow2.f32 %v2293_v59 }
 0x9e0   : > { %v2466_v44 = vpop.eup %2465 }
 0x9e1   : > { %v1440_v22 = vadd.f32 1.0, %v2466_v44 }
 0x9e3   : > { %2467 = vrcp.f32 %v1440_v22  ;;  %v1452_v45 = vand.u32 2147483648, %v1440_v22  ;;  %v1450_v38 = vand.u32 2147483647, %v1440_v22  ;;  %vm1446_vm11 = vweird.f32 %v1440_v22 }
 0x9e4   : > { %2469 = vpow2.f32 %v2218_v48 }
 0x9e5   : > { %v1453_v31 = vor.u32 1.1754944e-38, %v1452_v45  ;;  %vm1451_vm14 = vcmp.eq.f32.partialorder %v1450_v38, 8.507059e+37  ;;  %v693_v38 = vsub.f32 %v2857_v4, %v682_v1 }
 0x9e9   : > { %v2468_v24 = vpop.eup %2467 }
 0x9ea   : > { %v1442_v41 = vmul.f32 %v2468_v24, %v1440_v22  ;;  %vm1447_vm10 = vweird.f32 %v2468_v24  ;;  %v2470_v33 = vpop.eup %2469 }
 0x9eb   : > { %vm1448_vm13 = vmor %vm1446_vm11, %vm1447_vm10  ;;  %v848_v61 = vadd.f32 1.0, %v2470_v33  ;;  %v1326_v33 = vmul.f32 0.01, %v3298_v36 }
 0x9ec   : > { %v1443_v43 = vsub.f32 1.0, %v1442_v41 }
 0x9ed   : > { %2471 = vrcp.f32 %v848_v61  ;;  %v860_v13 = vand.u32 2147483648, %v848_v61  ;;  %vm854_vm1 = vweird.f32 %v848_v61  ;;  %v858_v6 = vand.u32 2147483647, %v848_v61 }
 0x9ee   : > { %v1444_v37 = vmul.f32 %v2468_v24, %v1443_v43 }
 0x9ef   : > { %v861_v12 = vor.u32 1.1754944e-38, %v860_v13  ;;  %vm859_vm12 = vcmp.eq.f32.partialorder %v858_v6, 8.507059e+37 }
 0x9f0   : > { %v1445_v40 = vadd.f32 %v2468_v24, %v1444_v37  ;;  %v692_v37 = vsub.f32 %v2855_v2, %v682_v1 }
 0x9f2   : > { %v1449_v46 = vsel %vm1448_vm13, %v2468_v24, %v1445_v40 }
 0x9f3   : > { %v1454_v14 = vsel %vm1451_vm14, %v1453_v31, %v1449_v46  ;;  %v2472_v3 = vpop.eup %2471 }
 0x9f4   : > { %1458 = vperm.xlu1 %2453, %v1454_v14   ;;  %v850_v9 = vmul.f32 %v2472_v3, %v848_v61  ;;  %vm855_vm2 = vweird.f32 %v2472_v3 }
 0x9f5   : > { %vm856_vm3 = vmor %vm854_vm1, %vm855_vm2 }
 0x9f6   : > { %v851_v55 = vsub.f32 1.0, %v850_v9 }
 0x9f8   : > { %v852_v63 = vmul.f32 %v2472_v3, %v851_v55 }
 0x9fa   : > { %v853_v35 = vadd.f32 %v2472_v3, %v852_v63 }
 0x9fc   : > { %v857_v28 = vsel %vm856_vm3, %v2472_v3, %v853_v35 }
 0x9fd   : > { %v862_v39 = vsel %vm859_vm12, %v861_v12, %v857_v28 }
 0xa04   : > { %v3306_v49 = vpop.f32.mrf.mxu0  ;;  %v3308_v50 = vpop.f32.mrf.mxu1 }
 0xa05   : > { %v1894_v53 = vadd.f32 %v3308_v50, %v3306_v49  ;;  %v1898_v29 = vmul.f32 %v3306_v49, %v3306_v49  ;;  %v1899_v15 = vmul.f32 %v3308_v50, %v3308_v50 }
 0xa07   : > { %1895 = vadd.xlane.f32.xlu0 %v1894_v53  ;;  %v1900_v58 = vadd.f32 %v1899_v15, %v1898_v29  ;;  %v1327_v53 = vmul.f32 0.01, %v3300_v7 }
 0xa09   : > { %1901 = vadd.xlane.f32.xlu2 %v1900_v58  ;;  %v1328_v58 = vsel %vm1324_vm8, %v3298_v36, %v1326_v33  ;;  %v1329_v61 = vsel %vm1325_vm9, %v3300_v7, %v1327_v53 }
 0xa0c   : > { %v1879_v62 = vpop.f32.mrf.mxu0  ;;  %v1892_v23 = vpop.f32.mrf.mxu1 }
 0xa1b   : > { %714 = vperm.xlu0 %2450, %v3048_v56   ;;  %v687_v56 = vpop.xlane.xlu2 %686 }
 0xa1c   : > { %v688_v30 = vmul.f32 %v687_v56, %v2749_v52 }
 0xa1e   : > { %v690_v34 = vsub.f32 %v688_v30, %v689_v25 }
 0xa20   : > { %v691_v32 = vmax.f32 %v690_v34, 0.0 }
 0xa21   : > { %2031 = vrot.lane.b32.xlu2 %v2029_v5, %s2521_s25 }
 0xa22   : > { %v694_v8 = vadd.f32 1e-05, %v691_v32 }
 0xa23   : > { %2454 = vset.pattern.permute.xlu0 %v2517_v0 }
 0xa24   : > { %2473 = vrsqrt.f32 %v694_v8  ;;  %vm701_vm4 = vweird.f32 %v694_v8 }
 0xa29   : > { %866 = vperm.xlu2 %2452, %v862_v39  }
 0xa2a   : > { %v2474_v27 = vpop.eup %2473 }
 0xa2b   : > { %v696_v57 = vmul.f32 %v2474_v27, %v694_v8  ;;  %vm702_vm0 = vweird.f32 %v2474_v27 }
 0xa2c   : > { %vm703_vm5 = vmor %vm701_vm4, %vm702_vm0 }
 0xa2d   : > { %v697_v0 = vmul.f32 %v2474_v27, %v696_v57 }
 0xa2f   : > { %v698_v10 = vmul.f32 0.5, %v697_v0 }
 0xa31   : > { %v699_v11 = vsub.f32 1.5, %v698_v10 }
 0xa33   : > { %v700_v24 = vmul.f32 %v2474_v27, %v699_v11 }
 0xa35   : > { %v704_v45 = vsel %vm703_vm5, %v2474_v27, %v700_v24 }
 0xa36   : > { %v705_v31 = vmul.f32 %v704_v45, %v692_v37  ;;  %v706_v14 = vmul.f32 %v704_v45, %v693_v38  ;;  %v3350_v38 = vpop.permute.xlu1 %732 }
 0xa38   : > { %v710_v48 = vmul.f32 0.01, %v706_v14  ;;  %vm707_vm6 = vcmp.ge.f32.partialorder %v705_v31, 0.0  ;;  %vm708_vm7 = vcmp.ge.f32.partialorder %v706_v14, 0.0 }
 0xa3a   : > { %v712_v15 = vsel %vm708_vm7, %v706_v14, %v710_v48 }
 0xa7a   : > { %v1896_v59 = vpop.xlane.xlu0 %1895 }
 0xa7b   : > { %v3324_v44 = vmul.f32 %v1896_v59, %v2749_v52 }
 0xa7c   : > { %v1902_v22 = vpop.xlane.xlu2 %1901 }
 0xa7d   : > { %v1903_v60 = vmul.f32 %v1902_v22, %v2749_v52  ;;  %v1904_v41 = vmul.f32 %v3324_v44, %v3324_v44  ;;  %v709_v52 = vmul.f32 0.01, %v705_v31  ;;  %v1907_v34 = vsub.f32 %v3306_v49, %v3324_v44 }
 0xa7e   : > { %v1908_v10 = vsub.f32 %v3308_v50, %v3324_v44 }
 0xa7f   : > { %v1905_v43 = vsub.f32 %v1903_v60, %v1904_v41  ;;  %v711_v29 = vsel %vm707_vm6, %v705_v31, %v709_v52 }
 0xa81   : > { %v1906_v21 = vmax.f32 %v1905_v43, 0.0 }
 0xa83   : > { %v1909_v40 = vadd.f32 1e-05, %v1906_v21 }
 0xa84   : > { %v2032_v46 = vpop.permute.xlu2 %2031 }
 0xa85   : > { %2475 = vrsqrt.f32 %v1909_v40  ;;  %v2034_v47 = vadd.f32 %v2032_v46, %v2029_v5  ;;  %vm1916_vm11 = vweird.f32 %v1909_v40 }
 0xa87   : > { %v2368_v26 = vmul.f32 -1.442695, %v2034_v47 }
 0xa89   : > { %2477 = vpow2.f32 %v2368_v26 }
 0xa8b   : > { %v2476_v2 = vpop.eup %2475 }
 0xa8c   : > { %v1911_v4 = vmul.f32 %v2476_v2, %v1909_v40  ;;  %vm1917_vm10 = vweird.f32 %v2476_v2 }
 0xa8d   : > { %v3337_v62 = vpop.permute.xlu0 %714  ;;  %vm1918_vm13 = vmor %vm1916_vm11, %vm1917_vm10 }
 0xa8e   : > { %v1912_v23 = vmul.f32 %v2476_v2, %v1911_v4  ;;  %v717_v3 = vmul.f32 %v3337_v62, %v711_v29  ;;  %v718_v9 = vmul.f32 %v3337_v62, %v712_v15  ;;  %v1330_v51 = vmul.f32 %v1328_v58, %v3337_v62 }
 0xa8f   : > { %v2478_v55 = vpop.eup %2477  ;;  %v1331_v18 = vmul.f32 %v1329_v61, %v3337_v62 }
 0xa90   : > { %v1913_v63 = vmul.f32 0.5, %v1912_v23  ;;  %v3343_v5 = vadd.f32 1.0, %v2478_v55  ;;  %v719_v35 = vrot.slane %v717_v3, 4  ;;  %v725_v13 = vrot.slane %v718_v9, 4 }
 0xa91   : > { %v1332_v36 = vrot.slane %v1330_v51, 4  ;;  %v1338_v7 = vrot.slane %v1331_v18, 4 }
 0xa92   : > { %v1914_v6 = vsub.f32 1.5, %v1913_v63  ;;  %2479 = vrcp.f32 %v3343_v5  ;;  %v720_v28 = vadd.f32 %v719_v35, %v717_v3  ;;  %v726_v12 = vadd.f32 %v725_v13, %v718_v9 }
 0xa93   : > { %v1333_v39 = vadd.f32 %v1332_v36, %v1330_v51  ;;  %v1339_v56 = vadd.f32 %v1338_v7, %v1331_v18  ;;  %v2050_v31 = vand.u32 2147483648, %v3343_v5  ;;  %v2048_v29 = vand.u32 2147483647, %v3343_v5 }
 0xa94   : > { %v1915_v1 = vmul.f32 %v2476_v2, %v1914_v6  ;;  %v721_v30 = vrot.slane %v720_v28, 2  ;;  %v727_v25 = vrot.slane %v726_v12, 2  ;;  %vm2044_vm1 = vweird.f32 %v3343_v5 }
 0xa95   : > { %v1334_v32 = vrot.slane %v1333_v39, 2  ;;  %v1340_v8 = vrot.slane %v1339_v56, 2  ;;  %v2051_v9 = vor.u32 1.1754944e-38, %v2050_v31  ;;  %vm2049_vm12 = vcmp.eq.f32.partialorder %v2048_v29, 8.507059e+37 }
 0xa96   : > { %v1919_v27 = vsel %vm1918_vm13, %v2476_v2, %v1915_v1  ;;  %v722_v57 = vadd.f32 %v721_v30, %v720_v28  ;;  %v728_v0 = vadd.f32 %v727_v25, %v726_v12 }
 0xa97   : > { %v1920_v11 = vmul.f32 %v1919_v27, %v1907_v34  ;;  %v1335_v59 = vadd.f32 %v1334_v32, %v1333_v39  ;;  %v1341_v22 = vadd.f32 %v1340_v8, %v1339_v56  ;;  %v1921_v43 = vmul.f32 %v1919_v27, %v1908_v10 }
 0xa98   : > { %v2480_v24 = vpop.eup %2479  ;;  %v723_v60 = vrot.slane %v722_v57, 1  ;;  %v729_v41 = vrot.slane %v728_v0, 1 }
 0xa99   : > { %v1336_v37 = vrot.slane %v1335_v59, 1  ;;  %v1342_v49 = vrot.slane %v1341_v22, 1  ;;  %vm1922_vm14 = vcmp.ge.f32.partialorder %v1920_v11, 0.0  ;;  %v2040_v40 = vmul.f32 %v2480_v24, %v3343_v5 }
 0xa9a   : > { %v724_v45 = vadd.f32 %v723_v60, %v722_v57  ;;  %v730_v21 = vadd.f32 %v729_v41, %v728_v0  ;;  %vm1923_vm15 = vcmp.ge.f32.partialorder %v1921_v43, 0.0  ;;  %v1924_v47 = vmul.f32 0.01, %v1920_v11 }
 0xa9b   : > { %v1337_v46 = vadd.f32 %v1336_v37, %v1335_v59  ;;  %v1343_v14 = vadd.f32 %v1342_v49, %v1341_v22  ;;  %v1925_v26 = vmul.f32 0.01, %v1921_v43  ;;  %v2041_v52 = vsub.f32 1.0, %v2040_v40 }
 0xa9c   : > { %v735_v50 = vadd.f32 %v3350_v38, %v724_v45  ;;  %v736_v44 = vadd.f32 %v3350_v38, %v730_v21  ;;  %vm2045_vm2 = vweird.f32 %v2480_v24  ;;  %v1926_v61 = vsel %vm1922_vm14, %v1920_v11, %v1924_v47 }
 0xa9d   : > { %v1344_v53 = vadd.f32 %v1337_v46, %v3350_v38  ;;  %v1345_v2 = vadd.f32 %v1343_v14, %v3350_v38  ;;  %v2042_v4 = vmul.f32 %v2480_v24, %v2041_v52  ;;  %v1927_v23 = vsel %vm1923_vm15, %v1921_v43, %v1925_v26  ;;  %vm2046_vm3 = vmor %vm2044_vm1, %vm2045_vm2 }
 0xa9e   : > { %v2214_v48 = vmul.f32 -1.442695, %v735_v50  ;;  %v2215_v33 = vmul.f32 -1.442695, %v736_v44  ;;  %v1928_v55 = vmul.f32 %v1926_v61, %v3337_v62  ;;  %v1929_v18 = vmul.f32 %v1927_v23, %v3337_v62 }
 0xa9f   : > { %v2289_v15 = vmul.f32 -1.442695, %v1344_v53  ;;  %v2290_v58 = vmul.f32 -1.442695, %v1345_v2  ;;  %v2043_v3 = vadd.f32 %v2480_v24, %v2042_v4 }
 0xaa0   : > { %2481 = vpow2.f32 %v2214_v48  ;;  %v1930_v6 = vrot.slane %v1928_v55, 4  ;;  %v1936_v28 = vrot.slane %v1929_v18, 4 }
 0xaa1   : > { %2483 = vpow2.f32 %v2215_v33  ;;  %v2047_v51 = vsel %vm2046_vm3, %v2480_v24, %v2043_v3 }
 0xaa2   : > { %2485 = vpow2.f32 %v2289_v15  ;;  %v2052_v63 = vsel %vm2049_vm12, %v2051_v9, %v2047_v51  ;;  %v3367_v1 = vadd.f32 %v1930_v6, %v1928_v55  ;;  %v3369_v62 = vadd.f32 %v1936_v28, %v1929_v18  ;;  %v867_v55 = vpop.permute.xlu2 %866 }
 0xaa3   : > { %2487 = vpow2.f32 %v2290_v58  ;;  %2056 = vperm.xlu2 %2452, %v2052_v63  }
 0xaa4   : > { %v1932_v27 = vrot.slane %v3367_v1, 2  ;;  %v1938_v57 = vrot.slane %v3369_v62, 2 }
 0xaa6   : > { %v2482_v35 = vpop.eup %2481  ;;  %v1933_v6 = vadd.f32 %v1932_v27, %v3367_v1 }
 0xaa7   : > { %v2484_v5 = vpop.eup %2483  ;;  %v743_v13 = vadd.f32 1.0, %v2482_v35 }
 0xaa8   : > { %v2486_v36 = vpop.eup %2485  ;;  %v744_v7 = vadd.f32 1.0, %v2484_v5 }
 0xaa9   : > { %v2488_v12 = vpop.eup %2487  ;;  %2489 = vrcp.f32 %v743_v13  ;;  %v1352_v39 = vadd.f32 1.0, %v2486_v36  ;;  %v754_v30 = vand.u32 2147483647, %v743_v13  ;;  %v756_v25 = vand.u32 2147483648, %v743_v13 }
 0xaaa   : > { %2491 = vrcp.f32 %v744_v7  ;;  %v3364_v56 = vadd.f32 1.0, %v2488_v12  ;;  %v769_v34 = vand.u32 2147483647, %v744_v7  ;;  %vm750_vm0 = vweird.f32 %v743_v13 }
 0xaab   : > { %2493 = vrcp.f32 %v1352_v39  ;;  %vm3373_vm4 = vcmp.eq.f32.partialorder %v754_v30, 8.507059e+37  ;;  %vm765_vm5 = vweird.f32 %v744_v7  ;;  %v771_v22 = vand.u32 2147483648, %v744_v7 }
 0xaac   : > { %2495 = vrcp.f32 %v3364_v56  ;;  %v757_v41 = vor.u32 1.1754944e-38, %v756_v25  ;;  %vm3377_vm6 = vcmp.eq.f32.partialorder %v769_v34, 8.507059e+37  ;;  %vm1359_vm7 = vweird.f32 %v1352_v39 }
 0xaad   : > { %v1363_v37 = vand.u32 2147483647, %v1352_v39  ;;  %v1365_v50 = vand.u32 2147483648, %v1352_v39  ;;  %v772_v46 = vor.u32 1.1754944e-38, %v771_v22  ;;  %v1380_v52 = vand.u32 2147483648, %v3364_v56 }
 0xaae   : > { %v1378_v53 = vand.u32 2147483647, %v3364_v56  ;;  %vm1374_vm2 = vweird.f32 %v3364_v56 }
 0xaaf   : > { %v2490_v32 = vpop.eup %2489  ;;  %vm1364_vm15 = vcmp.eq.f32.partialorder %v1363_v37, 8.507059e+37  ;;  %v1366_v58 = vor.u32 1.1754944e-38, %v1365_v50  ;;  %v1381_v51 = vor.u32 1.1754944e-38, %v1380_v52 }
 0xab0   : > { %v2492_v8 = vpop.eup %2491  ;;  %v746_v0 = vmul.f32 %v2490_v32, %v743_v13  ;;  %vm751_vm8 = vweird.f32 %v2490_v32  ;;  %vm1379_vm12 = vcmp.eq.f32.partialorder %v1378_v53, 8.507059e+37 }
 0xab1   : > { %v2494_v10 = vpop.eup %2493  ;;  %v761_v59 = vmul.f32 %v2492_v8, %v744_v7  ;;  %vm766_vm9 = vweird.f32 %v2492_v8  ;;  %vm752_vm11 = vmor %vm750_vm0, %vm751_vm8  ;;  %v1459_v7 = vpop.permute.xlu1 %1458 }
 0xab2   : > { %v2496_v24 = vpop.eup %2495  ;;  %v747_v60 = vsub.f32 1.0, %v746_v0  ;;  %v1355_v45 = vmul.f32 %v2494_v10, %v1352_v39  ;;  %vm1360_vm10 = vweird.f32 %v2494_v10  ;;  %vm767_vm14 = vmor %vm765_vm5, %vm766_vm9  ;;  %v1939_v39 = vadd.f32 %v1938_v57, %v3369_v62 }
 0xab3   : > { %v762_v21 = vsub.f32 1.0, %v761_v59  ;;  %v1370_v49 = vmul.f32 %v2496_v24, %v3364_v56  ;;  %vm1375_vm13 = vweird.f32 %v2496_v24  ;;  %vm1361_vm1 = vmor %vm1359_vm7, %vm1360_vm10 }
 0xab4   : > { %v748_v40 = vmul.f32 %v2490_v32, %v747_v60  ;;  %v1356_v31 = vsub.f32 1.0, %v1355_v45  ;;  %vm1376_vm3 = vmor %vm1374_vm2, %vm1375_vm13 }
 0xab5   : > { %v763_v44 = vmul.f32 %v2492_v8, %v762_v21  ;;  %v1371_v14 = vsub.f32 1.0, %v1370_v49 }
 0xab6   : > { %v749_v47 = vadd.f32 %v2490_v32, %v748_v40  ;;  %v1357_v26 = vmul.f32 %v2494_v10, %v1356_v31 }
 0xab7   : > { %v764_v48 = vadd.f32 %v2492_v8, %v763_v44  ;;  %v1372_v33 = vmul.f32 %v2496_v24, %v1371_v14 }
 0xab8   : > { %v753_v2 = vsel %vm752_vm11, %v2490_v32, %v749_v47  ;;  %v1358_v4 = vadd.f32 %v2494_v10, %v1357_v26 }
 0xab9   : > { %v758_v29 = vsel %vm3373_vm4, %v757_v41, %v753_v2  ;;  %v768_v15 = vsel %vm767_vm14, %v2492_v8, %v764_v48  ;;  %v1373_v61 = vadd.f32 %v2496_v24, %v1372_v33  ;;  %v1934_v8 = vrot.slane %v1933_v6, 1 }
 0xaba   : > { %v773_v23 = vsel %vm3377_vm6, %v772_v46, %v768_v15  ;;  %v869_v3 = vperm.slane %v758_v29, 0  ;;  %v1362_v9 = vsel %vm1361_vm1, %v2494_v10, %v1358_v4  ;;  %v1940_v10 = vrot.slane %v1939_v39, 1 }
 0xabb   : > { %v870_v18 = vperm.slane %v773_v23, 0  ;;  %v1367_v63 = vsel %vm1364_vm15, %v1366_v58, %v1362_v9  ;;  %v1377_v35 = vsel %vm1376_vm3, %v2496_v24, %v1373_v61  ;;  %v1935_v24 = vadd.f32 %v1934_v8, %v1933_v6 }
 0xabc   : > { %v871_v5 = vmul.f32 %v869_v3, %v867_v55  ;;  %v1382_v13 = vsel %vm1379_vm12, %v1381_v51, %v1377_v35  ;;  %v1461_v36 = vperm.slane %v1367_v63, 0  ;;  %v1941_v62 = vadd.f32 %v1940_v10, %v1939_v39 }
 0xabd   : > { %v872_v28 = vmul.f32 %v870_v18, %v867_v55  ;;  %v1462_v12 = vperm.slane %v1382_v13, 0 }
 0xabe   : > { %v873_v56 = vmul.f32 %v871_v5, %v2583_v16  ;;  %v1463_v30 = vmul.f32 %v1461_v36, %v1459_v7  ;;  %v1942_v16 = vadd.f32 %v1935_v24, %v3350_v38  ;;  %v1943_v57 = vadd.f32 %v1941_v62, %v3350_v38 }
 0xabf   : > { %v874_v25 = vmul.f32 %v872_v28, %v2585_v17  ;;  %v1464_v34 = vmul.f32 %v1462_v12, %v1459_v7 }
 0xac0   : > { %v1465_v32 = vsub.f32 1.0, %v1463_v30  ;;  %v1469_v59 = vmul.f32 %v1463_v30, %v2859_v19  ;;  %v2364_v17 = vmul.f32 -1.442695, %v1942_v16  ;;  %v2365_v41 = vmul.f32 -1.442695, %v1943_v57 }
 0xac1   : > { %v1466_v0 = vsub.f32 1.0, %v1464_v34  ;;  %v1470_v1 = vmul.f32 %v1464_v34, %v2861_v20 }
 0xac2   : > { %v1467_v11 = vmul.f32 %v1465_v32, %v873_v56  ;;  %2497 = vpow2.f32 %v2364_v17 }
 0xac3   : > { %v1468_v22 = vmul.f32 %v1466_v0, %v874_v25  ;;  %2499 = vpow2.f32 %v2365_v41 }
 0xac4   : > { %v1471_v27 = vadd.f32 %v1469_v59, %v1467_v11 }
 0xac5   : > { %v1472_v60 = vadd.f32 %v1470_v1, %v1468_v22 }
 0xac8   : > { %v2498_v43 = vpop.eup %2497 }
 0xac9   : > { %v2500_v45 = vpop.eup %2499  ;;  %v1950_v21 = vadd.f32 1.0, %v2498_v43 }
 0xaca   : > { %v1951_v37 = vadd.f32 1.0, %v2500_v45 }
 0xacb   : > { %2501 = vrcp.f32 %v1950_v21  ;;  %vm1957_vm5 = vweird.f32 %v1950_v21  ;;  %v1963_v47 = vand.u32 2147483648, %v1950_v21  ;;  %v1961_v52 = vand.u32 2147483647, %v1950_v21 }
 0xacc   : > { %2503 = vrcp.f32 %v1951_v37  ;;  %v1978_v26 = vand.u32 2147483648, %v1951_v37  ;;  %vm1972_vm7 = vweird.f32 %v1951_v37  ;;  %v1976_v48 = vand.u32 2147483647, %v1951_v37 }
 0xacd   : > { %v1964_v2 = vor.u32 1.1754944e-38, %v1963_v47  ;;  %vm1962_vm9 = vcmp.eq.f32.partialorder %v1961_v52, 8.507059e+37 }
 0xace   : > { %v1979_v4 = vor.u32 1.1754944e-38, %v1978_v26  ;;  %vm1977_vm10 = vcmp.eq.f32.partialorder %v1976_v48, 8.507059e+37 }
 0xad1   : > { %v2502_v19 = vpop.eup %2501 }
 0xad2   : > { %v2504_v20 = vpop.eup %2503  ;;  %v1953_v49 = vmul.f32 %v2502_v19, %v1950_v21  ;;  %vm1958_vm0 = vweird.f32 %v2502_v19 }
 0xad3   : > { %v1968_v40 = vmul.f32 %v2504_v20, %v1951_v37  ;;  %vm1973_vm4 = vweird.f32 %v2504_v20  ;;  %vm1959_vm6 = vmor %vm1957_vm5, %vm1958_vm0 }
 0xad4   : > { %v1954_v31 = vsub.f32 1.0, %v1953_v49  ;;  %vm1974_vm8 = vmor %vm1972_vm7, %vm1973_vm4 }
 0xad5   : > { %v1969_v50 = vsub.f32 1.0, %v1968_v40 }
 0xad6   : > { %v1955_v44 = vmul.f32 %v2502_v19, %v1954_v31 }
 0xad7   : > { %v1970_v46 = vmul.f32 %v2504_v20, %v1969_v50 }
 0xad8   : > { %v1956_v38 = vadd.f32 %v2502_v19, %v1955_v44 }
 0xad9   : > { %v1971_v14 = vadd.f32 %v2504_v20, %v1970_v46 }
 0xada   : > { %v1960_v33 = vsel %vm1959_vm6, %v2502_v19, %v1956_v38 }
 0xadb   : > { %v1975_v53 = vsel %vm1974_vm8, %v2504_v20, %v1971_v14  ;;  %v1965_v29 = vsel %vm1962_vm9, %v1964_v2, %v1960_v33 }
 0xadc   : > { %v1980_v15 = vsel %vm1977_vm10, %v1979_v4, %v1975_v53  ;;  %v2059_v58 = vperm.slane %v1965_v29, 0 }
 0xadd   : > { %v2060_v61 = vperm.slane %v1980_v15, 0 }
 0xafd   : > { %v2057_v23 = vpop.permute.xlu2 %2056 }
 0xafe   : > { %v2061_v3 = vmul.f32 %v2059_v58, %v2057_v23  ;;  %v2062_v9 = vmul.f32 %v2060_v61, %v2057_v23 }
 0xb00   : > { %v2063_v51 = vsub.f32 1.0, %v2061_v3  ;;  %v2064_v55 = vsub.f32 1.0, %v2062_v9  ;;  %v2067_v35 = vmul.f32 %v2061_v3, %v3072_v54  ;;  %v2068_v5 = vmul.f32 %v2062_v9, %v3074_v42 }
 0xb02   : > { %v2065_v18 = vmul.f32 %v2063_v51, %v1471_v27  ;;  %v2066_v63 = vmul.f32 %v2064_v55, %v1472_v60 }
 0xb04   : > { %v2069_v13 = vadd.f32 %v2067_v35, %v2065_v18  ;;  %v2070_v36 = vadd.f32 %v2068_v5, %v2066_v63 }
 0xb06   : > { %2071 = vst [vmem:[%s170_s26] sm:$0xff] %v2069_v13 }
 0xb07   : > { %2072 = vst [vmem:[%s170_s26 + $0x8] sm:$0xff] %v2070_v36 }
 0xb08 PF: > { %s13_s12 = sadd.s32 1, %s2515_s12  }
 0xb09   : > { %p10_p4 = scmp.ge.s32.totalorder %s13_s12, 4  }
 0xb0b   :  { %12 = sbr.rel (!%p10_p4) target bundleno = 1 (0x1), region = 69 }

</bundles_post_ra>
